<compile_context>
chip_gen: v5e
topology: v5e:2x2
jax: 0.10.0
libtpu: 0.0.40
codegen_flags: <defaults>
</compile_context>

<pallas_src>
import functools

import jax
import jax.numpy as jnp
from jax.experimental import pallas as pl
from jax.experimental.pallas import tpu as pltpu


# ------------------------- parameter preprocessing ------------------------- #

def _fold_bn(gamma, beta, bias=None, mean=0.0, var=1.0, eps=1e-5):
    """Fold eval-mode BatchNorm1d (+ optional preceding conv bias) into a
    per-channel (scale, shift) pair, returned as (1, C) float32 rows."""
    scale = gamma / jnp.sqrt(var + eps)
    if bias is None:
        bias = 0.0
    shift = (bias - mean) * scale + beta
    return (scale.reshape(1, -1).astype(jnp.float32),
            shift.reshape(1, -1).astype(jnp.float32))


# ------------------------------ kernel helpers ------------------------------ #

def _dot(a, b):
    return jnp.dot(a, b, preferred_element_type=jnp.float32)


def _maxpool4(v, n_out):
    """MaxPool1d(kernel=4, stride=4, floor) along axis 0 of a 2-D value."""
    rows = [jnp.max(v[4 * p:4 * p + 4, :], axis=0, keepdims=True)
            for p in range(n_out)]
    return rows[0] if n_out == 1 else jnp.concatenate(rows, axis=0)


def _block(a, w1_ref, w2_ref, wr_ref, s_a, b_a, s_b, b_b, b_o):
    """Residual Block (k=3, stride=1) + the outer F.relu applied by M5.
    a: (L, C_in) f32 value; weight refs are (3, C_in, C_out)/(3, C_out, C_out)/
    (C_in, C_out) bf16; scales/shifts/bias are (1, C) f32 values."""
    L = a.shape[0]
    xo = jnp.maximum(a * s_a + b_a, 0.0)                       # relu(bn1(x))
    xo_b = xo.astype(jnp.bfloat16)
    z_i = jnp.zeros((1, xo_b.shape[1]), jnp.bfloat16)
    # conv1 (pad=1) -> bn2 -> relu   (dropout is identity in eval)
    h = (_dot(jnp.concatenate([z_i, xo_b[:L - 1]], axis=0), w1_ref[0])
         + _dot(xo_b, w1_ref[1])
         + _dot(jnp.concatenate([xo_b[1:], z_i], axis=0), w1_ref[2]))
    h = jnp.maximum(h * s_b + b_b, 0.0)
    h_b = h.astype(jnp.bfloat16)
    z_o = jnp.zeros((1, h_b.shape[1]), jnp.bfloat16)
    # conv2 ('same') + conv_res (1x1) fused into one accumulation, biases
    # summed, then the outer F.relu from M5.
    out = (_dot(jnp.concatenate([z_o, h_b[:L - 1]], axis=0), w2_ref[0])
           + _dot(h_b, w2_ref[1])
           + _dot(jnp.concatenate([h_b[1:], z_o], axis=0), w2_ref[2])
           + _dot(xo_b, wr_ref[...])
           + b_o)
    return jnp.maximum(out, 0.0)


# --------------------------------- kernel ----------------------------------- #

def _m5_kernel(x_ref,
               w5_ref, s1_ref, b1_ref,
               b2w1, b2w2, b2wr, b2sa, b2ba, b2sb, b2bb, b2bo,
               b3w1, b3w2, b3wr, b3sa, b3ba, b3sb, b3bb, b3bo,
               w4_ref, s4_ref, b4_ref,
               wf_ref, fb_ref,
               o_ref,
               *, p1, p2, p3, p4):
    f_in = x_ref.shape[1] // 4          # 16 * C_in

    # ---- stage 1: conv1(K=80, s=16) + bn1 + relu, fused with maxpool(4) ----
    # Output row t = 4p + q uses input samples 64p + 16(q+j) + r; each (q, j)
    # term is a contiguous (p1, f_in) window of the (L/64, 4*f_in) input block.
    s1 = s1_ref[...]
    b1 = b1_ref[...]
    pooled = None
    for q in range(4):
        acc = None
        for j in range(5):
            m = q + j
            xm = x_ref[pl.ds(m // 4, p1), pl.ds(f_in * (m % 4), f_in)]
            d = _dot(xm.astype(jnp.bfloat16), w5_ref[j])
            acc = d if acc is None else acc + d
        yq = jnp.maximum(acc * s1 + b1, 0.0)
        pooled = yq if pooled is None else jnp.maximum(pooled, yq)

    # ---- Block 2 + F.relu + maxpool(4) ----
    a = _block(pooled, b2w1, b2w2, b2wr,
               b2sa[...], b2ba[...], b2sb[...], b2bb[...], b2bo[...])
    a = _maxpool4(a, p2)

    # ---- Block 3 + F.relu + maxpool(4) ----
    a = _block(a, b3w1, b3w2, b3wr,
               b3sa[...], b3ba[...], b3sb[...], b3bb[...], b3bo[...])
    a = _maxpool4(a, p3)

    # ---- conv4 (k=3, valid) + bn4 + relu + maxpool(4) + global-avg + fc1 ----
    l4 = p3 - 2
    ab = a.astype(jnp.bfloat16)
    c4 = (_dot(ab[0:l4], w4_ref[0])
          + _dot(ab[1:l4 + 1], w4_ref[1])
          + _dot(ab[2:l4 + 2], w4_ref[2]))
    c4 = jnp.maximum(c4 * s4_ref[...] + b4_ref[...], 0.0)
    feat = jnp.mean(_maxpool4(c4, p4), axis=0, keepdims=True)   # (1, 2*C)
    logits = _dot(feat.astype(jnp.bfloat16), wf_ref[...]) + fb_ref[...]
    o_ref[...] = logits.astype(o_ref.dtype)


# -------------------------------- wrapper ----------------------------------- #

def m5_forward(x, params):
    """x: (B, L, n_input) channels-last float32.  Returns (B,) for n_output=1."""
    B, L, c_in = x.shape
    f_in = 16 * c_in
    assert L % 64 == 0 and L >= 80, "L must be a multiple of 64 and >= 80"
    l1 = (L - 80) // 16 + 1
    p1 = l1 // 4                       # after pool1
    assert p1 + 1 <= L // 64
    p2 = p1 // 4                       # after pool2
    p3 = p2 // 4                       # after pool3
    l4 = p3 - 2                        # conv4 (valid) output length
    p4 = l4 // 4                       # after pool4
    assert p4 >= 1, "sequence too short for the M5 pooling stack"

    bf16 = jnp.bfloat16
    c1 = params["conv1_w"].shape[0]

    # conv1 weights -> 5 shifted (16*C_in, C_out) bf16 slabs (phase matmuls).
    w5 = (jnp.transpose(params["conv1_w"], (2, 1, 0))
          .reshape(5, 16 * c_in, c1).astype(bf16))
    s1, b1 = _fold_bn(params["bn1_g"], params["bn1_b"], bias=params["conv1_b"])

    def prep_block(bp):
        w1k = jnp.transpose(bp["conv1_w"], (2, 1, 0)).astype(bf16)       # (3,Ci,Co)
        w2k = jnp.transpose(bp["conv2_w"], (2, 1, 0)).astype(bf16)       # (3,Co,Co)
        wr = jnp.transpose(bp["convr_w"][:, :, 0], (1, 0)).astype(bf16)  # (Ci,Co)
        s_a, b_a = _fold_bn(bp["bn1_g"], bp["bn1_b"])
        s_b, b_b = _fold_bn(bp["bn2_g"], bp["bn2_b"], bias=bp["conv1_b"])
        b_o = (bp["conv2_b"] + bp["convr_b"]).reshape(1, -1).astype(jnp.float32)
        return [w1k, w2k, wr, s_a, b_a, s_b, b_b, b_o]

    w4 = jnp.transpose(params["conv4_w"], (2, 1, 0)).astype(bf16)        # (3,2c,2c)
    s4, b4 = _fold_bn(params["bn4_g"], params["bn4_b"], bias=params["conv4_b"])
    wf = jnp.transpose(params["fc1_w"], (1, 0)).astype(bf16)             # (2c, n_out)
    fb = params["fc1_b"].reshape(1, -1).astype(jnp.float32)
    n_out = wf.shape[1]

    weights = [w5, s1, b1] + prep_block(params["blk2"]) + \
        prep_block(params["blk3"]) + [w4, s4, b4, wf, fb]

    # Pure reshape (no data duplication): (B, L, C_in) -> (B, L/64, 64*C_in).
    xr = x.reshape(B, L // 64, 4 * f_in)

    def full_spec(a):
        nd = a.ndim
        return pl.BlockSpec(a.shape, lambda b, _nd=nd: (0,) * _nd)

    kernel = functools.partial(_m5_kernel, p1=p1, p2=p2, p3=p3, p4=p4)

    out = pl.pallas_call(
        kernel,
        out_shape=jax.ShapeDtypeStruct((B, 1, n_out), jnp.float32),
        grid=(B,),
        in_specs=[pl.BlockSpec((None, L // 64, 4 * f_in), lambda b: (b, 0, 0))]
                 + [full_spec(w) for w in weights],
        out_specs=pl.BlockSpec((None, 1, n_out), lambda b: (b, 0, 0)),
        compiler_params=pltpu.CompilerParams(
            dimension_semantics=("parallel",)),
    )(xr, *weights)

    # PyTorch does x.squeeze(); only drop the n_output axis so B==1 would keep
    # its batch dimension.
    out = out.reshape(B, n_out)
    return out.squeeze(-1) if n_out == 1 else out


# --------------------------- parameter construction ------------------------- #

def _rn(key, shape, s=0.1):
    return s * jax.random.normal(key, shape, jnp.float32)


def make_block_params(key, c_in, c_out, k):
    ks = jax.random.split(key, 10)
    return dict(
        bn1_g=1.0 + _rn(ks[0], (c_in,)),
        bn1_b=_rn(ks[1], (c_in,)),
        conv1_w=_rn(ks[2], (c_out, c_in, k)),
        conv1_b=_rn(ks[3], (c_out,)),
        bn2_g=1.0 + _rn(ks[4], (c_out,)),
        bn2_b=_rn(ks[5], (c_out,)),
        conv2_w=_rn(ks[6], (c_out, c_out, k)),
        conv2_b=_rn(ks[7], (c_out,)),
        convr_w=_rn(ks[8], (c_out, c_in, 1)),
        convr_b=_rn(ks[9], (c_out,)),
    )


if __name__ == "__main__":
    key = jax.random.PRNGKey(0)
    n_input, n_channel, n_output = 2, 32, 1
    ks = jax.random.split(key, 13)

    params = dict(
        conv1_w=_rn(ks[0], (n_channel, n_input, 80)),
        conv1_b=_rn(ks[1], (n_channel,)),
        bn1_g=1.0 + _rn(ks[2], (n_channel,)),
        bn1_b=_rn(ks[3], (n_channel,)),
        blk2=make_block_params(ks[4], n_channel, n_channel, 3),
        blk3=make_block_params(ks[5], n_channel, 2 * n_channel, 3),
        conv4_w=_rn(ks[6], (2 * n_channel, 2 * n_channel, 3)),
        conv4_b=_rn(ks[7], (2 * n_channel,)),
        bn4_g=1.0 + _rn(ks[8], (2 * n_channel,)),
        bn4_b=_rn(ks[9], (2 * n_channel,)),
        fc1_w=_rn(ks[10], (n_output, 2 * n_channel)),
        fc1_b=_rn(ks[11], (n_output,)),
    )

    # L must survive: conv1(k=80,s=16) -> /4 -> /4 -> /4 -> (-2) -> /4 -> avg
    x = jax.random.normal(ks[12], (2, 6400, n_input), jnp.float32)

    out = jax.jit(m5_forward)(x, params)
    out = jax.block_until_ready(out)
    assert out.shape == (2,) and bool(jnp.all(jnp.isfinite(out)))
    print("KERNEL_OK")
</pallas_src>

<mosaic_0001>
module attributes {stable_mosaic.version = 11 : i64} {
  func.func @_m5_kernel(%arg0: i32, %arg1: memref<1x100x128xf32, #tpu.memory_space<vmem>>, %arg2: memref<5x32x32xbf16, #tpu.memory_space<vmem>>, %arg3: memref<1x32xf32, #tpu.memory_space<vmem>>, %arg4: memref<1x32xf32, #tpu.memory_space<vmem>>, %arg5: memref<3x32x32xbf16, #tpu.memory_space<vmem>>, %arg6: memref<3x32x32xbf16, #tpu.memory_space<vmem>>, %arg7: memref<32x32xbf16, #tpu.memory_space<vmem>>, %arg8: memref<1x32xf32, #tpu.memory_space<vmem>>, %arg9: memref<1x32xf32, #tpu.memory_space<vmem>>, %arg10: memref<1x32xf32, #tpu.memory_space<vmem>>, %arg11: memref<1x32xf32, #tpu.memory_space<vmem>>, %arg12: memref<1x32xf32, #tpu.memory_space<vmem>>, %arg13: memref<3x32x64xbf16, #tpu.memory_space<vmem>>, %arg14: memref<3x64x64xbf16, #tpu.memory_space<vmem>>, %arg15: memref<32x64xbf16, #tpu.memory_space<vmem>>, %arg16: memref<1x32xf32, #tpu.memory_space<vmem>>, %arg17: memref<1x32xf32, #tpu.memory_space<vmem>>, %arg18: memref<1x64xf32, #tpu.memory_space<vmem>>, %arg19: memref<1x64xf32, #tpu.memory_space<vmem>>, %arg20: memref<1x64xf32, #tpu.memory_space<vmem>>, %arg21: memref<3x64x64xbf16, #tpu.memory_space<vmem>>, %arg22: memref<1x64xf32, #tpu.memory_space<vmem>>, %arg23: memref<1x64xf32, #tpu.memory_space<vmem>>, %arg24: memref<64x1xbf16, #tpu.memory_space<vmem>>, %arg25: memref<1x1xf32, #tpu.memory_space<vmem>>, %arg26: memref<1x1x1xf32, #tpu.memory_space<vmem>>) attributes {dimension_semantics = [#tpu.dimension_semantics<parallel>], iteration_bounds = array<i64: 2>, scalar_prefetch = 0 : i64, scratch_operands = 0 : i64, tpu.core_type = #tpu.core_type<tc>, window_params = [{transform_indices = @transform_0, window_bounds = array<i64: 1, 100, 128>}, {pipeline_mode = #tpu.pipeline_mode<synchronous>, transform_indices = @transform_1, window_bounds = array<i64: 5, 32, 32>}, {pipeline_mode = #tpu.pipeline_mode<synchronous>, transform_indices = @transform_2, window_bounds = array<i64: 1, 32>}, {pipeline_mode = #tpu.pipeline_mode<synchronous>, transform_indices = @transform_3, window_bounds = array<i64: 1, 32>}, {pipeline_mode = #tpu.pipeline_mode<synchronous>, transform_indices = @transform_4, window_bounds = array<i64: 3, 32, 32>}, {pipeline_mode = #tpu.pipeline_mode<synchronous>, transform_indices = @transform_5, window_bounds = array<i64: 3, 32, 32>}, {pipeline_mode = #tpu.pipeline_mode<synchronous>, transform_indices = @transform_6, window_bounds = array<i64: 32, 32>}, {pipeline_mode = #tpu.pipeline_mode<synchronous>, transform_indices = @transform_7, window_bounds = array<i64: 1, 32>}, {pipeline_mode = #tpu.pipeline_mode<synchronous>, transform_indices = @transform_8, window_bounds = array<i64: 1, 32>}, {pipeline_mode = #tpu.pipeline_mode<synchronous>, transform_indices = @transform_9, window_bounds = array<i64: 1, 32>}, {pipeline_mode = #tpu.pipeline_mode<synchronous>, transform_indices = @transform_10, window_bounds = array<i64: 1, 32>}, {pipeline_mode = #tpu.pipeline_mode<synchronous>, transform_indices = @transform_11, window_bounds = array<i64: 1, 32>}, {pipeline_mode = #tpu.pipeline_mode<synchronous>, transform_indices = @transform_12, window_bounds = array<i64: 3, 32, 64>}, {pipeline_mode = #tpu.pipeline_mode<synchronous>, transform_indices = @transform_13, window_bounds = array<i64: 3, 64, 64>}, {pipeline_mode = #tpu.pipeline_mode<synchronous>, transform_indices = @transform_14, window_bounds = array<i64: 32, 64>}, {pipeline_mode = #tpu.pipeline_mode<synchronous>, transform_indices = @transform_15, window_bounds = array<i64: 1, 32>}, {pipeline_mode = #tpu.pipeline_mode<synchronous>, transform_indices = @transform_16, window_bounds = array<i64: 1, 32>}, {pipeline_mode = #tpu.pipeline_mode<synchronous>, transform_indices = @transform_17, window_bounds = array<i64: 1, 64>}, {pipeline_mode = #tpu.pipeline_mode<synchronous>, transform_indices = @transform_18, window_bounds = array<i64: 1, 64>}, {pipeline_mode = #tpu.pipeline_mode<synchronous>, transform_indices = @transform_19, window_bounds = array<i64: 1, 64>}, {pipeline_mode = #tpu.pipeline_mode<synchronous>, transform_indices = @transform_20, window_bounds = array<i64: 3, 64, 64>}, {pipeline_mode = #tpu.pipeline_mode<synchronous>, transform_indices = @transform_21, window_bounds = array<i64: 1, 64>}, {pipeline_mode = #tpu.pipeline_mode<synchronous>, transform_indices = @transform_22, window_bounds = array<i64: 1, 64>}, {pipeline_mode = #tpu.pipeline_mode<synchronous>, transform_indices = @transform_23, window_bounds = array<i64: 64, 1>}, {pipeline_mode = #tpu.pipeline_mode<synchronous>, transform_indices = @transform_24, window_bounds = array<i64: 1, 1>}, {transform_indices = @transform_25, window_bounds = array<i64: 1, 1, 1>}]} {
    %c0 = arith.constant 0 : index
    %c0_0 = arith.constant 0 : index
    %0 = vector.load %arg3[%c0, %c0_0] : memref<1x32xf32, #tpu.memory_space<vmem>>, vector<1x32xf32>
    %c0_1 = arith.constant 0 : index
    %c0_2 = arith.constant 0 : index
    %1 = vector.load %arg4[%c0_1, %c0_2] : memref<1x32xf32, #tpu.memory_space<vmem>>, vector<1x32xf32>
    %c0_3 = arith.constant 0 : index
    %c0_4 = arith.constant 0 : index
    %c0_5 = arith.constant 0 : index
    %2 = vector.load %arg1[%c0_3, %c0_4, %c0_5] : memref<1x100x128xf32, #tpu.memory_space<vmem>>, vector<1x99x32xf32>
    %3 = vector.shape_cast %2 : vector<1x99x32xf32> to vector<99x32xf32>
    %4 = arith.truncf %3 : vector<99x32xf32> to vector<99x32xbf16>
    %c0_6 = arith.constant 0 : index
    %c0_7 = arith.constant 0 : index
    %c0_8 = arith.constant 0 : index
    %5 = vector.load %arg2[%c0_6, %c0_7, %c0_8] : memref<5x32x32xbf16, #tpu.memory_space<vmem>>, vector<1x32x32xbf16>
    %6 = vector.shape_cast %5 : vector<1x32x32xbf16> to vector<32x32xbf16>
    %cst = arith.constant dense<0.000000e+00> : vector<99x32xf32>
    %7 = tpu.matmul %4, %6, %cst {dimension_numbers = #tpu.dot_dimension_numbers<[1], [0], [0], [1], [0, 0, 1, 1], [], []>} : vector<99x32xbf16>, vector<32x32xbf16>, vector<99x32xf32> -> vector<99x32xf32>
    %c0_9 = arith.constant 0 : index
    %c0_10 = arith.constant 0 : index
    %c32 = arith.constant 32 : index
    %8 = vector.load %arg1[%c0_9, %c0_10, %c32] : memref<1x100x128xf32, #tpu.memory_space<vmem>>, vector<1x99x32xf32>
    %9 = vector.shape_cast %8 : vector<1x99x32xf32> to vector<99x32xf32>
    %10 = arith.truncf %9 : vector<99x32xf32> to vector<99x32xbf16>
    %c1 = arith.constant 1 : index
    %c0_11 = arith.constant 0 : index
    %c0_12 = arith.constant 0 : index
    %11 = vector.load %arg2[%c1, %c0_11, %c0_12] : memref<5x32x32xbf16, #tpu.memory_space<vmem>>, vector<1x32x32xbf16>
    %12 = vector.shape_cast %11 : vector<1x32x32xbf16> to vector<32x32xbf16>
    %cst_13 = arith.constant dense<0.000000e+00> : vector<99x32xf32>
    %13 = tpu.matmul %10, %12, %cst_13 {dimension_numbers = #tpu.dot_dimension_numbers<[1], [0], [0], [1], [0, 0, 1, 1], [], []>} : vector<99x32xbf16>, vector<32x32xbf16>, vector<99x32xf32> -> vector<99x32xf32>
    %14 = arith.addf %7, %13 : vector<99x32xf32>
    %c0_14 = arith.constant 0 : index
    %c0_15 = arith.constant 0 : index
    %c64 = arith.constant 64 : index
    %15 = vector.load %arg1[%c0_14, %c0_15, %c64] : memref<1x100x128xf32, #tpu.memory_space<vmem>>, vector<1x99x32xf32>
    %16 = vector.shape_cast %15 : vector<1x99x32xf32> to vector<99x32xf32>
    %17 = arith.truncf %16 : vector<99x32xf32> to vector<99x32xbf16>
    %c2 = arith.constant 2 : index
    %c0_16 = arith.constant 0 : index
    %c0_17 = arith.constant 0 : index
    %18 = vector.load %arg2[%c2, %c0_16, %c0_17] : memref<5x32x32xbf16, #tpu.memory_space<vmem>>, vector<1x32x32xbf16>
    %19 = vector.shape_cast %18 : vector<1x32x32xbf16> to vector<32x32xbf16>
    %cst_18 = arith.constant dense<0.000000e+00> : vector<99x32xf32>
    %20 = tpu.matmul %17, %19, %cst_18 {dimension_numbers = #tpu.dot_dimension_numbers<[1], [0], [0], [1], [0, 0, 1, 1], [], []>} : vector<99x32xbf16>, vector<32x32xbf16>, vector<99x32xf32> -> vector<99x32xf32>
    %21 = arith.addf %14, %20 : vector<99x32xf32>
    %c0_19 = arith.constant 0 : index
    %c0_20 = arith.constant 0 : index
    %c96 = arith.constant 96 : index
    %22 = vector.load %arg1[%c0_19, %c0_20, %c96] : memref<1x100x128xf32, #tpu.memory_space<vmem>>, vector<1x99x32xf32>
    %23 = vector.shape_cast %22 : vector<1x99x32xf32> to vector<99x32xf32>
    %24 = arith.truncf %23 : vector<99x32xf32> to vector<99x32xbf16>
    %c3 = arith.constant 3 : index
    %c0_21 = arith.constant 0 : index
    %c0_22 = arith.constant 0 : index
    %25 = vector.load %arg2[%c3, %c0_21, %c0_22] : memref<5x32x32xbf16, #tpu.memory_space<vmem>>, vector<1x32x32xbf16>
    %26 = vector.shape_cast %25 : vector<1x32x32xbf16> to vector<32x32xbf16>
    %cst_23 = arith.constant dense<0.000000e+00> : vector<99x32xf32>
    %27 = tpu.matmul %24, %26, %cst_23 {dimension_numbers = #tpu.dot_dimension_numbers<[1], [0], [0], [1], [0, 0, 1, 1], [], []>} : vector<99x32xbf16>, vector<32x32xbf16>, vector<99x32xf32> -> vector<99x32xf32>
    %28 = arith.addf %21, %27 : vector<99x32xf32>
    %c0_24 = arith.constant 0 : index
    %c1_25 = arith.constant 1 : index
    %c0_26 = arith.constant 0 : index
    %29 = vector.load %arg1[%c0_24, %c1_25, %c0_26] : memref<1x100x128xf32, #tpu.memory_space<vmem>>, vector<1x99x32xf32>
    %30 = vector.shape_cast %29 : vector<1x99x32xf32> to vector<99x32xf32>
    %31 = arith.truncf %30 : vector<99x32xf32> to vector<99x32xbf16>
    %c4 = arith.constant 4 : index
    %c0_27 = arith.constant 0 : index
    %c0_28 = arith.constant 0 : index
    %32 = vector.load %arg2[%c4, %c0_27, %c0_28] : memref<5x32x32xbf16, #tpu.memory_space<vmem>>, vector<1x32x32xbf16>
    %33 = vector.shape_cast %32 : vector<1x32x32xbf16> to vector<32x32xbf16>
    %cst_29 = arith.constant dense<0.000000e+00> : vector<99x32xf32>
    %34 = tpu.matmul %31, %33, %cst_29 {dimension_numbers = #tpu.dot_dimension_numbers<[1], [0], [0], [1], [0, 0, 1, 1], [], []>} : vector<99x32xbf16>, vector<32x32xbf16>, vector<99x32xf32> -> vector<99x32xf32>
    %35 = arith.addf %28, %34 : vector<99x32xf32>
    %36 = vector.broadcast %0 : vector<1x32xf32> to vector<99x32xf32>
    %37 = arith.mulf %35, %36 : vector<99x32xf32>
    %38 = vector.broadcast %1 : vector<1x32xf32> to vector<99x32xf32>
    %39 = arith.addf %37, %38 : vector<99x32xf32>
    %cst_30 = arith.constant 0.000000e+00 : f32
    %40 = vector.broadcast %cst_30 : f32 to vector<99x32xf32>
    %41 = arith.maximumf %39, %40 : vector<99x32xf32>
    %c0_31 = arith.constant 0 : index
    %c0_32 = arith.constant 0 : index
    %c32_33 = arith.constant 32 : index
    %42 = vector.load %arg1[%c0_31, %c0_32, %c32_33] : memref<1x100x128xf32, #tpu.memory_space<vmem>>, vector<1x99x32xf32>
    %43 = vector.shape_cast %42 : vector<1x99x32xf32> to vector<99x32xf32>
    %44 = arith.truncf %43 : vector<99x32xf32> to vector<99x32xbf16>
    %c0_34 = arith.constant 0 : index
    %c0_35 = arith.constant 0 : index
    %c0_36 = arith.constant 0 : index
    %45 = vector.load %arg2[%c0_34, %c0_35, %c0_36] : memref<5x32x32xbf16, #tpu.memory_space<vmem>>, vector<1x32x32xbf16>
    %46 = vector.shape_cast %45 : vector<1x32x32xbf16> to vector<32x32xbf16>
    %cst_37 = arith.constant dense<0.000000e+00> : vector<99x32xf32>
    %47 = tpu.matmul %44, %46, %cst_37 {dimension_numbers = #tpu.dot_dimension_numbers<[1], [0], [0], [1], [0, 0, 1, 1], [], []>} : vector<99x32xbf16>, vector<32x32xbf16>, vector<99x32xf32> -> vector<99x32xf32>
    %c0_38 = arith.constant 0 : index
    %c0_39 = arith.constant 0 : index
    %c64_40 = arith.constant 64 : index
    %48 = vector.load %arg1[%c0_38, %c0_39, %c64_40] : memref<1x100x128xf32, #tpu.memory_space<vmem>>, vector<1x99x32xf32>
    %49 = vector.shape_cast %48 : vector<1x99x32xf32> to vector<99x32xf32>
    %50 = arith.truncf %49 : vector<99x32xf32> to vector<99x32xbf16>
    %c1_41 = arith.constant 1 : index
    %c0_42 = arith.constant 0 : index
    %c0_43 = arith.constant 0 : index
    %51 = vector.load %arg2[%c1_41, %c0_42, %c0_43] : memref<5x32x32xbf16, #tpu.memory_space<vmem>>, vector<1x32x32xbf16>
    %52 = vector.shape_cast %51 : vector<1x32x32xbf16> to vector<32x32xbf16>
    %cst_44 = arith.constant dense<0.000000e+00> : vector<99x32xf32>
    %53 = tpu.matmul %50, %52, %cst_44 {dimension_numbers = #tpu.dot_dimension_numbers<[1], [0], [0], [1], [0, 0, 1, 1], [], []>} : vector<99x32xbf16>, vector<32x32xbf16>, vector<99x32xf32> -> vector<99x32xf32>
    %54 = arith.addf %47, %53 : vector<99x32xf32>
    %c0_45 = arith.constant 0 : index
    %c0_46 = arith.constant 0 : index
    %c96_47 = arith.constant 96 : index
    %55 = vector.load %arg1[%c0_45, %c0_46, %c96_47] : memref<1x100x128xf32, #tpu.memory_space<vmem>>, vector<1x99x32xf32>
    %56 = vector.shape_cast %55 : vector<1x99x32xf32> to vector<99x32xf32>
    %57 = arith.truncf %56 : vector<99x32xf32> to vector<99x32xbf16>
    %c2_48 = arith.constant 2 : index
    %c0_49 = arith.constant 0 : index
    %c0_50 = arith.constant 0 : index
    %58 = vector.load %arg2[%c2_48, %c0_49, %c0_50] : memref<5x32x32xbf16, #tpu.memory_space<vmem>>, vector<1x32x32xbf16>
    %59 = vector.shape_cast %58 : vector<1x32x32xbf16> to vector<32x32xbf16>
    %cst_51 = arith.constant dense<0.000000e+00> : vector<99x32xf32>
    %60 = tpu.matmul %57, %59, %cst_51 {dimension_numbers = #tpu.dot_dimension_numbers<[1], [0], [0], [1], [0, 0, 1, 1], [], []>} : vector<99x32xbf16>, vector<32x32xbf16>, vector<99x32xf32> -> vector<99x32xf32>
    %61 = arith.addf %54, %60 : vector<99x32xf32>
    %c0_52 = arith.constant 0 : index
    %c1_53 = arith.constant 1 : index
    %c0_54 = arith.constant 0 : index
    %62 = vector.load %arg1[%c0_52, %c1_53, %c0_54] : memref<1x100x128xf32, #tpu.memory_space<vmem>>, vector<1x99x32xf32>
    %63 = vector.shape_cast %62 : vector<1x99x32xf32> to vector<99x32xf32>
    %64 = arith.truncf %63 : vector<99x32xf32> to vector<99x32xbf16>
    %c3_55 = arith.constant 3 : index
    %c0_56 = arith.constant 0 : index
    %c0_57 = arith.constant 0 : index
    %65 = vector.load %arg2[%c3_55, %c0_56, %c0_57] : memref<5x32x32xbf16, #tpu.memory_space<vmem>>, vector<1x32x32xbf16>
    %66 = vector.shape_cast %65 : vector<1x32x32xbf16> to vector<32x32xbf16>
    %cst_58 = arith.constant dense<0.000000e+00> : vector<99x32xf32>
    %67 = tpu.matmul %64, %66, %cst_58 {dimension_numbers = #tpu.dot_dimension_numbers<[1], [0], [0], [1], [0, 0, 1, 1], [], []>} : vector<99x32xbf16>, vector<32x32xbf16>, vector<99x32xf32> -> vector<99x32xf32>
    %68 = arith.addf %61, %67 : vector<99x32xf32>
    %c0_59 = arith.constant 0 : index
    %c1_60 = arith.constant 1 : index
    %c32_61 = arith.constant 32 : index
    %69 = vector.load %arg1[%c0_59, %c1_60, %c32_61] : memref<1x100x128xf32, #tpu.memory_space<vmem>>, vector<1x99x32xf32>
    %70 = vector.shape_cast %69 : vector<1x99x32xf32> to vector<99x32xf32>
    %71 = arith.truncf %70 : vector<99x32xf32> to vector<99x32xbf16>
    %c4_62 = arith.constant 4 : index
    %c0_63 = arith.constant 0 : index
    %c0_64 = arith.constant 0 : index
    %72 = vector.load %arg2[%c4_62, %c0_63, %c0_64] : memref<5x32x32xbf16, #tpu.memory_space<vmem>>, vector<1x32x32xbf16>
    %73 = vector.shape_cast %72 : vector<1x32x32xbf16> to vector<32x32xbf16>
    %cst_65 = arith.constant dense<0.000000e+00> : vector<99x32xf32>
    %74 = tpu.matmul %71, %73, %cst_65 {dimension_numbers = #tpu.dot_dimension_numbers<[1], [0], [0], [1], [0, 0, 1, 1], [], []>} : vector<99x32xbf16>, vector<32x32xbf16>, vector<99x32xf32> -> vector<99x32xf32>
    %75 = arith.addf %68, %74 : vector<99x32xf32>
    %76 = vector.broadcast %0 : vector<1x32xf32> to vector<99x32xf32>
    %77 = arith.mulf %75, %76 : vector<99x32xf32>
    %78 = vector.broadcast %1 : vector<1x32xf32> to vector<99x32xf32>
    %79 = arith.addf %77, %78 : vector<99x32xf32>
    %cst_66 = arith.constant 0.000000e+00 : f32
    %80 = vector.broadcast %cst_66 : f32 to vector<99x32xf32>
    %81 = arith.maximumf %79, %80 : vector<99x32xf32>
    %82 = arith.maximumf %41, %81 : vector<99x32xf32>
    %c0_67 = arith.constant 0 : index
    %c0_68 = arith.constant 0 : index
    %c64_69 = arith.constant 64 : index
    %83 = vector.load %arg1[%c0_67, %c0_68, %c64_69] : memref<1x100x128xf32, #tpu.memory_space<vmem>>, vector<1x99x32xf32>
    %84 = vector.shape_cast %83 : vector<1x99x32xf32> to vector<99x32xf32>
    %85 = arith.truncf %84 : vector<99x32xf32> to vector<99x32xbf16>
    %c0_70 = arith.constant 0 : index
    %c0_71 = arith.constant 0 : index
    %c0_72 = arith.constant 0 : index
    %86 = vector.load %arg2[%c0_70, %c0_71, %c0_72] : memref<5x32x32xbf16, #tpu.memory_space<vmem>>, vector<1x32x32xbf16>
    %87 = vector.shape_cast %86 : vector<1x32x32xbf16> to vector<32x32xbf16>
    %cst_73 = arith.constant dense<0.000000e+00> : vector<99x32xf32>
    %88 = tpu.matmul %85, %87, %cst_73 {dimension_numbers = #tpu.dot_dimension_numbers<[1], [0], [0], [1], [0, 0, 1, 1], [], []>} : vector<99x32xbf16>, vector<32x32xbf16>, vector<99x32xf32> -> vector<99x32xf32>
    %c0_74 = arith.constant 0 : index
    %c0_75 = arith.constant 0 : index
    %c96_76 = arith.constant 96 : index
    %89 = vector.load %arg1[%c0_74, %c0_75, %c96_76] : memref<1x100x128xf32, #tpu.memory_space<vmem>>, vector<1x99x32xf32>
    %90 = vector.shape_cast %89 : vector<1x99x32xf32> to vector<99x32xf32>
    %91 = arith.truncf %90 : vector<99x32xf32> to vector<99x32xbf16>
    %c1_77 = arith.constant 1 : index
    %c0_78 = arith.constant 0 : index
    %c0_79 = arith.constant 0 : index
    %92 = vector.load %arg2[%c1_77, %c0_78, %c0_79] : memref<5x32x32xbf16, #tpu.memory_space<vmem>>, vector<1x32x32xbf16>
    %93 = vector.shape_cast %92 : vector<1x32x32xbf16> to vector<32x32xbf16>
    %cst_80 = arith.constant dense<0.000000e+00> : vector<99x32xf32>
    %94 = tpu.matmul %91, %93, %cst_80 {dimension_numbers = #tpu.dot_dimension_numbers<[1], [0], [0], [1], [0, 0, 1, 1], [], []>} : vector<99x32xbf16>, vector<32x32xbf16>, vector<99x32xf32> -> vector<99x32xf32>
    %95 = arith.addf %88, %94 : vector<99x32xf32>
    %c0_81 = arith.constant 0 : index
    %c1_82 = arith.constant 1 : index
    %c0_83 = arith.constant 0 : index
    %96 = vector.load %arg1[%c0_81, %c1_82, %c0_83] : memref<1x100x128xf32, #tpu.memory_space<vmem>>, vector<1x99x32xf32>
    %97 = vector.shape_cast %96 : vector<1x99x32xf32> to vector<99x32xf32>
    %98 = arith.truncf %97 : vector<99x32xf32> to vector<99x32xbf16>
    %c2_84 = arith.constant 2 : index
    %c0_85 = arith.constant 0 : index
    %c0_86 = arith.constant 0 : index
    %99 = vector.load %arg2[%c2_84, %c0_85, %c0_86] : memref<5x32x32xbf16, #tpu.memory_space<vmem>>, vector<1x32x32xbf16>
    %100 = vector.shape_cast %99 : vector<1x32x32xbf16> to vector<32x32xbf16>
    %cst_87 = arith.constant dense<0.000000e+00> : vector<99x32xf32>
    %101 = tpu.matmul %98, %100, %cst_87 {dimension_numbers = #tpu.dot_dimension_numbers<[1], [0], [0], [1], [0, 0, 1, 1], [], []>} : vector<99x32xbf16>, vector<32x32xbf16>, vector<99x32xf32> -> vector<99x32xf32>
    %102 = arith.addf %95, %101 : vector<99x32xf32>
    %c0_88 = arith.constant 0 : index
    %c1_89 = arith.constant 1 : index
    %c32_90 = arith.constant 32 : index
    %103 = vector.load %arg1[%c0_88, %c1_89, %c32_90] : memref<1x100x128xf32, #tpu.memory_space<vmem>>, vector<1x99x32xf32>
    %104 = vector.shape_cast %103 : vector<1x99x32xf32> to vector<99x32xf32>
    %105 = arith.truncf %104 : vector<99x32xf32> to vector<99x32xbf16>
    %c3_91 = arith.constant 3 : index
    %c0_92 = arith.constant 0 : index
    %c0_93 = arith.constant 0 : index
    %106 = vector.load %arg2[%c3_91, %c0_92, %c0_93] : memref<5x32x32xbf16, #tpu.memory_space<vmem>>, vector<1x32x32xbf16>
    %107 = vector.shape_cast %106 : vector<1x32x32xbf16> to vector<32x32xbf16>
    %cst_94 = arith.constant dense<0.000000e+00> : vector<99x32xf32>
    %108 = tpu.matmul %105, %107, %cst_94 {dimension_numbers = #tpu.dot_dimension_numbers<[1], [0], [0], [1], [0, 0, 1, 1], [], []>} : vector<99x32xbf16>, vector<32x32xbf16>, vector<99x32xf32> -> vector<99x32xf32>
    %109 = arith.addf %102, %108 : vector<99x32xf32>
    %c0_95 = arith.constant 0 : index
    %c1_96 = arith.constant 1 : index
    %c64_97 = arith.constant 64 : index
    %110 = vector.load %arg1[%c0_95, %c1_96, %c64_97] : memref<1x100x128xf32, #tpu.memory_space<vmem>>, vector<1x99x32xf32>
    %111 = vector.shape_cast %110 : vector<1x99x32xf32> to vector<99x32xf32>
    %112 = arith.truncf %111 : vector<99x32xf32> to vector<99x32xbf16>
    %c4_98 = arith.constant 4 : index
    %c0_99 = arith.constant 0 : index
    %c0_100 = arith.constant 0 : index
    %113 = vector.load %arg2[%c4_98, %c0_99, %c0_100] : memref<5x32x32xbf16, #tpu.memory_space<vmem>>, vector<1x32x32xbf16>
    %114 = vector.shape_cast %113 : vector<1x32x32xbf16> to vector<32x32xbf16>
    %cst_101 = arith.constant dense<0.000000e+00> : vector<99x32xf32>
    %115 = tpu.matmul %112, %114, %cst_101 {dimension_numbers = #tpu.dot_dimension_numbers<[1], [0], [0], [1], [0, 0, 1, 1], [], []>} : vector<99x32xbf16>, vector<32x32xbf16>, vector<99x32xf32> -> vector<99x32xf32>
    %116 = arith.addf %109, %115 : vector<99x32xf32>
    %117 = vector.broadcast %0 : vector<1x32xf32> to vector<99x32xf32>
    %118 = arith.mulf %116, %117 : vector<99x32xf32>
    %119 = vector.broadcast %1 : vector<1x32xf32> to vector<99x32xf32>
    %120 = arith.addf %118, %119 : vector<99x32xf32>
    %cst_102 = arith.constant 0.000000e+00 : f32
    %121 = vector.broadcast %cst_102 : f32 to vector<99x32xf32>
    %122 = arith.maximumf %120, %121 : vector<99x32xf32>
    %123 = arith.maximumf %82, %122 : vector<99x32xf32>
    %c0_103 = arith.constant 0 : index
    %c0_104 = arith.constant 0 : index
    %c96_105 = arith.constant 96 : index
    %124 = vector.load %arg1[%c0_103, %c0_104, %c96_105] : memref<1x100x128xf32, #tpu.memory_space<vmem>>, vector<1x99x32xf32>
    %125 = vector.shape_cast %124 : vector<1x99x32xf32> to vector<99x32xf32>
    %126 = arith.truncf %125 : vector<99x32xf32> to vector<99x32xbf16>
    %c0_106 = arith.constant 0 : index
    %c0_107 = arith.constant 0 : index
    %c0_108 = arith.constant 0 : index
    %127 = vector.load %arg2[%c0_106, %c0_107, %c0_108] : memref<5x32x32xbf16, #tpu.memory_space<vmem>>, vector<1x32x32xbf16>
    %128 = vector.shape_cast %127 : vector<1x32x32xbf16> to vector<32x32xbf16>
    %cst_109 = arith.constant dense<0.000000e+00> : vector<99x32xf32>
    %129 = tpu.matmul %126, %128, %cst_109 {dimension_numbers = #tpu.dot_dimension_numbers<[1], [0], [0], [1], [0, 0, 1, 1], [], []>} : vector<99x32xbf16>, vector<32x32xbf16>, vector<99x32xf32> -> vector<99x32xf32>
    %c0_110 = arith.constant 0 : index
    %c1_111 = arith.constant 1 : index
    %c0_112 = arith.constant 0 : index
    %130 = vector.load %arg1[%c0_110, %c1_111, %c0_112] : memref<1x100x128xf32, #tpu.memory_space<vmem>>, vector<1x99x32xf32>
    %131 = vector.shape_cast %130 : vector<1x99x32xf32> to vector<99x32xf32>
    %132 = arith.truncf %131 : vector<99x32xf32> to vector<99x32xbf16>
    %c1_113 = arith.constant 1 : index
    %c0_114 = arith.constant 0 : index
    %c0_115 = arith.constant 0 : index
    %133 = vector.load %arg2[%c1_113, %c0_114, %c0_115] : memref<5x32x32xbf16, #tpu.memory_space<vmem>>, vector<1x32x32xbf16>
    %134 = vector.shape_cast %133 : vector<1x32x32xbf16> to vector<32x32xbf16>
    %cst_116 = arith.constant dense<0.000000e+00> : vector<99x32xf32>
    %135 = tpu.matmul %132, %134, %cst_116 {dimension_numbers = #tpu.dot_dimension_numbers<[1], [0], [0], [1], [0, 0, 1, 1], [], []>} : vector<99x32xbf16>, vector<32x32xbf16>, vector<99x32xf32> -> vector<99x32xf32>
    %136 = arith.addf %129, %135 : vector<99x32xf32>
    %c0_117 = arith.constant 0 : index
    %c1_118 = arith.constant 1 : index
    %c32_119 = arith.constant 32 : index
    %137 = vector.load %arg1[%c0_117, %c1_118, %c32_119] : memref<1x100x128xf32, #tpu.memory_space<vmem>>, vector<1x99x32xf32>
    %138 = vector.shape_cast %137 : vector<1x99x32xf32> to vector<99x32xf32>
    %139 = arith.truncf %138 : vector<99x32xf32> to vector<99x32xbf16>
    %c2_120 = arith.constant 2 : index
    %c0_121 = arith.constant 0 : index
    %c0_122 = arith.constant 0 : index
    %140 = vector.load %arg2[%c2_120, %c0_121, %c0_122] : memref<5x32x32xbf16, #tpu.memory_space<vmem>>, vector<1x32x32xbf16>
    %141 = vector.shape_cast %140 : vector<1x32x32xbf16> to vector<32x32xbf16>
    %cst_123 = arith.constant dense<0.000000e+00> : vector<99x32xf32>
    %142 = tpu.matmul %139, %141, %cst_123 {dimension_numbers = #tpu.dot_dimension_numbers<[1], [0], [0], [1], [0, 0, 1, 1], [], []>} : vector<99x32xbf16>, vector<32x32xbf16>, vector<99x32xf32> -> vector<99x32xf32>
    %143 = arith.addf %136, %142 : vector<99x32xf32>
    %c0_124 = arith.constant 0 : index
    %c1_125 = arith.constant 1 : index
    %c64_126 = arith.constant 64 : index
    %144 = vector.load %arg1[%c0_124, %c1_125, %c64_126] : memref<1x100x128xf32, #tpu.memory_space<vmem>>, vector<1x99x32xf32>
    %145 = vector.shape_cast %144 : vector<1x99x32xf32> to vector<99x32xf32>
    %146 = arith.truncf %145 : vector<99x32xf32> to vector<99x32xbf16>
    %c3_127 = arith.constant 3 : index
    %c0_128 = arith.constant 0 : index
    %c0_129 = arith.constant 0 : index
    %147 = vector.load %arg2[%c3_127, %c0_128, %c0_129] : memref<5x32x32xbf16, #tpu.memory_space<vmem>>, vector<1x32x32xbf16>
    %148 = vector.shape_cast %147 : vector<1x32x32xbf16> to vector<32x32xbf16>
    %cst_130 = arith.constant dense<0.000000e+00> : vector<99x32xf32>
    %149 = tpu.matmul %146, %148, %cst_130 {dimension_numbers = #tpu.dot_dimension_numbers<[1], [0], [0], [1], [0, 0, 1, 1], [], []>} : vector<99x32xbf16>, vector<32x32xbf16>, vector<99x32xf32> -> vector<99x32xf32>
    %150 = arith.addf %143, %149 : vector<99x32xf32>
    %c0_131 = arith.constant 0 : index
    %c1_132 = arith.constant 1 : index
    %c96_133 = arith.constant 96 : index
    %151 = vector.load %arg1[%c0_131, %c1_132, %c96_133] : memref<1x100x128xf32, #tpu.memory_space<vmem>>, vector<1x99x32xf32>
    %152 = vector.shape_cast %151 : vector<1x99x32xf32> to vector<99x32xf32>
    %153 = arith.truncf %152 : vector<99x32xf32> to vector<99x32xbf16>
    %c4_134 = arith.constant 4 : index
    %c0_135 = arith.constant 0 : index
    %c0_136 = arith.constant 0 : index
    %154 = vector.load %arg2[%c4_134, %c0_135, %c0_136] : memref<5x32x32xbf16, #tpu.memory_space<vmem>>, vector<1x32x32xbf16>
    %155 = vector.shape_cast %154 : vector<1x32x32xbf16> to vector<32x32xbf16>
    %cst_137 = arith.constant dense<0.000000e+00> : vector<99x32xf32>
    %156 = tpu.matmul %153, %155, %cst_137 {dimension_numbers = #tpu.dot_dimension_numbers<[1], [0], [0], [1], [0, 0, 1, 1], [], []>} : vector<99x32xbf16>, vector<32x32xbf16>, vector<99x32xf32> -> vector<99x32xf32>
    %157 = arith.addf %150, %156 : vector<99x32xf32>
    %158 = vector.broadcast %0 : vector<1x32xf32> to vector<99x32xf32>
    %159 = arith.mulf %157, %158 : vector<99x32xf32>
    %160 = vector.broadcast %1 : vector<1x32xf32> to vector<99x32xf32>
    %161 = arith.addf %159, %160 : vector<99x32xf32>
    %cst_138 = arith.constant 0.000000e+00 : f32
    %162 = vector.broadcast %cst_138 : f32 to vector<99x32xf32>
    %163 = arith.maximumf %161, %162 : vector<99x32xf32>
    %164 = arith.maximumf %123, %163 : vector<99x32xf32>
    %c0_139 = arith.constant 0 : index
    %c0_140 = arith.constant 0 : index
    %165 = vector.load %arg8[%c0_139, %c0_140] : memref<1x32xf32, #tpu.memory_space<vmem>>, vector<1x32xf32>
    %c0_141 = arith.constant 0 : index
    %c0_142 = arith.constant 0 : index
    %166 = vector.load %arg9[%c0_141, %c0_142] : memref<1x32xf32, #tpu.memory_space<vmem>>, vector<1x32xf32>
    %c0_143 = arith.constant 0 : index
    %c0_144 = arith.constant 0 : index
    %167 = vector.load %arg10[%c0_143, %c0_144] : memref<1x32xf32, #tpu.memory_space<vmem>>, vector<1x32xf32>
    %c0_145 = arith.constant 0 : index
    %c0_146 = arith.constant 0 : index
    %168 = vector.load %arg11[%c0_145, %c0_146] : memref<1x32xf32, #tpu.memory_space<vmem>>, vector<1x32xf32>
    %c0_147 = arith.constant 0 : index
    %c0_148 = arith.constant 0 : index
    %169 = vector.load %arg12[%c0_147, %c0_148] : memref<1x32xf32, #tpu.memory_space<vmem>>, vector<1x32xf32>
    %170 = vector.broadcast %165 : vector<1x32xf32> to vector<99x32xf32>
    %171 = arith.mulf %164, %170 : vector<99x32xf32>
    %172 = vector.broadcast %166 : vector<1x32xf32> to vector<99x32xf32>
    %173 = arith.addf %171, %172 : vector<99x32xf32>
    %cst_149 = arith.constant 0.000000e+00 : f32
    %174 = vector.broadcast %cst_149 : f32 to vector<99x32xf32>
    %175 = arith.maximumf %173, %174 : vector<99x32xf32>
    %176 = arith.truncf %175 : vector<99x32xf32> to vector<99x32xbf16>
    %cst_150 = arith.constant 0.000000e+00 : bf16
    %177 = vector.broadcast %cst_150 : bf16 to vector<1x32xbf16>
    %178 = vector.extract_strided_slice %176 {offsets = [0, 0], sizes = [98, 32], strides = [1, 1]} : vector<99x32xbf16> to vector<98x32xbf16>
    %179 = tpu.concatenate %177, %178 in 0 : vector<1x32xbf16>, vector<98x32xbf16> -> vector<99x32xbf16>
    %c0_151 = arith.constant 0 : index
    %c0_152 = arith.constant 0 : index
    %c0_153 = arith.constant 0 : index
    %180 = vector.load %arg5[%c0_151, %c0_152, %c0_153] : memref<3x32x32xbf16, #tpu.memory_space<vmem>>, vector<1x32x32xbf16>
    %181 = vector.shape_cast %180 : vector<1x32x32xbf16> to vector<32x32xbf16>
    %cst_154 = arith.constant dense<0.000000e+00> : vector<99x32xf32>
    %182 = tpu.matmul %179, %181, %cst_154 {dimension_numbers = #tpu.dot_dimension_numbers<[1], [0], [0], [1], [0, 0, 1, 1], [], []>} : vector<99x32xbf16>, vector<32x32xbf16>, vector<99x32xf32> -> vector<99x32xf32>
    %c1_155 = arith.constant 1 : index
    %c0_156 = arith.constant 0 : index
    %c0_157 = arith.constant 0 : index
    %183 = vector.load %arg5[%c1_155, %c0_156, %c0_157] : memref<3x32x32xbf16, #tpu.memory_space<vmem>>, vector<1x32x32xbf16>
    %184 = vector.shape_cast %183 : vector<1x32x32xbf16> to vector<32x32xbf16>
    %cst_158 = arith.constant dense<0.000000e+00> : vector<99x32xf32>
    %185 = tpu.matmul %176, %184, %cst_158 {dimension_numbers = #tpu.dot_dimension_numbers<[1], [0], [0], [1], [0, 0, 1, 1], [], []>} : vector<99x32xbf16>, vector<32x32xbf16>, vector<99x32xf32> -> vector<99x32xf32>
    %186 = arith.addf %182, %185 : vector<99x32xf32>
    %187 = vector.extract_strided_slice %176 {offsets = [1, 0], sizes = [98, 32], strides = [1, 1]} : vector<99x32xbf16> to vector<98x32xbf16>
    %188 = tpu.concatenate %187, %177 in 0 : vector<98x32xbf16>, vector<1x32xbf16> -> vector<99x32xbf16>
    %c2_159 = arith.constant 2 : index
    %c0_160 = arith.constant 0 : index
    %c0_161 = arith.constant 0 : index
    %189 = vector.load %arg5[%c2_159, %c0_160, %c0_161] : memref<3x32x32xbf16, #tpu.memory_space<vmem>>, vector<1x32x32xbf16>
    %190 = vector.shape_cast %189 : vector<1x32x32xbf16> to vector<32x32xbf16>
    %cst_162 = arith.constant dense<0.000000e+00> : vector<99x32xf32>
    %191 = tpu.matmul %188, %190, %cst_162 {dimension_numbers = #tpu.dot_dimension_numbers<[1], [0], [0], [1], [0, 0, 1, 1], [], []>} : vector<99x32xbf16>, vector<32x32xbf16>, vector<99x32xf32> -> vector<99x32xf32>
    %192 = arith.addf %186, %191 : vector<99x32xf32>
    %193 = vector.broadcast %167 : vector<1x32xf32> to vector<99x32xf32>
    %194 = arith.mulf %192, %193 : vector<99x32xf32>
    %195 = vector.broadcast %168 : vector<1x32xf32> to vector<99x32xf32>
    %196 = arith.addf %194, %195 : vector<99x32xf32>
    %cst_163 = arith.constant 0.000000e+00 : f32
    %197 = vector.broadcast %cst_163 : f32 to vector<99x32xf32>
    %198 = arith.maximumf %196, %197 : vector<99x32xf32>
    %199 = arith.truncf %198 : vector<99x32xf32> to vector<99x32xbf16>
    %cst_164 = arith.constant 0.000000e+00 : bf16
    %200 = vector.broadcast %cst_164 : bf16 to vector<1x32xbf16>
    %201 = vector.extract_strided_slice %199 {offsets = [0, 0], sizes = [98, 32], strides = [1, 1]} : vector<99x32xbf16> to vector<98x32xbf16>
    %202 = tpu.concatenate %200, %201 in 0 : vector<1x32xbf16>, vector<98x32xbf16> -> vector<99x32xbf16>
    %c0_165 = arith.constant 0 : index
    %c0_166 = arith.constant 0 : index
    %c0_167 = arith.constant 0 : index
    %203 = vector.load %arg6[%c0_165, %c0_166, %c0_167] : memref<3x32x32xbf16, #tpu.memory_space<vmem>>, vector<1x32x32xbf16>
    %204 = vector.shape_cast %203 : vector<1x32x32xbf16> to vector<32x32xbf16>
    %cst_168 = arith.constant dense<0.000000e+00> : vector<99x32xf32>
    %205 = tpu.matmul %202, %204, %cst_168 {dimension_numbers = #tpu.dot_dimension_numbers<[1], [0], [0], [1], [0, 0, 1, 1], [], []>} : vector<99x32xbf16>, vector<32x32xbf16>, vector<99x32xf32> -> vector<99x32xf32>
    %c1_169 = arith.constant 1 : index
    %c0_170 = arith.constant 0 : index
    %c0_171 = arith.constant 0 : index
    %206 = vector.load %arg6[%c1_169, %c0_170, %c0_171] : memref<3x32x32xbf16, #tpu.memory_space<vmem>>, vector<1x32x32xbf16>
    %207 = vector.shape_cast %206 : vector<1x32x32xbf16> to vector<32x32xbf16>
    %cst_172 = arith.constant dense<0.000000e+00> : vector<99x32xf32>
    %208 = tpu.matmul %199, %207, %cst_172 {dimension_numbers = #tpu.dot_dimension_numbers<[1], [0], [0], [1], [0, 0, 1, 1], [], []>} : vector<99x32xbf16>, vector<32x32xbf16>, vector<99x32xf32> -> vector<99x32xf32>
    %209 = arith.addf %205, %208 : vector<99x32xf32>
    %210 = vector.extract_strided_slice %199 {offsets = [1, 0], sizes = [98, 32], strides = [1, 1]} : vector<99x32xbf16> to vector<98x32xbf16>
    %211 = tpu.concatenate %210, %200 in 0 : vector<98x32xbf16>, vector<1x32xbf16> -> vector<99x32xbf16>
    %c2_173 = arith.constant 2 : index
    %c0_174 = arith.constant 0 : index
    %c0_175 = arith.constant 0 : index
    %212 = vector.load %arg6[%c2_173, %c0_174, %c0_175] : memref<3x32x32xbf16, #tpu.memory_space<vmem>>, vector<1x32x32xbf16>
    %213 = vector.shape_cast %212 : vector<1x32x32xbf16> to vector<32x32xbf16>
    %cst_176 = arith.constant dense<0.000000e+00> : vector<99x32xf32>
    %214 = tpu.matmul %211, %213, %cst_176 {dimension_numbers = #tpu.dot_dimension_numbers<[1], [0], [0], [1], [0, 0, 1, 1], [], []>} : vector<99x32xbf16>, vector<32x32xbf16>, vector<99x32xf32> -> vector<99x32xf32>
    %215 = arith.addf %209, %214 : vector<99x32xf32>
    %c0_177 = arith.constant 0 : index
    %c0_178 = arith.constant 0 : index
    %216 = vector.load %arg7[%c0_177, %c0_178] : memref<32x32xbf16, #tpu.memory_space<vmem>>, vector<32x32xbf16>
    %cst_179 = arith.constant dense<0.000000e+00> : vector<99x32xf32>
    %217 = tpu.matmul %176, %216, %cst_179 {dimension_numbers = #tpu.dot_dimension_numbers<[1], [0], [0], [1], [0, 0, 1, 1], [], []>} : vector<99x32xbf16>, vector<32x32xbf16>, vector<99x32xf32> -> vector<99x32xf32>
    %218 = arith.addf %215, %217 : vector<99x32xf32>
    %219 = vector.broadcast %169 : vector<1x32xf32> to vector<99x32xf32>
    %220 = arith.addf %218, %219 : vector<99x32xf32>
    %cst_180 = arith.constant 0.000000e+00 : f32
    %221 = vector.broadcast %cst_180 : f32 to vector<99x32xf32>
    %222 = arith.maximumf %220, %221 : vector<99x32xf32>
    %223 = vector.extract_strided_slice %222 {offsets = [0, 0], sizes = [4, 32], strides = [1, 1]} : vector<99x32xf32> to vector<4x32xf32>
    %cst_181 = arith.constant dense<0xFF800000> : vector<32xf32>
    %224 = vector.multi_reduction <maximumf>, %223, %cst_181 [0] : vector<4x32xf32> to vector<32xf32>
    %225 = vector.shape_cast %224 : vector<32xf32> to vector<1x32xf32>
    %226 = vector.extract_strided_slice %222 {offsets = [4, 0], sizes = [4, 32], strides = [1, 1]} : vector<99x32xf32> to vector<4x32xf32>
    %cst_182 = arith.constant dense<0xFF800000> : vector<32xf32>
    %227 = vector.multi_reduction <maximumf>, %226, %cst_182 [0] : vector<4x32xf32> to vector<32xf32>
    %228 = vector.shape_cast %227 : vector<32xf32> to vector<1x32xf32>
    %229 = vector.extract_strided_slice %222 {offsets = [8, 0], sizes = [4, 32], strides = [1, 1]} : vector<99x32xf32> to vector<4x32xf32>
    %cst_183 = arith.constant dense<0xFF800000> : vector<32xf32>
    %230 = vector.multi_reduction <maximumf>, %229, %cst_183 [0] : vector<4x32xf32> to vector<32xf32>
    %231 = vector.shape_cast %230 : vector<32xf32> to vector<1x32xf32>
    %232 = vector.extract_strided_slice %222 {offsets = [12, 0], sizes = [4, 32], strides = [1, 1]} : vector<99x32xf32> to vector<4x32xf32>
    %cst_184 = arith.constant dense<0xFF800000> : vector<32xf32>
    %233 = vector.multi_reduction <maximumf>, %232, %cst_184 [0] : vector<4x32xf32> to vector<32xf32>
    %234 = vector.shape_cast %233 : vector<32xf32> to vector<1x32xf32>
    %235 = vector.extract_strided_slice %222 {offsets = [16, 0], sizes = [4, 32], strides = [1, 1]} : vector<99x32xf32> to vector<4x32xf32>
    %cst_185 = arith.constant dense<0xFF800000> : vector<32xf32>
    %236 = vector.multi_reduction <maximumf>, %235, %cst_185 [0] : vector<4x32xf32> to vector<32xf32>
    %237 = vector.shape_cast %236 : vector<32xf32> to vector<1x32xf32>
    %238 = vector.extract_strided_slice %222 {offsets = [20, 0], sizes = [4, 32], strides = [1, 1]} : vector<99x32xf32> to vector<4x32xf32>
    %cst_186 = arith.constant dense<0xFF800000> : vector<32xf32>
    %239 = vector.multi_reduction <maximumf>, %238, %cst_186 [0] : vector<4x32xf32> to vector<32xf32>
    %240 = vector.shape_cast %239 : vector<32xf32> to vector<1x32xf32>
    %241 = vector.extract_strided_slice %222 {offsets = [24, 0], sizes = [4, 32], strides = [1, 1]} : vector<99x32xf32> to vector<4x32xf32>
    %cst_187 = arith.constant dense<0xFF800000> : vector<32xf32>
    %242 = vector.multi_reduction <maximumf>, %241, %cst_187 [0] : vector<4x32xf32> to vector<32xf32>
    %243 = vector.shape_cast %242 : vector<32xf32> to vector<1x32xf32>
    %244 = vector.extract_strided_slice %222 {offsets = [28, 0], sizes = [4, 32], strides = [1, 1]} : vector<99x32xf32> to vector<4x32xf32>
    %cst_188 = arith.constant dense<0xFF800000> : vector<32xf32>
    %245 = vector.multi_reduction <maximumf>, %244, %cst_188 [0] : vector<4x32xf32> to vector<32xf32>
    %246 = vector.shape_cast %245 : vector<32xf32> to vector<1x32xf32>
    %247 = vector.extract_strided_slice %222 {offsets = [32, 0], sizes = [4, 32], strides = [1, 1]} : vector<99x32xf32> to vector<4x32xf32>
    %cst_189 = arith.constant dense<0xFF800000> : vector<32xf32>
    %248 = vector.multi_reduction <maximumf>, %247, %cst_189 [0] : vector<4x32xf32> to vector<32xf32>
    %249 = vector.shape_cast %248 : vector<32xf32> to vector<1x32xf32>
    %250 = vector.extract_strided_slice %222 {offsets = [36, 0], sizes = [4, 32], strides = [1, 1]} : vector<99x32xf32> to vector<4x32xf32>
    %cst_190 = arith.constant dense<0xFF800000> : vector<32xf32>
    %251 = vector.multi_reduction <maximumf>, %250, %cst_190 [0] : vector<4x32xf32> to vector<32xf32>
    %252 = vector.shape_cast %251 : vector<32xf32> to vector<1x32xf32>
    %253 = vector.extract_strided_slice %222 {offsets = [40, 0], sizes = [4, 32], strides = [1, 1]} : vector<99x32xf32> to vector<4x32xf32>
    %cst_191 = arith.constant dense<0xFF800000> : vector<32xf32>
    %254 = vector.multi_reduction <maximumf>, %253, %cst_191 [0] : vector<4x32xf32> to vector<32xf32>
    %255 = vector.shape_cast %254 : vector<32xf32> to vector<1x32xf32>
    %256 = vector.extract_strided_slice %222 {offsets = [44, 0], sizes = [4, 32], strides = [1, 1]} : vector<99x32xf32> to vector<4x32xf32>
    %cst_192 = arith.constant dense<0xFF800000> : vector<32xf32>
    %257 = vector.multi_reduction <maximumf>, %256, %cst_192 [0] : vector<4x32xf32> to vector<32xf32>
    %258 = vector.shape_cast %257 : vector<32xf32> to vector<1x32xf32>
    %259 = vector.extract_strided_slice %222 {offsets = [48, 0], sizes = [4, 32], strides = [1, 1]} : vector<99x32xf32> to vector<4x32xf32>
    %cst_193 = arith.constant dense<0xFF800000> : vector<32xf32>
    %260 = vector.multi_reduction <maximumf>, %259, %cst_193 [0] : vector<4x32xf32> to vector<32xf32>
    %261 = vector.shape_cast %260 : vector<32xf32> to vector<1x32xf32>
    %262 = vector.extract_strided_slice %222 {offsets = [52, 0], sizes = [4, 32], strides = [1, 1]} : vector<99x32xf32> to vector<4x32xf32>
    %cst_194 = arith.constant dense<0xFF800000> : vector<32xf32>
    %263 = vector.multi_reduction <maximumf>, %262, %cst_194 [0] : vector<4x32xf32> to vector<32xf32>
    %264 = vector.shape_cast %263 : vector<32xf32> to vector<1x32xf32>
    %265 = vector.extract_strided_slice %222 {offsets = [56, 0], sizes = [4, 32], strides = [1, 1]} : vector<99x32xf32> to vector<4x32xf32>
    %cst_195 = arith.constant dense<0xFF800000> : vector<32xf32>
    %266 = vector.multi_reduction <maximumf>, %265, %cst_195 [0] : vector<4x32xf32> to vector<32xf32>
    %267 = vector.shape_cast %266 : vector<32xf32> to vector<1x32xf32>
    %268 = vector.extract_strided_slice %222 {offsets = [60, 0], sizes = [4, 32], strides = [1, 1]} : vector<99x32xf32> to vector<4x32xf32>
    %cst_196 = arith.constant dense<0xFF800000> : vector<32xf32>
    %269 = vector.multi_reduction <maximumf>, %268, %cst_196 [0] : vector<4x32xf32> to vector<32xf32>
    %270 = vector.shape_cast %269 : vector<32xf32> to vector<1x32xf32>
    %271 = vector.extract_strided_slice %222 {offsets = [64, 0], sizes = [4, 32], strides = [1, 1]} : vector<99x32xf32> to vector<4x32xf32>
    %cst_197 = arith.constant dense<0xFF800000> : vector<32xf32>
    %272 = vector.multi_reduction <maximumf>, %271, %cst_197 [0] : vector<4x32xf32> to vector<32xf32>
    %273 = vector.shape_cast %272 : vector<32xf32> to vector<1x32xf32>
    %274 = vector.extract_strided_slice %222 {offsets = [68, 0], sizes = [4, 32], strides = [1, 1]} : vector<99x32xf32> to vector<4x32xf32>
    %cst_198 = arith.constant dense<0xFF800000> : vector<32xf32>
    %275 = vector.multi_reduction <maximumf>, %274, %cst_198 [0] : vector<4x32xf32> to vector<32xf32>
    %276 = vector.shape_cast %275 : vector<32xf32> to vector<1x32xf32>
    %277 = vector.extract_strided_slice %222 {offsets = [72, 0], sizes = [4, 32], strides = [1, 1]} : vector<99x32xf32> to vector<4x32xf32>
    %cst_199 = arith.constant dense<0xFF800000> : vector<32xf32>
    %278 = vector.multi_reduction <maximumf>, %277, %cst_199 [0] : vector<4x32xf32> to vector<32xf32>
    %279 = vector.shape_cast %278 : vector<32xf32> to vector<1x32xf32>
    %280 = vector.extract_strided_slice %222 {offsets = [76, 0], sizes = [4, 32], strides = [1, 1]} : vector<99x32xf32> to vector<4x32xf32>
    %cst_200 = arith.constant dense<0xFF800000> : vector<32xf32>
    %281 = vector.multi_reduction <maximumf>, %280, %cst_200 [0] : vector<4x32xf32> to vector<32xf32>
    %282 = vector.shape_cast %281 : vector<32xf32> to vector<1x32xf32>
    %283 = vector.extract_strided_slice %222 {offsets = [80, 0], sizes = [4, 32], strides = [1, 1]} : vector<99x32xf32> to vector<4x32xf32>
    %cst_201 = arith.constant dense<0xFF800000> : vector<32xf32>
    %284 = vector.multi_reduction <maximumf>, %283, %cst_201 [0] : vector<4x32xf32> to vector<32xf32>
    %285 = vector.shape_cast %284 : vector<32xf32> to vector<1x32xf32>
    %286 = vector.extract_strided_slice %222 {offsets = [84, 0], sizes = [4, 32], strides = [1, 1]} : vector<99x32xf32> to vector<4x32xf32>
    %cst_202 = arith.constant dense<0xFF800000> : vector<32xf32>
    %287 = vector.multi_reduction <maximumf>, %286, %cst_202 [0] : vector<4x32xf32> to vector<32xf32>
    %288 = vector.shape_cast %287 : vector<32xf32> to vector<1x32xf32>
    %289 = vector.extract_strided_slice %222 {offsets = [88, 0], sizes = [4, 32], strides = [1, 1]} : vector<99x32xf32> to vector<4x32xf32>
    %cst_203 = arith.constant dense<0xFF800000> : vector<32xf32>
    %290 = vector.multi_reduction <maximumf>, %289, %cst_203 [0] : vector<4x32xf32> to vector<32xf32>
    %291 = vector.shape_cast %290 : vector<32xf32> to vector<1x32xf32>
    %292 = vector.extract_strided_slice %222 {offsets = [92, 0], sizes = [4, 32], strides = [1, 1]} : vector<99x32xf32> to vector<4x32xf32>
    %cst_204 = arith.constant dense<0xFF800000> : vector<32xf32>
    %293 = vector.multi_reduction <maximumf>, %292, %cst_204 [0] : vector<4x32xf32> to vector<32xf32>
    %294 = vector.shape_cast %293 : vector<32xf32> to vector<1x32xf32>
    %295 = tpu.concatenate %225, %228, %231, %234, %237, %240, %243, %246, %249, %252, %255, %258, %261, %264, %267, %270 in 0 : vector<1x32xf32>, vector<1x32xf32>, vector<1x32xf32>, vector<1x32xf32>, vector<1x32xf32>, vector<1x32xf32>, vector<1x32xf32>, vector<1x32xf32>, vector<1x32xf32>, vector<1x32xf32>, vector<1x32xf32>, vector<1x32xf32>, vector<1x32xf32>, vector<1x32xf32>, vector<1x32xf32>, vector<1x32xf32> -> vector<16x32xf32>
    %296 = tpu.concatenate %273, %276, %279, %282, %285, %288, %291, %294 in 0 : vector<1x32xf32>, vector<1x32xf32>, vector<1x32xf32>, vector<1x32xf32>, vector<1x32xf32>, vector<1x32xf32>, vector<1x32xf32>, vector<1x32xf32> -> vector<8x32xf32>
    %297 = tpu.concatenate %295, %296 in 0 : vector<16x32xf32>, vector<8x32xf32> -> vector<24x32xf32>
    %c0_205 = arith.constant 0 : index
    %c0_206 = arith.constant 0 : index
    %298 = vector.load %arg16[%c0_205, %c0_206] : memref<1x32xf32, #tpu.memory_space<vmem>>, vector<1x32xf32>
    %c0_207 = arith.constant 0 : index
    %c0_208 = arith.constant 0 : index
    %299 = vector.load %arg17[%c0_207, %c0_208] : memref<1x32xf32, #tpu.memory_space<vmem>>, vector<1x32xf32>
    %c0_209 = arith.constant 0 : index
    %c0_210 = arith.constant 0 : index
    %300 = vector.load %arg18[%c0_209, %c0_210] : memref<1x64xf32, #tpu.memory_space<vmem>>, vector<1x64xf32>
    %c0_211 = arith.constant 0 : index
    %c0_212 = arith.constant 0 : index
    %301 = vector.load %arg19[%c0_211, %c0_212] : memref<1x64xf32, #tpu.memory_space<vmem>>, vector<1x64xf32>
    %c0_213 = arith.constant 0 : index
    %c0_214 = arith.constant 0 : index
    %302 = vector.load %arg20[%c0_213, %c0_214] : memref<1x64xf32, #tpu.memory_space<vmem>>, vector<1x64xf32>
    %303 = vector.broadcast %298 : vector<1x32xf32> to vector<24x32xf32>
    %304 = arith.mulf %297, %303 : vector<24x32xf32>
    %305 = vector.broadcast %299 : vector<1x32xf32> to vector<24x32xf32>
    %306 = arith.addf %304, %305 : vector<24x32xf32>
    %cst_215 = arith.constant 0.000000e+00 : f32
    %307 = vector.broadcast %cst_215 : f32 to vector<24x32xf32>
    %308 = arith.maximumf %306, %307 : vector<24x32xf32>
    %309 = arith.truncf %308 : vector<24x32xf32> to vector<24x32xbf16>
    %cst_216 = arith.constant 0.000000e+00 : bf16
    %310 = vector.broadcast %cst_216 : bf16 to vector<1x32xbf16>
    %311 = vector.extract_strided_slice %309 {offsets = [0, 0], sizes = [23, 32], strides = [1, 1]} : vector<24x32xbf16> to vector<23x32xbf16>
    %312 = tpu.concatenate %310, %311 in 0 : vector<1x32xbf16>, vector<23x32xbf16> -> vector<24x32xbf16>
    %c0_217 = arith.constant 0 : index
    %c0_218 = arith.constant 0 : index
    %c0_219 = arith.constant 0 : index
    %313 = vector.load %arg13[%c0_217, %c0_218, %c0_219] : memref<3x32x64xbf16, #tpu.memory_space<vmem>>, vector<1x32x64xbf16>
    %314 = vector.shape_cast %313 : vector<1x32x64xbf16> to vector<32x64xbf16>
    %cst_220 = arith.constant dense<0.000000e+00> : vector<24x64xf32>
    %315 = tpu.matmul %312, %314, %cst_220 {dimension_numbers = #tpu.dot_dimension_numbers<[1], [0], [0], [1], [0, 0, 1, 1], [], []>} : vector<24x32xbf16>, vector<32x64xbf16>, vector<24x64xf32> -> vector<24x64xf32>
    %c1_221 = arith.constant 1 : index
    %c0_222 = arith.constant 0 : index
    %c0_223 = arith.constant 0 : index
    %316 = vector.load %arg13[%c1_221, %c0_222, %c0_223] : memref<3x32x64xbf16, #tpu.memory_space<vmem>>, vector<1x32x64xbf16>
    %317 = vector.shape_cast %316 : vector<1x32x64xbf16> to vector<32x64xbf16>
    %cst_224 = arith.constant dense<0.000000e+00> : vector<24x64xf32>
    %318 = tpu.matmul %309, %317, %cst_224 {dimension_numbers = #tpu.dot_dimension_numbers<[1], [0], [0], [1], [0, 0, 1, 1], [], []>} : vector<24x32xbf16>, vector<32x64xbf16>, vector<24x64xf32> -> vector<24x64xf32>
    %319 = arith.addf %315, %318 : vector<24x64xf32>
    %320 = vector.extract_strided_slice %309 {offsets = [1, 0], sizes = [23, 32], strides = [1, 1]} : vector<24x32xbf16> to vector<23x32xbf16>
    %321 = tpu.concatenate %320, %310 in 0 : vector<23x32xbf16>, vector<1x32xbf16> -> vector<24x32xbf16>
    %c2_225 = arith.constant 2 : index
    %c0_226 = arith.constant 0 : index
    %c0_227 = arith.constant 0 : index
    %322 = vector.load %arg13[%c2_225, %c0_226, %c0_227] : memref<3x32x64xbf16, #tpu.memory_space<vmem>>, vector<1x32x64xbf16>
    %323 = vector.shape_cast %322 : vector<1x32x64xbf16> to vector<32x64xbf16>
    %cst_228 = arith.constant dense<0.000000e+00> : vector<24x64xf32>
    %324 = tpu.matmul %321, %323, %cst_228 {dimension_numbers = #tpu.dot_dimension_numbers<[1], [0], [0], [1], [0, 0, 1, 1], [], []>} : vector<24x32xbf16>, vector<32x64xbf16>, vector<24x64xf32> -> vector<24x64xf32>
    %325 = arith.addf %319, %324 : vector<24x64xf32>
    %326 = vector.broadcast %300 : vector<1x64xf32> to vector<24x64xf32>
    %327 = arith.mulf %325, %326 : vector<24x64xf32>
    %328 = vector.broadcast %301 : vector<1x64xf32> to vector<24x64xf32>
    %329 = arith.addf %327, %328 : vector<24x64xf32>
    %cst_229 = arith.constant 0.000000e+00 : f32
    %330 = vector.broadcast %cst_229 : f32 to vector<24x64xf32>
    %331 = arith.maximumf %329, %330 : vector<24x64xf32>
    %332 = arith.truncf %331 : vector<24x64xf32> to vector<24x64xbf16>
    %cst_230 = arith.constant 0.000000e+00 : bf16
    %333 = vector.broadcast %cst_230 : bf16 to vector<1x64xbf16>
    %334 = vector.extract_strided_slice %332 {offsets = [0, 0], sizes = [23, 64], strides = [1, 1]} : vector<24x64xbf16> to vector<23x64xbf16>
    %335 = tpu.concatenate %333, %334 in 0 : vector<1x64xbf16>, vector<23x64xbf16> -> vector<24x64xbf16>
    %c0_231 = arith.constant 0 : index
    %c0_232 = arith.constant 0 : index
    %c0_233 = arith.constant 0 : index
    %336 = vector.load %arg14[%c0_231, %c0_232, %c0_233] : memref<3x64x64xbf16, #tpu.memory_space<vmem>>, vector<1x64x64xbf16>
    %337 = vector.shape_cast %336 : vector<1x64x64xbf16> to vector<64x64xbf16>
    %cst_234 = arith.constant dense<0.000000e+00> : vector<24x64xf32>
    %338 = tpu.matmul %335, %337, %cst_234 {dimension_numbers = #tpu.dot_dimension_numbers<[1], [0], [0], [1], [0, 0, 1, 1], [], []>} : vector<24x64xbf16>, vector<64x64xbf16>, vector<24x64xf32> -> vector<24x64xf32>
    %c1_235 = arith.constant 1 : index
    %c0_236 = arith.constant 0 : index
    %c0_237 = arith.constant 0 : index
    %339 = vector.load %arg14[%c1_235, %c0_236, %c0_237] : memref<3x64x64xbf16, #tpu.memory_space<vmem>>, vector<1x64x64xbf16>
    %340 = vector.shape_cast %339 : vector<1x64x64xbf16> to vector<64x64xbf16>
    %cst_238 = arith.constant dense<0.000000e+00> : vector<24x64xf32>
    %341 = tpu.matmul %332, %340, %cst_238 {dimension_numbers = #tpu.dot_dimension_numbers<[1], [0], [0], [1], [0, 0, 1, 1], [], []>} : vector<24x64xbf16>, vector<64x64xbf16>, vector<24x64xf32> -> vector<24x64xf32>
    %342 = arith.addf %338, %341 : vector<24x64xf32>
    %343 = vector.extract_strided_slice %332 {offsets = [1, 0], sizes = [23, 64], strides = [1, 1]} : vector<24x64xbf16> to vector<23x64xbf16>
    %344 = tpu.concatenate %343, %333 in 0 : vector<23x64xbf16>, vector<1x64xbf16> -> vector<24x64xbf16>
    %c2_239 = arith.constant 2 : index
    %c0_240 = arith.constant 0 : index
    %c0_241 = arith.constant 0 : index
    %345 = vector.load %arg14[%c2_239, %c0_240, %c0_241] : memref<3x64x64xbf16, #tpu.memory_space<vmem>>, vector<1x64x64xbf16>
    %346 = vector.shape_cast %345 : vector<1x64x64xbf16> to vector<64x64xbf16>
    %cst_242 = arith.constant dense<0.000000e+00> : vector<24x64xf32>
    %347 = tpu.matmul %344, %346, %cst_242 {dimension_numbers = #tpu.dot_dimension_numbers<[1], [0], [0], [1], [0, 0, 1, 1], [], []>} : vector<24x64xbf16>, vector<64x64xbf16>, vector<24x64xf32> -> vector<24x64xf32>
    %348 = arith.addf %342, %347 : vector<24x64xf32>
    %c0_243 = arith.constant 0 : index
    %c0_244 = arith.constant 0 : index
    %349 = vector.load %arg15[%c0_243, %c0_244] : memref<32x64xbf16, #tpu.memory_space<vmem>>, vector<32x64xbf16>
    %cst_245 = arith.constant dense<0.000000e+00> : vector<24x64xf32>
    %350 = tpu.matmul %309, %349, %cst_245 {dimension_numbers = #tpu.dot_dimension_numbers<[1], [0], [0], [1], [0, 0, 1, 1], [], []>} : vector<24x32xbf16>, vector<32x64xbf16>, vector<24x64xf32> -> vector<24x64xf32>
    %351 = arith.addf %348, %350 : vector<24x64xf32>
    %352 = vector.broadcast %302 : vector<1x64xf32> to vector<24x64xf32>
    %353 = arith.addf %351, %352 : vector<24x64xf32>
    %cst_246 = arith.constant 0.000000e+00 : f32
    %354 = vector.broadcast %cst_246 : f32 to vector<24x64xf32>
    %355 = arith.maximumf %353, %354 : vector<24x64xf32>
    %356 = vector.extract_strided_slice %355 {offsets = [0, 0], sizes = [4, 64], strides = [1, 1]} : vector<24x64xf32> to vector<4x64xf32>
    %cst_247 = arith.constant dense<0xFF800000> : vector<64xf32>
    %357 = vector.multi_reduction <maximumf>, %356, %cst_247 [0] : vector<4x64xf32> to vector<64xf32>
    %358 = vector.shape_cast %357 : vector<64xf32> to vector<1x64xf32>
    %359 = vector.extract_strided_slice %355 {offsets = [4, 0], sizes = [4, 64], strides = [1, 1]} : vector<24x64xf32> to vector<4x64xf32>
    %cst_248 = arith.constant dense<0xFF800000> : vector<64xf32>
    %360 = vector.multi_reduction <maximumf>, %359, %cst_248 [0] : vector<4x64xf32> to vector<64xf32>
    %361 = vector.shape_cast %360 : vector<64xf32> to vector<1x64xf32>
    %362 = vector.extract_strided_slice %355 {offsets = [8, 0], sizes = [4, 64], strides = [1, 1]} : vector<24x64xf32> to vector<4x64xf32>
    %cst_249 = arith.constant dense<0xFF800000> : vector<64xf32>
    %363 = vector.multi_reduction <maximumf>, %362, %cst_249 [0] : vector<4x64xf32> to vector<64xf32>
    %364 = vector.shape_cast %363 : vector<64xf32> to vector<1x64xf32>
    %365 = vector.extract_strided_slice %355 {offsets = [12, 0], sizes = [4, 64], strides = [1, 1]} : vector<24x64xf32> to vector<4x64xf32>
    %cst_250 = arith.constant dense<0xFF800000> : vector<64xf32>
    %366 = vector.multi_reduction <maximumf>, %365, %cst_250 [0] : vector<4x64xf32> to vector<64xf32>
    %367 = vector.shape_cast %366 : vector<64xf32> to vector<1x64xf32>
    %368 = vector.extract_strided_slice %355 {offsets = [16, 0], sizes = [4, 64], strides = [1, 1]} : vector<24x64xf32> to vector<4x64xf32>
    %cst_251 = arith.constant dense<0xFF800000> : vector<64xf32>
    %369 = vector.multi_reduction <maximumf>, %368, %cst_251 [0] : vector<4x64xf32> to vector<64xf32>
    %370 = vector.shape_cast %369 : vector<64xf32> to vector<1x64xf32>
    %371 = vector.extract_strided_slice %355 {offsets = [20, 0], sizes = [4, 64], strides = [1, 1]} : vector<24x64xf32> to vector<4x64xf32>
    %cst_252 = arith.constant dense<0xFF800000> : vector<64xf32>
    %372 = vector.multi_reduction <maximumf>, %371, %cst_252 [0] : vector<4x64xf32> to vector<64xf32>
    %373 = vector.shape_cast %372 : vector<64xf32> to vector<1x64xf32>
    %374 = tpu.concatenate %358, %361, %364, %367, %370, %373 in 0 : vector<1x64xf32>, vector<1x64xf32>, vector<1x64xf32>, vector<1x64xf32>, vector<1x64xf32>, vector<1x64xf32> -> vector<6x64xf32>
    %375 = arith.truncf %374 : vector<6x64xf32> to vector<6x64xbf16>
    %376 = vector.extract_strided_slice %375 {offsets = [0, 0], sizes = [4, 64], strides = [1, 1]} : vector<6x64xbf16> to vector<4x64xbf16>
    %c0_253 = arith.constant 0 : index
    %c0_254 = arith.constant 0 : index
    %c0_255 = arith.constant 0 : index
    %377 = vector.load %arg21[%c0_253, %c0_254, %c0_255] : memref<3x64x64xbf16, #tpu.memory_space<vmem>>, vector<1x64x64xbf16>
    %378 = vector.shape_cast %377 : vector<1x64x64xbf16> to vector<64x64xbf16>
    %cst_256 = arith.constant dense<0.000000e+00> : vector<4x64xf32>
    %379 = tpu.matmul %376, %378, %cst_256 {dimension_numbers = #tpu.dot_dimension_numbers<[1], [0], [0], [1], [0, 0, 1, 1], [], []>} : vector<4x64xbf16>, vector<64x64xbf16>, vector<4x64xf32> -> vector<4x64xf32>
    %380 = vector.extract_strided_slice %375 {offsets = [1, 0], sizes = [4, 64], strides = [1, 1]} : vector<6x64xbf16> to vector<4x64xbf16>
    %c1_257 = arith.constant 1 : index
    %c0_258 = arith.constant 0 : index
    %c0_259 = arith.constant 0 : index
    %381 = vector.load %arg21[%c1_257, %c0_258, %c0_259] : memref<3x64x64xbf16, #tpu.memory_space<vmem>>, vector<1x64x64xbf16>
    %382 = vector.shape_cast %381 : vector<1x64x64xbf16> to vector<64x64xbf16>
    %cst_260 = arith.constant dense<0.000000e+00> : vector<4x64xf32>
    %383 = tpu.matmul %380, %382, %cst_260 {dimension_numbers = #tpu.dot_dimension_numbers<[1], [0], [0], [1], [0, 0, 1, 1], [], []>} : vector<4x64xbf16>, vector<64x64xbf16>, vector<4x64xf32> -> vector<4x64xf32>
    %384 = arith.addf %379, %383 : vector<4x64xf32>
    %385 = vector.extract_strided_slice %375 {offsets = [2, 0], sizes = [4, 64], strides = [1, 1]} : vector<6x64xbf16> to vector<4x64xbf16>
    %c2_261 = arith.constant 2 : index
    %c0_262 = arith.constant 0 : index
    %c0_263 = arith.constant 0 : index
    %386 = vector.load %arg21[%c2_261, %c0_262, %c0_263] : memref<3x64x64xbf16, #tpu.memory_space<vmem>>, vector<1x64x64xbf16>
    %387 = vector.shape_cast %386 : vector<1x64x64xbf16> to vector<64x64xbf16>
    %cst_264 = arith.constant dense<0.000000e+00> : vector<4x64xf32>
    %388 = tpu.matmul %385, %387, %cst_264 {dimension_numbers = #tpu.dot_dimension_numbers<[1], [0], [0], [1], [0, 0, 1, 1], [], []>} : vector<4x64xbf16>, vector<64x64xbf16>, vector<4x64xf32> -> vector<4x64xf32>
    %389 = arith.addf %384, %388 : vector<4x64xf32>
    %c0_265 = arith.constant 0 : index
    %c0_266 = arith.constant 0 : index
    %390 = vector.load %arg22[%c0_265, %c0_266] : memref<1x64xf32, #tpu.memory_space<vmem>>, vector<1x64xf32>
    %391 = vector.broadcast %390 : vector<1x64xf32> to vector<4x64xf32>
    %392 = arith.mulf %389, %391 : vector<4x64xf32>
    %c0_267 = arith.constant 0 : index
    %c0_268 = arith.constant 0 : index
    %393 = vector.load %arg23[%c0_267, %c0_268] : memref<1x64xf32, #tpu.memory_space<vmem>>, vector<1x64xf32>
    %394 = vector.broadcast %393 : vector<1x64xf32> to vector<4x64xf32>
    %395 = arith.addf %392, %394 : vector<4x64xf32>
    %cst_269 = arith.constant 0.000000e+00 : f32
    %396 = vector.broadcast %cst_269 : f32 to vector<4x64xf32>
    %397 = arith.maximumf %395, %396 : vector<4x64xf32>
    %cst_270 = arith.constant dense<0xFF800000> : vector<64xf32>
    %398 = vector.multi_reduction <maximumf>, %397, %cst_270 [0] : vector<4x64xf32> to vector<64xf32>
    %399 = vector.shape_cast %398 : vector<64xf32> to vector<1x64xf32>
    %cst_271 = arith.constant dense<0.000000e+00> : vector<64xf32>
    %400 = vector.multi_reduction <add>, %399, %cst_271 [0] : vector<1x64xf32> to vector<64xf32>
    %401 = vector.shape_cast %400 : vector<64xf32> to vector<1x64xf32>
    %cst_272 = arith.constant 1.000000e+00 : f32
    %402 = vector.broadcast %cst_272 : f32 to vector<1x64xf32>
    %403 = arith.divf %401, %402 : vector<1x64xf32>
    %404 = arith.truncf %403 : vector<1x64xf32> to vector<1x64xbf16>
    %c0_273 = arith.constant 0 : index
    %c0_274 = arith.constant 0 : index
    %405 = vector.load %arg24[%c0_273, %c0_274] : memref<64x1xbf16, #tpu.memory_space<vmem>>, vector<64x1xbf16>
    %cst_275 = arith.constant dense<0.000000e+00> : vector<1x1xf32>
    %406 = tpu.matmul %404, %405, %cst_275 {dimension_numbers = #tpu.dot_dimension_numbers<[1], [0], [0], [1], [0, 0, 1, 1], [], []>} : vector<1x64xbf16>, vector<64x1xbf16>, vector<1x1xf32> -> vector<1x1xf32>
    %c0_276 = arith.constant 0 : index
    %c0_277 = arith.constant 0 : index
    %407 = vector.load %arg25[%c0_276, %c0_277] : memref<1x1xf32, #tpu.memory_space<vmem>>, vector<1x1xf32>
    %408 = arith.addf %406, %407 : vector<1x1xf32>
    %c0_278 = arith.constant 0 : index
    %c0_279 = arith.constant 0 : index
    %c0_280 = arith.constant 0 : index
    %409 = vector.load %arg26[%c0_278, %c0_279, %c0_280] : memref<1x1x1xf32, #tpu.memory_space<vmem>>, vector<1x1x1xf32>
    %410 = vector.shape_cast %409 : vector<1x1x1xf32> to vector<1x1xf32>
    %411 = vector.shape_cast %408 : vector<1x1xf32> to vector<1x1x1xf32>
    tpu.vector_store %arg26[%c0_278, %c0_279, %c0_280], %411 {strides = array<i32>} : memref<1x1x1xf32, #tpu.memory_space<vmem>>, vector<1x1x1xf32>,
    return
  }
  func.func @transform_0(%arg0: i32) -> (i32, i32, i32) {
    %c0_i32 = arith.constant 0 : i32
    %c0_i32_0 = arith.constant 0 : i32
    %c0_i32_1 = arith.constant 0 : i32
    return %arg0, %c0_i32, %c0_i32_0 : i32, i32, i32
  }
  func.func @transform_1(%arg0: i32) -> (i32, i32, i32) {
    %c0_i32 = arith.constant 0 : i32
    %c0_i32_0 = arith.constant 0 : i32
    %c0_i32_1 = arith.constant 0 : i32
    %c0_i32_2 = arith.constant 0 : i32
    return %c0_i32, %c0_i32_0, %c0_i32_1 : i32, i32, i32
  }
  func.func @transform_2(%arg0: i32) -> (i32, i32) {
    %c0_i32 = arith.constant 0 : i32
    %c0_i32_0 = arith.constant 0 : i32
    %c0_i32_1 = arith.constant 0 : i32
    return %c0_i32, %c0_i32_0 : i32, i32
  }
  func.func @transform_3(%arg0: i32) -> (i32, i32) {
    %c0_i32 = arith.constant 0 : i32
    %c0_i32_0 = arith.constant 0 : i32
    %c0_i32_1 = arith.constant 0 : i32
    return %c0_i32, %c0_i32_0 : i32, i32
  }
  func.func @transform_4(%arg0: i32) -> (i32, i32, i32) {
    %c0_i32 = arith.constant 0 : i32
    %c0_i32_0 = arith.constant 0 : i32
    %c0_i32_1 = arith.constant 0 : i32
    %c0_i32_2 = arith.constant 0 : i32
    return %c0_i32, %c0_i32_0, %c0_i32_1 : i32, i32, i32
  }
  func.func @transform_5(%arg0: i32) -> (i32, i32, i32) {
    %c0_i32 = arith.constant 0 : i32
    %c0_i32_0 = arith.constant 0 : i32
    %c0_i32_1 = arith.constant 0 : i32
    %c0_i32_2 = arith.constant 0 : i32
    return %c0_i32, %c0_i32_0, %c0_i32_1 : i32, i32, i32
  }
  func.func @transform_6(%arg0: i32) -> (i32, i32) {
    %c0_i32 = arith.constant 0 : i32
    %c0_i32_0 = arith.constant 0 : i32
    %c0_i32_1 = arith.constant 0 : i32
    return %c0_i32, %c0_i32_0 : i32, i32
  }
  func.func @transform_7(%arg0: i32) -> (i32, i32) {
    %c0_i32 = arith.constant 0 : i32
    %c0_i32_0 = arith.constant 0 : i32
    %c0_i32_1 = arith.constant 0 : i32
    return %c0_i32, %c0_i32_0 : i32, i32
  }
  func.func @transform_8(%arg0: i32) -> (i32, i32) {
    %c0_i32 = arith.constant 0 : i32
    %c0_i32_0 = arith.constant 0 : i32
    %c0_i32_1 = arith.constant 0 : i32
    return %c0_i32, %c0_i32_0 : i32, i32
  }
  func.func @transform_9(%arg0: i32) -> (i32, i32) {
    %c0_i32 = arith.constant 0 : i32
    %c0_i32_0 = arith.constant 0 : i32
    %c0_i32_1 = arith.constant 0 : i32
    return %c0_i32, %c0_i32_0 : i32, i32
  }
  func.func @transform_10(%arg0: i32) -> (i32, i32) {
    %c0_i32 = arith.constant 0 : i32
    %c0_i32_0 = arith.constant 0 : i32
    %c0_i32_1 = arith.constant 0 : i32
    return %c0_i32, %c0_i32_0 : i32, i32
  }
  func.func @transform_11(%arg0: i32) -> (i32, i32) {
    %c0_i32 = arith.constant 0 : i32
    %c0_i32_0 = arith.constant 0 : i32
    %c0_i32_1 = arith.constant 0 : i32
    return %c0_i32, %c0_i32_0 : i32, i32
  }
  func.func @transform_12(%arg0: i32) -> (i32, i32, i32) {
    %c0_i32 = arith.constant 0 : i32
    %c0_i32_0 = arith.constant 0 : i32
    %c0_i32_1 = arith.constant 0 : i32
    %c0_i32_2 = arith.constant 0 : i32
    return %c0_i32, %c0_i32_0, %c0_i32_1 : i32, i32, i32
  }
  func.func @transform_13(%arg0: i32) -> (i32, i32, i32) {
    %c0_i32 = arith.constant 0 : i32
    %c0_i32_0 = arith.constant 0 : i32
    %c0_i32_1 = arith.constant 0 : i32
    %c0_i32_2 = arith.constant 0 : i32
    return %c0_i32, %c0_i32_0, %c0_i32_1 : i32, i32, i32
  }
  func.func @transform_14(%arg0: i32) -> (i32, i32) {
    %c0_i32 = arith.constant 0 : i32
    %c0_i32_0 = arith.constant 0 : i32
    %c0_i32_1 = arith.constant 0 : i32
    return %c0_i32, %c0_i32_0 : i32, i32
  }
  func.func @transform_15(%arg0: i32) -> (i32, i32) {
    %c0_i32 = arith.constant 0 : i32
    %c0_i32_0 = arith.constant 0 : i32
    %c0_i32_1 = arith.constant 0 : i32
    return %c0_i32, %c0_i32_0 : i32, i32
  }
  func.func @transform_16(%arg0: i32) -> (i32, i32) {
    %c0_i32 = arith.constant 0 : i32
    %c0_i32_0 = arith.constant 0 : i32
    %c0_i32_1 = arith.constant 0 : i32
    return %c0_i32, %c0_i32_0 : i32, i32
  }
  func.func @transform_17(%arg0: i32) -> (i32, i32) {
    %c0_i32 = arith.constant 0 : i32
    %c0_i32_0 = arith.constant 0 : i32
    %c0_i32_1 = arith.constant 0 : i32
    return %c0_i32, %c0_i32_0 : i32, i32
  }
  func.func @transform_18(%arg0: i32) -> (i32, i32) {
    %c0_i32 = arith.constant 0 : i32
    %c0_i32_0 = arith.constant 0 : i32
    %c0_i32_1 = arith.constant 0 : i32
    return %c0_i32, %c0_i32_0 : i32, i32
  }
  func.func @transform_19(%arg0: i32) -> (i32, i32) {
    %c0_i32 = arith.constant 0 : i32
    %c0_i32_0 = arith.constant 0 : i32
    %c0_i32_1 = arith.constant 0 : i32
    return %c0_i32, %c0_i32_0 : i32, i32
  }
  func.func @transform_20(%arg0: i32) -> (i32, i32, i32) {
    %c0_i32 = arith.constant 0 : i32
    %c0_i32_0 = arith.constant 0 : i32
    %c0_i32_1 = arith.constant 0 : i32
    %c0_i32_2 = arith.constant 0 : i32
    return %c0_i32, %c0_i32_0, %c0_i32_1 : i32, i32, i32
  }
  func.func @transform_21(%arg0: i32) -> (i32, i32) {
    %c0_i32 = arith.constant 0 : i32
    %c0_i32_0 = arith.constant 0 : i32
    %c0_i32_1 = arith.constant 0 : i32
    return %c0_i32, %c0_i32_0 : i32, i32
  }
  func.func @transform_22(%arg0: i32) -> (i32, i32) {
    %c0_i32 = arith.constant 0 : i32
    %c0_i32_0 = arith.constant 0 : i32
    %c0_i32_1 = arith.constant 0 : i32
    return %c0_i32, %c0_i32_0 : i32, i32
  }
  func.func @transform_23(%arg0: i32) -> (i32, i32) {
    %c0_i32 = arith.constant 0 : i32
    %c0_i32_0 = arith.constant 0 : i32
    %c0_i32_1 = arith.constant 0 : i32
    return %c0_i32, %c0_i32_0 : i32, i32
  }
  func.func @transform_24(%arg0: i32) -> (i32, i32) {
    %c0_i32 = arith.constant 0 : i32
    %c0_i32_0 = arith.constant 0 : i32
    %c0_i32_1 = arith.constant 0 : i32
    return %c0_i32, %c0_i32_0 : i32, i32
  }
  func.func @transform_25(%arg0: i32) -> (i32, i32, i32) {
    %c0_i32 = arith.constant 0 : i32
    %c0_i32_0 = arith.constant 0 : i32
    %c0_i32_1 = arith.constant 0 : i32
    return %arg0, %c0_i32, %c0_i32_0 : i32, i32, i32
  }
}

</mosaic_0001>

<bundles_post_ra>
// kernel: m5_forward.1
= control target key start
LH: loop header
LB: loop body
LE: loop exit
PB: predicated region body
PF: predicated region fallthrough
CT: control target
= control target key end

     0   :  { %s6725_s0 = inlined_call_operand.vmem [shape: f32[2,100,128], index: 0, kind: input, shape index: {}]   ;;  %s6726_s1 = inlined_call_operand.vmem [shape: bf16[5,32,32], index: 1, kind: input, shape index: {}]   ;;  %s6727_s2 = inlined_call_operand.vmem [shape: f32[1,32], index: 2, kind: input, shape index: {}]   ;;  %s6728_s3 = inlined_call_operand.vmem [shape: f32[1,32], index: 3, kind: input, shape index: {}]   ;;  %s6729_s4 = inlined_call_operand.vmem [shape: bf16[3,32,32], index: 4, kind: input, shape index: {}]   ;;  %s6730_s5 = inlined_call_operand.vmem [shape: bf16[3,32,32], index: 5, kind: input, shape index: {}]   ;;  %s6731_s6 = inlined_call_operand.vmem [shape: bf16[32,32], index: 6, kind: input, shape index: {}]   ;;  %s6732_s7 = inlined_call_operand.vmem [shape: f32[1,32], index: 7, kind: input, shape index: {}]   ;;  %s6733_s8 = inlined_call_operand.vmem [shape: f32[1,32], index: 8, kind: input, shape index: {}]   ;;  %s6734_s9 = inlined_call_operand.vmem [shape: f32[1,32], index: 9, kind: input, shape index: {}]   ;;  %s6735_s10 = inlined_call_operand.vmem [shape: f32[1,32], index: 10, kind: input, shape index: {}]   ;;  %s6736_s11 = inlined_call_operand.vmem [shape: f32[1,32], index: 11, kind: input, shape index: {}]   ;;  %s6737_s12 = inlined_call_operand.vmem [shape: bf16[3,32,64], index: 12, kind: input, shape index: {}]   ;;  %s6738_s13 = inlined_call_operand.vmem [shape: bf16[3,64,64], index: 13, kind: input, shape index: {}]   ;;  %s6739_s14 = inlined_call_operand.vmem [shape: bf16[32,64], index: 14, kind: input, shape index: {}]   ;;  %s6740_s15 = inlined_call_operand.vmem [shape: f32[1,32], index: 15, kind: input, shape index: {}]   ;;  %s6741_s16 = inlined_call_operand.vmem [shape: f32[1,32], index: 16, kind: input, shape index: {}]   ;;  %s6742_s17 = inlined_call_operand.vmem [shape: f32[1,64], index: 17, kind: input, shape index: {}]   ;;  %s6743_s18 = inlined_call_operand.vmem [shape: f32[1,64], index: 18, kind: input, shape index: {}]   ;;  %s6744_s19 = inlined_call_operand.vmem [shape: f32[1,64], index: 19, kind: input, shape index: {}]   ;;  %s6745_s20 = inlined_call_operand.vmem [shape: bf16[3,64,64], index: 20, kind: input, shape index: {}]   ;;  %s6746_s21 = inlined_call_operand.vmem [shape: f32[1,64], index: 21, kind: input, shape index: {}]   ;;  %s6747_s22 = inlined_call_operand.vmem [shape: f32[1,64], index: 22, kind: input, shape index: {}]   ;;  %s6748_s23 = inlined_call_operand.vmem [shape: bf16[64,1], index: 23, kind: input, shape index: {}]   ;;  %s6749_s24 = inlined_call_operand.<no memory space> [shape: f32[1,1], index: 24, kind: input, shape index: {}]   ;;  %s6750_s25 = inlined_call_operand.vmem [shape: f32[2,1,1], index: 25, kind: output, shape index: {}]  }
   0x1   :  { %6772 = sst [smem:[#allocation17_spill]] %s6725_s0  ;;  %v30_v0 = vstv %s6749_s24 }
   0x2   :  { %6773 = sst [smem:[#allocation18_spill]] %s6726_s1  ;;  %31 = vst [vmem:[#allocation2] sm:$0x1] %v30_v0 }
   0x3   :  { %6774 = sst [smem:[#allocation19_spill]] %s6727_s2 }
   0x4   :  { %6775 = sst [smem:[#allocation20_spill]] %s6728_s3 }
   0x5   :  { %6776 = sst [smem:[#allocation21_spill]] %s6729_s4 }
   0x6   :  { %6777 = sst [smem:[#allocation22_spill]] %s6730_s5 }
   0x7   :  { %6778 = sst [smem:[#allocation23_spill]] %s6731_s6  ;;  %s5043_s6 = smov 0  }
   0x8   :  { %6779 = sst [smem:[#allocation24_spill]] %s6732_s7 }
   0x9   :  { %6780 = sst [smem:[#allocation25_spill]] %s6733_s8 }
   0xa   :  { %6781 = sst [smem:[#allocation26_spill]] %s6734_s9 }
   0xb LB: > { %s4284_s30 = sadd.s32 4294967295, %s4905_s6   ;;  %p4288_p0 = scmp.ge.s32.totalorder %s4905_s6, 1  ;;  %s4905_s6 = sphi %s5043_s6, %s37_s6  }
   0xc   : > { %p689_p1 = scmp.lt.s32.totalorder %s4905_s6, 3 }
   0xe   : > { %p690_p2 = pnand %p4288_p0, %p689_p1 }
  0x10   : > { %693 = sbr.rel (%p690_p2) target bundleno = 1901 (0x76d), region = 120 }
  0x15   : > { %s6782_s26 = sld [smem:[#allocation18_spill]]  ;;  %p755_p3 = scmp.lt.s32.totalorder %s4284_s30, 1  ;;  %vm828_vm0 = vcmask 261120   ;;  %vm2470_vm1 = vsmask.f32 256  ;;  %vm2527_vm2 = vcmask 1040384  }
  0x16   : > { %s6783_s28 = sld [smem:[#allocation17_spill]]  ;;  %s4907_s5 = smov 32   ;;  %vm6169_vm3 = vmand %vm2527_vm2, %vm2470_vm1  ;;  %vm2684_vm4 = vsmask.f32 7424  ;;  %vm3312_vm5 = vcmask 257024   ;;  %vm3320_vm6 = vcmask 261124  }
  0x17   : > { %s6833_s30 = smov (!%p755_p3, %s4284_s30), 1  ;;  %s4908_s0 = smov 64   ;;  %vm3483_vm7 = vcmask 1041408   ;;  %vm3485_vm8 = vcmask 1042432   ;;  %vm3487_vm9 = vcmask 1043456   ;;  %vm3489_vm10 = vcmask 1044480  }
  0x18   : > { %s4871_s8 = smul.u32 104, %s6833_s30  ;;  %s4909_s29 = smov 96   ;;  %vm3491_vm11 = vcmask 1045504   ;;  %vm3493_vm12 = vcmask 1046528   ;;  %vm3643_vm13 = vsmask.f32 3328 }
  0x19   : > { %s6819_s3 = sld [smem:[#allocation21_spill]]  ;;  %vm6575_vm14 = vmand %vm3487_vm9, %vm3643_vm13  ;;  %vm3774_vm15 = vcmask 523264   ;;  %s762_s1 = scalar_lea.vmem %s6750_s25, %s6833_s30 }
  0x1a   : > { %s6829_s27 = sld [smem:[#allocation26_spill]] }
  0x1b   : > { %v5054_v1 = vld [vmem:[%s6782_s26 + $0x8] sm:$0xff]  ;;  %v5060_v2 = vld [vmem:[%s6782_s26] sm:$0xff]  ;;  %v5118_v24 = vld [vmem:[%s6782_s26 + $0x38] sm:$0xff] }
  0x1c   : > { %932 = vmatpush.bf16.msra.mxu1 %v5054_v1  ;;  %s5069_s9 = scalar_lea.vmem %s6783_s28, %s4871_s8  ;;  %v5113_v23 = vld [vmem:[%s6782_s26 + $0x28] sm:$0xff]  ;;  %v5123_v25 = vld [vmem:[%s6782_s26 + $0x18] sm:$0xff]  ;;  %v5128_v26 = vld [vmem:[%s6782_s26 + $0x20] sm:$0xff]  ;;  %1135 = vmatpush.bf16.msra.mxu3 %v5118_v24  ;;  %s6810_s28 = sld [smem:[#allocation20_spill]] }
  0x1d   : > { %v766_v3 = vld [vmem:[%s5069_s9] sm:$0xff]  ;;  %v767_v4 = vld [vmem:[%s5069_s9 + $0x8] sm:$0xff]  ;;  %v768_v5 = vld [vmem:[%s5069_s9 + $0x10] sm:$0xff]  ;;  %1027 = vmatpush.bf16.msra.mxu2 %v5113_v23  ;;  %856 = vmatpush.bf16.msra.mxu0 %v5123_v25  ;;  %s6823_s8 = sld [smem:[#allocation24_spill]] }
  0x1e   : > { %v779_v6 = vpack.c.bf16 %v767_v4, %v766_v3  ;;  %v769_v7 = vld [vmem:[%s5069_s9 + $0x18] sm:$0xff]  ;;  %v770_v9 = vld [vmem:[%s5069_s9 + $0x20] sm:$0xff]  ;;  %v771_v10 = vld [vmem:[%s5069_s9 + $0x28] sm:$0xff] }
  0x1f   : > { %v780_v8 = vpack.c.bf16 %v769_v7, %v768_v5  ;;  %v781_v11 = vpack.c.bf16 %v771_v10, %v770_v9  ;;  %v772_v12 = vld [vmem:[%s5069_s9 + $0x30] sm:$0xff]  ;;  %v773_v13 = vld [vmem:[%s5069_s9 + $0x38] sm:$0xff]  ;;  %v774_v15 = vld [vmem:[%s5069_s9 + $0x40] sm:$0xff] }
  0x20   : > { %933 = vmatpush.bf16.msra.mxu1 %v5060_v2  ;;  %1082 = vrot.lane.b32.xlu1 %v779_v6, %s4907_s5  ;;  %v782_v14 = vpack.c.bf16 %v773_v13, %v772_v12  ;;  %v775_v16 = vld [vmem:[%s5069_s9 + $0x48] sm:$0xff]  ;;  %v776_v18 = vld [vmem:[%s5069_s9 + $0x50] sm:$0xff]  ;;  %v777_v19 = vld [vmem:[%s5069_s9 + $0x58] sm:$0xff] }
  0x21   : > { %974 = vrot.lane.b32.xlu0 %v779_v6, %s4908_s0  ;;  %804 = vrot.lane.b32.xlu2 %v780_v8, %s4909_s29  ;;  %v783_v17 = vpack.c.bf16 %v775_v16, %v774_v15  ;;  %v784_v20 = vpack.c.bf16 %v777_v19, %v776_v18  ;;  %v778_v21 = vld [vmem:[%s5069_s9 + $0x60] sm:$0x7]  ;;  %v5135_v27 = vld [vmem:[%s6782_s26 + $0x30] sm:$0xff] }
  0x22   : > { %v785_v22 = vpack.c.bf16 %v778_v21, %v778_v21  ;;  %v1185_v28 = vld [vmem:[%s5069_s9 + $0x1] sm:$0xff]  ;;  %v1186_v29 = vld [vmem:[%s5069_s9 + $0x9] sm:$0xff]  ;;  %1028 = vmatpush.bf16.msra.mxu2 %v5128_v26  ;;  %1136 = vmatpush.bf16.msra.mxu3 %v5135_v27  ;;  %v1187_v33 = vld [vmem:[%s5069_s9 + $0x11] sm:$0xff] }
  0x23   : > { %4317 = vmatmul.msk.bf16.vlgmr.msra.gmra.mxu1 %vm828_vm0, %v779_v6  ;;  %v5143_v30 = vld [vmem:[%s6782_s26 + $0x10] sm:$0xff]  ;;  %v5145_v31 = vpack.c.bf16 %v1186_v29, %v1185_v28  ;;  %v5162_v32 = vld [vmem:[%s6782_s26 + $0x48] sm:$0xff]  ;;  %v1188_v34 = vld [vmem:[%s5069_s9 + $0x19] sm:$0xff] }
  0x24   : > { %1350 = vmatpush.bf16.msrb.mxu1 %v5123_v25  ;;  %857 = vmatpush.bf16.msra.mxu0 %v5143_v30  ;;  %v5166_v35 = vpack.c.bf16 %v1188_v34, %v1187_v33  ;;  %v1191_v40 = vld [vmem:[%s5069_s9 + $0x31] sm:$0xff]  ;;  %v1192_v41 = vld [vmem:[%s5069_s9 + $0x39] sm:$0xff]  ;;  %v1189_v46 = vld [vmem:[%s5069_s9 + $0x21] sm:$0xff] }
  0x25   : > { %v5195_v42 = vpack.c.bf16 %v1192_v41, %v1191_v40  ;;  %v1190_v47 = vld [vmem:[%s5069_s9 + $0x29] sm:$0xff]  ;;  %v1193_v50 = vld [vmem:[%s5069_s9 + $0x41] sm:$0xff]  ;;  %v1195_v7 = vld [vmem:[%s5069_s9 + $0x51] sm:$0xff] }
  0x26   : > { %1393 = vmatpush.bf16.msrb.mxu2 %v5054_v1  ;;  %1436 = vmatpush.bf16.msrb.mxu3 %v5113_v23  ;;  %v5213_v48 = vpack.c.bf16 %v1190_v47, %v1189_v46  ;;  %v1194_v51 = vld [vmem:[%s5069_s9 + $0x49] sm:$0xff]  ;;  %v5240_v56 = vld [vmem:[%s6782_s26 + $0x40] sm:$0xff] }
  0x27   : > { %v5223_v52 = vpack.c.bf16 %v1194_v51, %v1193_v50  ;;  %v1197_v0 = vld [vmem:[%s5069_s9 + $0x61] sm:$0x7] }
  0x28   : > { %976 = vrot.lane.b32.xlu1 %v780_v8, %s4908_s0  ;;  %1351 = vmatpush.bf16.msrb.mxu1 %v5143_v30  ;;  %v5279_v3 = vpack.c.bf16 %v1197_v0, %v1197_v0 }
  0x29   : > { %802 = vrot.lane.b32.xlu0 %v779_v6, %s4909_s29  ;;  %1084 = vrot.lane.b32.xlu2 %v780_v8, %s4907_s5 }
  0x2a   : > { %1394 = vmatpush.bf16.msrb.mxu2 %v5060_v2  ;;  %1437 = vmatpush.bf16.msrb.mxu3 %v5128_v26 }
  0x2b   : > { %1249 = vmatpush.bf16.msrb.mxu0 %v5162_v32 }
  0x2c   : > { %1590 = vmatpush.bf16.msra.mxu1 %v5162_v32 }
  0x2f   : > { %1250 = vmatpush.bf16.msrb.mxu0 %v5240_v56 }
  0x30   : > { %806 = vrot.lane.b32.xlu1 %v781_v11, %s4909_s29  ;;  %1591 = vmatpush.bf16.msra.mxu1 %v5240_v56 }
  0x31   : > { %978 = vrot.lane.b32.xlu0 %v781_v11, %s4908_s0  ;;  %1086 = vrot.lane.b32.xlu2 %v781_v11, %s4907_s5 }
  0x33   : > { %4318 = vmatmul.msk.bf16.gmra.mxu1 %vm828_vm0, %v780_v8  ;;  %v1196_v8 = vld [vmem:[%s5069_s9 + $0x59] sm:$0xff] }
  0x34   : > { %v5299_v9 = vpack.c.bf16 %v1196_v8, %v1195_v7 }
  0x38   : > { %808 = vrot.lane.b32.xlu1 %v782_v14, %s4909_s29 }
  0x39   : > { %980 = vrot.lane.b32.xlu0 %v782_v14, %s4908_s0  ;;  %1088 = vrot.lane.b32.xlu2 %v782_v14, %s4907_s5 }
  0x40   : > { %810 = vrot.lane.b32.xlu1 %v783_v17, %s4909_s29 }
  0x41   : > { %982 = vrot.lane.b32.xlu0 %v783_v17, %s4908_s0  ;;  %1090 = vrot.lane.b32.xlu2 %v783_v17, %s4907_s5 }
  0x43   : > { %4319 = vmatmul.msk.bf16.gmra.mxu1 %vm828_vm0, %v781_v11 }
  0x48   : > { %812 = vrot.lane.b32.xlu1 %v784_v20, %s4909_s29 }
  0x49   : > { %984 = vrot.lane.b32.xlu0 %v784_v20, %s4908_s0  ;;  %1092 = vrot.lane.b32.xlu2 %v784_v20, %s4907_s5 }
  0x50   : > { %814 = vrot.lane.b32.xlu1 %v785_v22, %s4909_s29 }
  0x51   : > { %986 = vrot.lane.b32.xlu0 %v785_v22, %s4908_s0  ;;  %1094 = vrot.lane.b32.xlu2 %v785_v22, %s4907_s5 }
  0x53   : > { %4320 = vmatmul.msk.bf16.gmra.mxu1 %vm828_vm0, %v782_v14 }
  0x58   : > { %1551 = vrot.lane.b32.xlu1 %v5166_v35, %s4909_s29 }
  0x59   : > { %1549 = vrot.lane.b32.xlu0 %v5145_v31, %s4909_s29  ;;  %1553 = vrot.lane.b32.xlu2 %v5213_v48, %s4909_s29 }
  0x60   : > { %1557 = vrot.lane.b32.xlu1 %v5223_v52, %s4909_s29 }
  0x61   : > { %1555 = vrot.lane.b32.xlu0 %v5195_v42, %s4909_s29  ;;  %1559 = vrot.lane.b32.xlu2 %v5299_v9, %s4909_s29 }
  0x63   : > { %4321 = vmatmul.msk.bf16.gmra.mxu1 %vm828_vm0, %v783_v17 }
  0x68   : > { %1890 = vrot.lane.b32.xlu1 %v5145_v31, %s4908_s0 }
  0x69   : > { %1561 = vrot.lane.b32.xlu0 %v5279_v3, %s4909_s29  ;;  %1892 = vrot.lane.b32.xlu2 %v5166_v35, %s4908_s0 }
  0x70   : > { %1896 = vrot.lane.b32.xlu1 %v5195_v42, %s4908_s0 }
  0x71   : > { %1894 = vrot.lane.b32.xlu0 %v5213_v48, %s4908_s0  ;;  %1898 = vrot.lane.b32.xlu2 %v5223_v52, %s4908_s0 }
  0x73   : > { %4322 = vmatmul.msk.bf16.gmra.mxu1 %vm828_vm0, %v784_v20 }
  0x78   : > { %1902 = vrot.lane.b32.xlu1 %v5279_v3, %s4908_s0 }
  0x79   : > { %1900 = vrot.lane.b32.xlu0 %v5299_v9, %s4908_s0  ;;  %2231 = vrot.lane.b32.xlu2 %v5145_v31, %s4907_s5  ;;  %s6808_s0 = sld [smem:[#allocation19_spill]] }
  0x7b   : > { %v5185_v38 = vpop.permute.xlu2 %804 }
  0x80   : > { %2235 = vrot.lane.b32.xlu1 %v5213_v48, %s4907_s5 }
  0x81   : > { %2233 = vrot.lane.b32.xlu0 %v5166_v35, %s4907_s5  ;;  %2237 = vrot.lane.b32.xlu2 %v5195_v42, %s4907_s5 }
  0x83   : > { %4323 = vmatmul.msk.bf16.gmra.mxu1 %vm828_vm0, %v785_v22  ;;  %v5201_v44 = vpop.permute.xlu2 %1084 }
  0x84   : > { %6785 = vst [vmem:[#allocation4_spill] sm:$0xff] %v5201_v44 }
  0x88   : > { %2241 = vrot.lane.b32.xlu1 %v5299_v9, %s4907_s5 }
  0x89   : > { %2239 = vrot.lane.b32.xlu0 %v5223_v52, %s4907_s5  ;;  %2243 = vrot.lane.b32.xlu2 %v5279_v3, %s4907_s5  ;;  %s6824_s5 = sld [smem:[#allocation25_spill]] }
  0x8b   : > { %v5229_v54 = vpop.permute.xlu2 %1086 }
  0x8c   : > { %6786 = vst [vmem:[#allocation5_spill] sm:$0xff] %v5229_v54 }
  0x92   : > { %v5173_v36 = vpop.permute.xlu1 %1082 }
  0x93   : > { %6784 = vst [vmem:[#allocation3_spill] sm:$0xff] %v5173_v36  ;;  %v5175_v37 = vpop.permute.xlu0 %974  ;;  %4355 = vmatmul.msk.bf16.vlgmr.msra.gmra.mxu3 %vm828_vm0, %v5173_v36  ;;  %v5262_v60 = vpop.permute.xlu2 %1088 }
  0x94   : > { %4336 = vmatmul.msk.bf16.vlgmr.msra.gmra.mxu2 %vm828_vm0, %v5175_v37  ;;  %4381 = vmatmul.msk.bf16.vlgmr.msrb.gmra.mxu1 %vm828_vm0, %v5175_v37  ;;  %6787 = vst [vmem:[#allocation6_spill] sm:$0xff] %v5262_v60 }
  0x95   : > { %1698 = vmatpush.bf16.msra.mxu2 %v5123_v25  ;;  %1741 = vmatpush.bf16.msra.mxu3 %v5054_v1 }
  0x96   : > { %1840 = vmatpush.bf16.msrb.mxu1 %v5118_v24 }
  0x99   : > { %1699 = vmatpush.bf16.msra.mxu2 %v5143_v30  ;;  %1742 = vmatpush.bf16.msra.mxu3 %v5060_v2 }
  0x9a   : > { %v5203_v45 = vpop.permute.xlu1 %976  ;;  %1841 = vmatpush.bf16.msrb.mxu1 %v5135_v27 }
  0x9b   : > { %v5189_v39 = vpop.permute.xlu0 %802  ;;  %v5287_v5 = vpop.permute.xlu2 %1090 }
  0x9c   : > { %4302 = vmatmul.msk.bf16.vlgmr.msra.gmra.mxu0 %vm828_vm0, %v5189_v39  ;;  %6788 = vst [vmem:[#allocation7_spill] sm:$0xff] %v5287_v5 }
  0x9d   : > { %1492 = vmatpush.bf16.msra.mxu0 %v5118_v24 }
  0xa0   : > { %v5197_v43 = vpop.f32.mrf.mxu1 }
  0xa1   : > { %1493 = vmatpush.bf16.msra.mxu0 %v5135_v27 }
  0xa2   : > { %v5252_v58 = vpop.permute.xlu1 %806 }
  0xa3   : > { %4356 = vmatmul.msk.bf16.gmra.mxu3 %vm828_vm0, %v5201_v44  ;;  %v5231_v55 = vpop.permute.xlu0 %978  ;;  %v5321_v13 = vpop.permute.xlu2 %1092 }
  0xa4   : > { %4337 = vmatmul.msk.bf16.gmra.mxu2 %vm828_vm0, %v5203_v45  ;;  %4382 = vmatmul.msk.bf16.gmra.mxu1 %vm828_vm0, %v5203_v45  ;;  %6789 = vst [vmem:[#allocation8_spill] sm:$0xff] %v5321_v13 }
  0xa8   : > { %v5215_v49 = vpop.f32.mrf.mxu1 }
  0xaa   : > { %v5274_v63 = vpop.permute.xlu1 %808 }
  0xab   : > { %v5264_v61 = vpop.permute.xlu0 %980  ;;  %v5347_v18 = vpop.permute.xlu2 %1094 }
  0xac   : > { %4303 = vmatmul.msk.bf16.gmra.mxu0 %vm828_vm0, %v5185_v38  ;;  %6791 = vst [vmem:[#allocation10_spill] sm:$0xff] %v5347_v18 }
  0xb0   : > { %v5225_v53 = vpop.f32.mrf.mxu1 }
  0xb2   : > { %v5309_v11 = vpop.permute.xlu1 %810 }
  0xb3   : > { %4357 = vmatmul.msk.bf16.gmra.mxu3 %vm828_vm0, %v5229_v54  ;;  %v5289_v6 = vpop.permute.xlu0 %982  ;;  %v5407_v0 = vpop.permute.xlu2 %1553 }
  0xb4   : > { %4338 = vmatmul.msk.bf16.gmra.mxu2 %vm828_vm0, %v5231_v55  ;;  %4383 = vmatmul.msk.bf16.gmra.mxu1 %vm828_vm0, %v5231_v55 }
  0xb8   : > { %v5246_v57 = vpop.f32.mrf.mxu1 }
  0xba   : > { %v5337_v16 = vpop.permute.xlu1 %812 }
  0xbb   : > { %v5323_v14 = vpop.permute.xlu0 %984 }
  0xbc   : > { %4304 = vmatmul.msk.bf16.gmra.mxu0 %vm828_vm0, %v5252_v58  ;;  %6790 = vst [vmem:[#allocation9_spill] sm:$0xff] %v5323_v14 }
  0xc0   : > { %v5258_v59 = vpop.f32.mrf.mxu1 }
  0xc2   : > { %v5361_v21 = vpop.permute.xlu1 %814 }
  0xc3   : > { %4358 = vmatmul.msk.bf16.gmra.mxu3 %vm828_vm0, %v5262_v60  ;;  %v5349_v19 = vpop.permute.xlu0 %986 }
  0xc4   : > { %4339 = vmatmul.msk.bf16.gmra.mxu2 %vm828_vm0, %v5264_v61  ;;  %4384 = vmatmul.msk.bf16.gmra.mxu1 %vm828_vm0, %v5264_v61  ;;  %6792 = vst [vmem:[#allocation11_spill] sm:$0xff] %v5349_v19 }
  0xc8   : > { %v5272_v62 = vpop.f32.mrf.mxu1 }
  0xca   : > { %v5389_v34 = vpop.permute.xlu1 %1551 }
  0xcb   : > { %v5369_v28 = vpop.permute.xlu0 %1549 }
  0xcc   : > { %4305 = vmatmul.msk.bf16.gmra.mxu0 %vm828_vm0, %v5274_v63 }
  0xd0   : > { %v5281_v4 = vpop.f32.mrf.mxu1 }
  0xd3   : > { %4359 = vmatmul.msk.bf16.gmra.mxu3 %vm828_vm0, %v5287_v5 }
  0xd4   : > { %4340 = vmatmul.msk.bf16.gmra.mxu2 %vm828_vm0, %v5289_v6  ;;  %4385 = vmatmul.msk.bf16.gmra.mxu1 %vm828_vm0, %v5289_v6 }
  0xd8   : > { %v5301_v10 = vpop.f32.mrf.mxu1 }
  0xdc   : > { %4306 = vmatmul.msk.bf16.gmra.mxu0 %vm828_vm0, %v5309_v11 }
  0xe0   : > { %v5313_v12 = vpop.f32.mrf.mxu1 }
  0xe3   : > { %4360 = vmatmul.msk.bf16.gmra.mxu3 %vm828_vm0, %v5321_v13 }
  0xe4   : > { %4341 = vmatmul.msk.bf16.gmra.mxu2 %vm828_vm0, %v5323_v14  ;;  %4386 = vmatmul.msk.bf16.gmra.mxu1 %vm828_vm0, %v5323_v14 }
  0xe8   : > { %v5331_v15 = vpop.f32.mrf.mxu1 }
  0xec   : > { %4307 = vmatmul.msk.bf16.gmra.mxu0 %vm828_vm0, %v5337_v16 }
  0xf0   : > { %v5341_v17 = vpop.f32.mrf.mxu1 }
  0xf3   : > { %4361 = vmatmul.msk.bf16.gmra.mxu3 %vm828_vm0, %v5347_v18 }
  0xf4   : > { %4342 = vmatmul.msk.bf16.gmra.mxu2 %vm828_vm0, %v5349_v19  ;;  %4387 = vmatmul.msk.bf16.gmra.mxu1 %vm828_vm0, %v5349_v19 }
  0xf8   : > { %v5357_v20 = vpop.f32.mrf.mxu1 }
  0xfc   : > { %4308 = vmatmul.msk.bf16.gmra.mxu0 %vm828_vm0, %v5361_v21 }
 0x100   : > { %v5365_v22 = vpop.f32.mrf.mxu1 }
 0x103   : > { %4395 = vmatmul.msk.bf16.vlgmr.msrb.gmra.mxu3 %vm828_vm0, %v5173_v36 }
 0x104   : > { %4388 = vmatmul.msk.bf16.vlgmr.msrb.gmra.mxu2 %vm828_vm0, %v5189_v39  ;;  %4409 = vmatmul.msk.bf16.vlgmr.msra.gmra.mxu1 %vm828_vm0, %v5369_v28 }
 0x105   : > { %1931 = vmatpush.bf16.msrb.mxu2 %v5162_v32  ;;  %2039 = vmatpush.bf16.msrb.mxu3 %v5123_v25 }
 0x106   : > { %2125 = vmatpush.bf16.msra.mxu1 %v5113_v23 }
 0x108   : > { %v967_v29 = vpop.f32.mrf.mxu1 }
 0x109   : > { %1932 = vmatpush.bf16.msrb.mxu2 %v5240_v56  ;;  %2040 = vmatpush.bf16.msrb.mxu3 %v5143_v30 }
 0x10a   : > { %2126 = vmatpush.bf16.msra.mxu1 %v5128_v26 }
 0x10c   : > { %4374 = vmatmul.msk.bf16.vlgmr.msrb.gmra.mxu0 %vm828_vm0, %v5145_v31 }
 0x10d   : > { %1784 = vmatpush.bf16.msrb.mxu0 %v5113_v23 }
 0x111   : > { %1785 = vmatpush.bf16.msrb.mxu0 %v5128_v26  ;;  %v5387_v33 = vpop.f32.mrf.mxu1 }
 0x113   : > { %4396 = vmatmul.msk.bf16.gmra.mxu3 %vm828_vm0, %v5201_v44 }
 0x114   : > { %4389 = vmatmul.msk.bf16.gmra.mxu2 %vm828_vm0, %v5185_v38  ;;  %4410 = vmatmul.msk.bf16.gmra.mxu1 %vm828_vm0, %v5389_v34 }
 0x116   : > { %v1138_v30 = vpop.f32.mrf.mxu3 }
 0x117   : > { %v1030_v25 = vpop.f32.mrf.mxu2 }
 0x119   : > { %v859_v39 = vpop.f32.mrf.mxu0  ;;  %v5398_v40 = vpop.f32.mrf.mxu1 }
 0x11a   : > { %v936_v23 = vadd.f32 %v5197_v43, %v859_v39 }
 0x11c   : > { %v1064_v26 = vadd.f32 %v1030_v25, %v936_v23  ;;  %4375 = vmatmul.msk.bf16.gmra.mxu0 %vm828_vm0, %v5166_v35 }
 0x11e   : > { %v5402_v41 = vadd.f32 %v1138_v30, %v1064_v26  ;;  %v1140_v46 = vpop.f32.mrf.mxu3 }
 0x11f   : > { %v1032_v38 = vpop.f32.mrf.mxu2 }
 0x121   : > { %v861_v47 = vpop.f32.mrf.mxu0  ;;  %v5405_v51 = vpop.f32.mrf.mxu1 }
 0x122   : > { %v938_v50 = vadd.f32 %v5215_v49, %v861_v47 }
 0x123   : > { %4397 = vmatmul.msk.bf16.gmra.mxu3 %vm828_vm0, %v5229_v54 }
 0x124   : > { %v1065_v7 = vadd.f32 %v1032_v38, %v938_v50  ;;  %4390 = vmatmul.msk.bf16.gmra.mxu2 %vm828_vm0, %v5252_v58  ;;  %4411 = vmatmul.msk.bf16.gmra.mxu1 %vm828_vm0, %v5407_v0  ;;  %v5427_v50 = vpop.permute.xlu0 %1555 }
 0x126   : > { %v5415_v43 = vadd.f32 %v1140_v46, %v1065_v7  ;;  %v1143_v29 = vpop.f32.mrf.mxu3 }
 0x127   : > { %v1035_v8 = vpop.f32.mrf.mxu2 }
 0x129   : > { %v864_v25 = vpop.f32.mrf.mxu0  ;;  %v5418_v30 = vpop.f32.mrf.mxu1 }
 0x12a   : > { %v941_v49 = vadd.f32 %v5225_v53, %v864_v25 }
 0x12c   : > { %v1066_v39 = vadd.f32 %v1035_v8, %v941_v49  ;;  %4376 = vmatmul.msk.bf16.gmra.mxu0 %vm828_vm0, %v5213_v48 }
 0x12e   : > { %v5422_v58 = vadd.f32 %v1143_v29, %v1066_v39  ;;  %v1145_v26 = vpop.f32.mrf.mxu3 }
 0x12f   : > { %v1037_v23 = vpop.f32.mrf.mxu2 }
 0x131   : > { %v866_v38 = vpop.f32.mrf.mxu0  ;;  %v5425_v46 = vpop.f32.mrf.mxu1 }
 0x132   : > { %v943_v47 = vadd.f32 %v5246_v57, %v866_v38 }
 0x133   : > { %4398 = vmatmul.msk.bf16.gmra.mxu3 %vm828_vm0, %v5262_v60 }
 0x134   : > { %v1067_v7 = vadd.f32 %v1037_v23, %v943_v47  ;;  %4391 = vmatmul.msk.bf16.gmra.mxu2 %vm828_vm0, %v5274_v63  ;;  %4412 = vmatmul.msk.bf16.gmra.mxu1 %vm828_vm0, %v5427_v50 }
 0x136   : > { %v5435_v53 = vadd.f32 %v1145_v26, %v1067_v7  ;;  %v1148_v29 = vpop.f32.mrf.mxu3  ;;  %v5447_v7 = vpop.permute.xlu1 %1557 }
 0x137   : > { %v1040_v8 = vpop.f32.mrf.mxu2  ;;  %6794 = vst [vmem:[#allocation13_spill] sm:$0xff] %v5447_v7 }
 0x139   : > { %v869_v25 = vpop.f32.mrf.mxu0  ;;  %v5438_v49 = vpop.f32.mrf.mxu1 }
 0x13a   : > { %v946_v57 = vadd.f32 %v5258_v59, %v869_v25 }
 0x13c   : > { %v1068_v39 = vadd.f32 %v1040_v8, %v946_v57  ;;  %4377 = vmatmul.msk.bf16.gmra.mxu0 %vm828_vm0, %v5195_v42 }
 0x13e   : > { %v5442_v63 = vadd.f32 %v1148_v29, %v1068_v39  ;;  %v1150_v38 = vpop.f32.mrf.mxu3 }
 0x13f   : > { %v1042_v23 = vpop.f32.mrf.mxu2 }
 0x141   : > { %v871_v47 = vpop.f32.mrf.mxu0  ;;  %v5445_v26 = vpop.f32.mrf.mxu1 }
 0x142   : > { %v948_v19 = vadd.f32 %v5272_v62, %v871_v47  ;;  %6793 = vst [vmem:[#allocation12_spill] sm:$0xff] %v5445_v26 }
 0x143   : > { %4399 = vmatmul.msk.bf16.gmra.mxu3 %vm828_vm0, %v5287_v5 }
 0x144   : > { %v1069_v14 = vadd.f32 %v1042_v23, %v948_v19  ;;  %4392 = vmatmul.msk.bf16.gmra.mxu2 %vm828_vm0, %v5309_v11  ;;  %4413 = vmatmul.msk.bf16.gmra.mxu1 %vm828_vm0, %v5447_v7 }
 0x146   : > { %v5455_v59 = vadd.f32 %v1150_v38, %v1069_v14  ;;  %v1153_v29 = vpop.f32.mrf.mxu3  ;;  %v5467_v38 = vpop.permute.xlu2 %1559 }
 0x147   : > { %v1045_v8 = vpop.f32.mrf.mxu2  ;;  %6796 = vst [vmem:[#allocation15_spill] sm:$0xff] %v5467_v38 }
 0x149   : > { %v874_v25 = vpop.f32.mrf.mxu0  ;;  %v5458_v57 = vpop.f32.mrf.mxu1 }
 0x14a   : > { %v951_v62 = vadd.f32 %v5281_v4, %v874_v25 }
 0x14c   : > { %v1070_v39 = vadd.f32 %v1045_v8, %v951_v62  ;;  %4378 = vmatmul.msk.bf16.gmra.mxu0 %vm828_vm0, %v5223_v52 }
 0x14e   : > { %v5462_v11 = vadd.f32 %v1153_v29, %v1070_v39  ;;  %v1155_v23 = vpop.f32.mrf.mxu3 }
 0x14f   : > { %v1047_v19 = vpop.f32.mrf.mxu2 }
 0x151   : > { %v876_v47 = vpop.f32.mrf.mxu0  ;;  %v5465_v14 = vpop.f32.mrf.mxu1 }
 0x152   : > { %v953_v26 = vadd.f32 %v5301_v10, %v876_v47  ;;  %6795 = vst [vmem:[#allocation14_spill] sm:$0xff] %v5465_v14 }
 0x153   : > { %4400 = vmatmul.msk.bf16.gmra.mxu3 %vm828_vm0, %v5321_v13 }
 0x154   : > { %v1071_v7 = vadd.f32 %v1047_v19, %v953_v26  ;;  %4393 = vmatmul.msk.bf16.gmra.mxu2 %vm828_vm0, %v5337_v16  ;;  %4414 = vmatmul.msk.bf16.gmra.mxu1 %vm828_vm0, %v5467_v38 }
 0x156   : > { %v5475_v4 = vadd.f32 %v1155_v23, %v1071_v7  ;;  %v1158_v29 = vpop.f32.mrf.mxu3  ;;  %v5487_v23 = vpop.permute.xlu0 %1561 }
 0x157   : > { %v1050_v8 = vpop.f32.mrf.mxu2 }
 0x159   : > { %v879_v25 = vpop.f32.mrf.mxu0  ;;  %v5478_v62 = vpop.f32.mrf.mxu1 }
 0x15a   : > { %v956_v10 = vadd.f32 %v5313_v12, %v879_v25 }
 0x15c   : > { %v1072_v39 = vadd.f32 %v1050_v8, %v956_v10  ;;  %4379 = vmatmul.msk.bf16.gmra.mxu0 %vm828_vm0, %v5299_v9 }
 0x15e   : > { %v5482_v16 = vadd.f32 %v1158_v29, %v1072_v39  ;;  %v1160_v19 = vpop.f32.mrf.mxu3 }
 0x15f   : > { %v1052_v26 = vpop.f32.mrf.mxu2 }
 0x161   : > { %v881_v47 = vpop.f32.mrf.mxu0  ;;  %v5485_v7 = vpop.f32.mrf.mxu1 }
 0x162   : > { %v958_v14 = vadd.f32 %v5331_v15, %v881_v47  ;;  %6797 = vst [vmem:[#allocation16_spill] sm:$0xff] %v5485_v7 }
 0x163   : > { %4401 = vmatmul.msk.bf16.gmra.mxu3 %vm828_vm0, %v5347_v18 }
 0x164   : > { %v1073_v38 = vadd.f32 %v1052_v26, %v958_v14  ;;  %4394 = vmatmul.msk.bf16.gmra.mxu2 %vm828_vm0, %v5361_v21  ;;  %4415 = vmatmul.msk.bf16.gmra.mxu1 %vm828_vm0, %v5487_v23 }
 0x166   : > { %v5495_v12 = vadd.f32 %v1160_v19, %v1073_v38  ;;  %v1163_v29 = vpop.f32.mrf.mxu3 }
 0x167   : > { %v1055_v8 = vpop.f32.mrf.mxu2 }
 0x169   : > { %v884_v25 = vpop.f32.mrf.mxu0  ;;  %v5498_v10 = vpop.f32.mrf.mxu1 }
 0x16a   : > { %v961_v15 = vadd.f32 %v5341_v17, %v884_v25 }
 0x16c   : > { %v1074_v39 = vadd.f32 %v1055_v8, %v961_v15  ;;  %4380 = vmatmul.msk.bf16.gmra.mxu0 %vm828_vm0, %v5279_v3 }
 0x16e   : > { %v5502_v21 = vadd.f32 %v1163_v29, %v1074_v39  ;;  %v1165_v26 = vpop.f32.mrf.mxu3 }
 0x16f   : > { %v1057_v14 = vpop.f32.mrf.mxu2 }
 0x171   : > { %v886_v47 = vpop.f32.mrf.mxu0  ;;  %v5505_v38 = vpop.f32.mrf.mxu1 }
 0x172   : > { %v963_v7 = vadd.f32 %v5357_v20, %v886_v47 }
 0x173   : > { %4423 = vmatmul.msk.bf16.vlgmr.msra.gmra.mxu3 %vm828_vm0, %v5175_v37 }
 0x174   : > { %v1075_v19 = vadd.f32 %v1057_v14, %v963_v7  ;;  %4416 = vmatmul.msk.bf16.vlgmr.msra.gmra.mxu2 %vm828_vm0, %v5173_v36  ;;  %4437 = vmatmul.msk.bf16.vlgmr.msrb.gmra.mxu1 %vm828_vm0, %v5369_v28 }
 0x175   : > { %2181 = vmatpush.bf16.msra.mxu2 %v5118_v24  ;;  %2272 = vmatpush.bf16.msra.mxu3 %v5162_v32 }
 0x176   : > { %v5514_v17 = vadd.f32 %v1165_v26, %v1075_v19  ;;  %v1168_v20 = vpop.f32.mrf.mxu3 }
 0x177   : > { %v1060_v8 = vpop.f32.mrf.mxu2 }
 0x179   : > { %v889_v29 = vpop.f32.mrf.mxu0  ;;  %2182 = vmatpush.bf16.msra.mxu2 %v5135_v27  ;;  %v1385_v25 = vpop.f32.mrf.mxu1  ;;  %2273 = vmatpush.bf16.msra.mxu3 %v5240_v56 }
 0x17a   : > { %v966_v7 = vadd.f32 %v5365_v22, %v889_v29 }
 0x17c   : > { %v1076_v37 = vadd.f32 %v1060_v8, %v966_v7  ;;  %4402 = vmatmul.msk.bf16.vlgmr.msra.gmra.mxu0 %vm828_vm0, %v5145_v31 }
 0x17d   : > { %2082 = vmatpush.bf16.msra.mxu0 %v5054_v1 }
 0x17e   : > { %v5523_v24 = vadd.f32 %v1168_v20, %v1076_v37  ;;  %v1170_v32 = vpop.f32.mrf.mxu3 }
 0x17f   : > { %v1062_v15 = vpop.f32.mrf.mxu2 }
 0x181   : > { %v891_v39 = vpop.f32.mrf.mxu0  ;;  %2083 = vmatpush.bf16.msra.mxu0 %v5060_v2  ;;  %v5526_v14 = vpop.f32.mrf.mxu1 }
 0x183   : > { %4424 = vmatmul.msk.bf16.gmra.mxu3 %vm828_vm0, %v5203_v45 }
 0x184   : > { %4417 = vmatmul.msk.bf16.gmra.mxu2 %vm828_vm0, %v5201_v44  ;;  %4438 = vmatmul.msk.bf16.gmra.mxu1 %vm828_vm0, %v5389_v34  ;;  %v5665_v44 = vpop.permute.xlu1 %1890 }
 0x186   : > { %v1439_v1 = vpop.f32.mrf.mxu3 }
 0x187   : > { %v1396_v27 = vpop.f32.mrf.mxu2 }
 0x188   : > { %v1397_v56 = vadd.f32 %v1396_v27, %v5387_v33 }
 0x189   : > { %v1252_v22 = vpop.f32.mrf.mxu0  ;;  %v5540_v47 = vpop.f32.mrf.mxu1 }
 0x18a   : > { %v5535_v26 = vadd.f32 %v1439_v1, %v1397_v56  ;;  %v5538_v2 = vadd.f32 %v1252_v22, %v5402_v41 }
 0x18c   : > { %4403 = vmatmul.msk.bf16.gmra.mxu0 %vm828_vm0, %v5166_v35 }
 0x18e   : > { %v1441_v45 = vpop.f32.mrf.mxu3 }
 0x18f   : > { %v1398_v19 = vpop.f32.mrf.mxu2 }
 0x190   : > { %v1399_v8 = vadd.f32 %v1398_v19, %v5398_v40 }
 0x191   : > { %v1254_v20 = vpop.f32.mrf.mxu0  ;;  %v5550_v7 = vpop.f32.mrf.mxu1 }
 0x192   : > { %v5545_v29 = vadd.f32 %v1441_v45, %v1399_v8  ;;  %v5548_v33 = vadd.f32 %v1254_v20, %v5415_v43 }
 0x193   : > { %4425 = vmatmul.msk.bf16.gmra.mxu3 %vm828_vm0, %v5231_v55 }
 0x194   : > { %4418 = vmatmul.msk.bf16.gmra.mxu2 %vm828_vm0, %v5229_v54  ;;  %4439 = vmatmul.msk.bf16.gmra.mxu1 %vm828_vm0, %v5407_v0 }
 0x196   : > { %v1444_v25 = vpop.f32.mrf.mxu3 }
 0x197   : > { %v1401_v41 = vpop.f32.mrf.mxu2 }
 0x198   : > { %v1402_v40 = vadd.f32 %v1401_v41, %v5405_v51 }
 0x199   : > { %v1257_v37 = vpop.f32.mrf.mxu0  ;;  %v5564_v32 = vpop.f32.mrf.mxu1 }
 0x19a   : > { %v5559_v15 = vadd.f32 %v1444_v25, %v1402_v40  ;;  %v5562_v43 = vadd.f32 %v1257_v37, %v5422_v58 }
 0x19c   : > { %4404 = vmatmul.msk.bf16.gmra.mxu0 %vm828_vm0, %v5213_v48 }
 0x19e   : > { %v1446_v55 = vpop.f32.mrf.mxu3 }
 0x19f   : > { %v1403_v39 = vpop.f32.mrf.mxu2 }
 0x1a0   : > { %v1404_v27 = vadd.f32 %v1403_v39, %v5418_v30 }
 0x1a1   : > { %v1259_v1 = vpop.f32.mrf.mxu0  ;;  %v5574_v22 = vpop.f32.mrf.mxu1 }
 0x1a2   : > { %v5569_v56 = vadd.f32 %v1446_v55, %v1404_v27  ;;  %v5572_v51 = vadd.f32 %v1259_v1, %v5435_v53 }
 0x1a3   : > { %4426 = vmatmul.msk.bf16.gmra.mxu3 %vm828_vm0, %v5264_v61 }
 0x1a4   : > { %4419 = vmatmul.msk.bf16.gmra.mxu2 %vm828_vm0, %v5262_v60  ;;  %4440 = vmatmul.msk.bf16.gmra.mxu1 %vm828_vm0, %v5427_v50 }
 0x1a6   : > { %v1449_v19 = vpop.f32.mrf.mxu3 }
 0x1a7   : > { %v1406_v58 = vpop.f32.mrf.mxu2 }
 0x1a8   : > { %v1407_v30 = vadd.f32 %v1406_v58, %v5425_v46 }
 0x1a9   : > { %v1262_v45 = vpop.f32.mrf.mxu0  ;;  %v5588_v20 = vpop.f32.mrf.mxu1 }
 0x1aa   : > { %v5583_v8 = vadd.f32 %v1449_v19, %v1407_v30  ;;  %v5586_v53 = vadd.f32 %v1262_v45, %v5442_v63  ;;  %v6798_v63 = vld [vmem:[#allocation13_spill] sm:$0xff] }
 0x1ac   : > { %4405 = vmatmul.msk.bf16.gmra.mxu0 %vm828_vm0, %v5195_v42 }
 0x1ae   : > { %v1451_v61 = vpop.f32.mrf.mxu3 }
 0x1af   : > { %v1408_v41 = vpop.f32.mrf.mxu2 }
 0x1b0   : > { %v1409_v25 = vadd.f32 %v1408_v41, %v5438_v49  ;;  %v6799_v49 = vld [vmem:[#allocation12_spill] sm:$0xff] }
 0x1b1   : > { %v1264_v40 = vpop.f32.mrf.mxu0  ;;  %v5598_v39 = vpop.f32.mrf.mxu1 }
 0x1b2   : > { %v5593_v37 = vadd.f32 %v1451_v61, %v1409_v25  ;;  %v5596_v46 = vadd.f32 %v1264_v40, %v5455_v59 }
 0x1b3   : > { %4427 = vmatmul.msk.bf16.gmra.mxu3 %vm828_vm0, %v5289_v6 }
 0x1b4   : > { %4420 = vmatmul.msk.bf16.gmra.mxu2 %vm828_vm0, %v5287_v5  ;;  %4441 = vmatmul.msk.bf16.gmra.mxu1 %vm828_vm0, %v6798_v63 }
 0x1b6   : > { %v1454_v27 = vpop.f32.mrf.mxu3 }
 0x1b7   : > { %v1411_v55 = vpop.f32.mrf.mxu2 }
 0x1b8   : > { %v1412_v1 = vadd.f32 %v1411_v55, %v6799_v49 }
 0x1b9   : > { %v1267_v58 = vpop.f32.mrf.mxu0  ;;  %v5612_v30 = vpop.f32.mrf.mxu1 }
 0x1ba   : > { %v5607_v19 = vadd.f32 %v1454_v27, %v1412_v1  ;;  %v5610_v59 = vadd.f32 %v1267_v58, %v5462_v11  ;;  %v6800_v11 = vld [vmem:[#allocation9_spill] sm:$0xff]  ;;  %v6801_v27 = vld [vmem:[#allocation15_spill] sm:$0xff] }
 0x1bc   : > { %4406 = vmatmul.msk.bf16.gmra.mxu0 %vm828_vm0, %v5223_v52 }
 0x1be   : > { %v1456_v6 = vpop.f32.mrf.mxu3 }
 0x1bf   : > { %v1413_v45 = vpop.f32.mrf.mxu2 }
 0x1c0   : > { %v1414_v41 = vadd.f32 %v1413_v45, %v5458_v57  ;;  %v6802_v57 = vld [vmem:[#allocation14_spill] sm:$0xff] }
 0x1c1   : > { %v1269_v61 = vpop.f32.mrf.mxu0  ;;  %v5622_v55 = vpop.f32.mrf.mxu1 }
 0x1c2   : > { %v5617_v25 = vadd.f32 %v1456_v6, %v1414_v41  ;;  %v5620_v40 = vadd.f32 %v1269_v61, %v5475_v4 }
 0x1c3   : > { %4428 = vmatmul.msk.bf16.gmra.mxu3 %vm828_vm0, %v6800_v11 }
 0x1c4   : > { %4421 = vmatmul.msk.bf16.gmra.mxu2 %vm828_vm0, %v5321_v13  ;;  %4442 = vmatmul.msk.bf16.gmra.mxu1 %vm828_vm0, %v6801_v27 }
 0x1c6   : > { %v1459_v1 = vpop.f32.mrf.mxu3 }
 0x1c7   : > { %v1416_v49 = vpop.f32.mrf.mxu2 }
 0x1c8   : > { %v1417_v58 = vadd.f32 %v1416_v49, %v6802_v57 }
 0x1c9   : > { %v1272_v45 = vpop.f32.mrf.mxu0  ;;  %v5636_v41 = vpop.f32.mrf.mxu1 }
 0x1ca   : > { %v5631_v6 = vadd.f32 %v1459_v1, %v1417_v58  ;;  %v5634_v4 = vadd.f32 %v1272_v45, %v5482_v16  ;;  %v6803_v16 = vld [vmem:[#allocation11_spill] sm:$0xff] }
 0x1cc   : > { %4407 = vmatmul.msk.bf16.gmra.mxu0 %vm828_vm0, %v5299_v9 }
 0x1ce   : > { %v1461_v11 = vpop.f32.mrf.mxu3 }
 0x1cf   : > { %v1418_v61 = vpop.f32.mrf.mxu2 }
 0x1d0   : > { %v1419_v13 = vadd.f32 %v1418_v61, %v5478_v62  ;;  %v6804_v62 = vld [vmem:[#allocation16_spill] sm:$0xff] }
 0x1d1   : > { %v1274_v5 = vpop.f32.mrf.mxu0  ;;  %v5646_v1 = vpop.f32.mrf.mxu1 }
 0x1d2   : > { %v5641_v60 = vadd.f32 %v1461_v11, %v1419_v13  ;;  %v5644_v49 = vadd.f32 %v1274_v5, %v5495_v12 }
 0x1d3   : > { %4429 = vmatmul.msk.bf16.gmra.mxu3 %vm828_vm0, %v6803_v16 }
 0x1d4   : > { %4422 = vmatmul.msk.bf16.gmra.mxu2 %vm828_vm0, %v5347_v18  ;;  %4443 = vmatmul.msk.bf16.gmra.mxu1 %vm828_vm0, %v5487_v23 }
 0x1d6   : > { %v1464_v58 = vpop.f32.mrf.mxu3 }
 0x1d7   : > { %v1421_v57 = vpop.f32.mrf.mxu2 }
 0x1d8   : > { %v1422_v45 = vadd.f32 %v1421_v57, %v6804_v62 }
 0x1d9   : > { %v1277_v13 = vpop.f32.mrf.mxu0  ;;  %v5660_v12 = vpop.f32.mrf.mxu1 }
 0x1da   : > { %v5655_v61 = vadd.f32 %v1464_v58, %v1422_v45  ;;  %v5658_v5 = vadd.f32 %v1277_v13, %v5502_v21 }
 0x1dc   : > { %4408 = vmatmul.msk.bf16.gmra.mxu0 %vm828_vm0, %v5279_v3 }
 0x1de   : > { %v1466_v16 = vpop.f32.mrf.mxu3 }
 0x1df   : > { %v1423_v11 = vpop.f32.mrf.mxu2 }
 0x1e0   : > { %v1424_v18 = vadd.f32 %v1423_v11, %v5498_v10 }
 0x1e1   : > { %v1279_v54 = vpop.f32.mrf.mxu0  ;;  %v5672_v58 = vpop.f32.mrf.mxu1 }
 0x1e2   : > { %v5667_v36 = vadd.f32 %v1466_v16, %v1424_v18  ;;  %v5670_v57 = vadd.f32 %v1279_v54, %v5514_v17  ;;  %6805 = vst [vmem:[#allocation13_spill] sm:$0xff] %v5672_v58  ;;  %v5688_v58 = vpop.permute.xlu2 %1892 }
 0x1e3   : > { %4451 = vmatmul.msk.bf16.vlgmr.msrb.gmra.mxu3 %vm828_vm0, %v5145_v31  ;;  %6806 = vst [vmem:[#allocation12_spill] sm:$0xff] %v5688_v58 }
 0x1e4   : > { %4444 = vmatmul.msk.bf16.vlgmr.msrb.gmra.mxu2 %vm828_vm0, %v5665_v44  ;;  %4465 = vmatmul.msk.bf16.vlgmr.msra.gmra.mxu1 %vm828_vm0, %v5369_v28 }
 0x1e6   : > { %v1469_v21 = vpop.f32.mrf.mxu3 }
 0x1e7   : > { %v1426_v10 = vpop.f32.mrf.mxu2 }
 0x1e8   : > { %v1427_v62 = vadd.f32 %v1426_v10, %v5505_v38 }
 0x1e9   : > { %v1282_v18 = vpop.f32.mrf.mxu0  ;;  %v1625_v17 = vpop.f32.mrf.mxu1 }
 0x1ea   : > { %v5681_v45 = vadd.f32 %v1469_v21, %v1427_v62  ;;  %v5684_v54 = vadd.f32 %v1282_v18, %v5523_v24  ;;  %v5710_v18 = vld [vmem:[%s6810_s28] ss:$0 sm:$0xff] }
 0x1ec   : > { %4430 = vmatmul.msk.bf16.vlgmr.msrb.gmra.mxu0 %vm828_vm0, %v5145_v31  ;;  %v5701_v31 = vld [vmem:[%s6808_s0] ss:$0 sm:$0xff] }
 0x1ed   : > { %v1302_v62 = vmul.f32 %v5701_v31, %v5538_v2 }
 0x1ee   : > { %v1471_v11 = vpop.f32.mrf.mxu3 }
 0x1ef   : > { %v1428_v13 = vpop.f32.mrf.mxu2  ;;  %v1318_v11 = vadd.f32 %v5710_v18, %v1302_v62 }
 0x1f1   : > { %v1284_v16 = vpop.f32.mrf.mxu0  ;;  %v5690_v28 = vpop.f32.mrf.mxu1 }
 0x1f2   : > { %6807 = vst [vmem:[#allocation9_spill] sm:$0xff] %v5690_v28 }
 0x1f3   : > { %4452 = vmatmul.msk.bf16.gmra.mxu3 %vm828_vm0, %v5166_v35 }
 0x1f4   : > { %4445 = vmatmul.msk.bf16.gmra.mxu2 %vm828_vm0, %v5688_v58  ;;  %4466 = vmatmul.msk.bf16.gmra.mxu1 %vm828_vm0, %v5389_v34  ;;  %v5723_v58 = vpop.permute.xlu0 %1894 }
 0x1f6   : > { %v1744_v24 = vpop.f32.mrf.mxu3 }
 0x1f7   : > { %v1701_v38 = vpop.f32.mrf.mxu2 }
 0x1f8   : > { %v5703_v10 = vadd.f32 %v1744_v24, %v1701_v38 }
 0x1f9   : > { %v1495_v21 = vpop.f32.mrf.mxu0  ;;  %v5713_v17 = vpop.f32.mrf.mxu1 }
 0x1fa   : > { %6809 = vst [vmem:[#allocation15_spill] sm:$0xff] %v5703_v10  ;;  %v1529_v34 = vadd.f32 %v1495_v21, %v5535_v26  ;;  %v1331_v26 = vmax.f32 %v1318_v11, 0.0 }
 0x1fc   : > { %v1627_v13 = vadd.f32 %v5526_v14, %v1529_v34  ;;  %4431 = vmatmul.msk.bf16.gmra.mxu0 %vm828_vm0, %v5166_v35  ;;  %v1303_v14 = vmul.f32 %v5701_v31, %v5548_v33 }
 0x1fe   : > { %v1640_v16 = vmul.f32 %v5701_v31, %v1627_v13  ;;  %v1746_v2 = vpop.f32.mrf.mxu3  ;;  %v1319_v33 = vadd.f32 %v5710_v18, %v1303_v14 }
 0x1ff   : > { %v1703_v38 = vpop.f32.mrf.mxu2 }
 0x200   : > { %v1653_v24 = vadd.f32 %v5710_v18, %v1640_v16  ;;  %v5721_v28 = vadd.f32 %v1746_v2, %v1703_v38  ;;  %v1332_v2 = vmax.f32 %v1319_v33, 0.0 }
 0x201   : > { %v1497_v10 = vpop.f32.mrf.mxu0  ;;  %v5728_v34 = vpop.f32.mrf.mxu1 }
 0x202   : > { %v1666_v21 = vmax.f32 %v1653_v24, 0.0  ;;  %v1530_v35 = vadd.f32 %v1497_v10, %v5545_v29  ;;  %v1304_v24 = vmul.f32 %v5701_v31, %v5562_v43 }
 0x203   : > { %4453 = vmatmul.msk.bf16.gmra.mxu3 %vm828_vm0, %v5213_v48 }
 0x204   : > { %v5730_v62 = vmax.f32 %v1331_v26, %v1666_v21  ;;  %v1628_v13 = vadd.f32 %v5540_v47, %v1530_v35  ;;  %4446 = vmatmul.msk.bf16.gmra.mxu2 %vm828_vm0, %v5723_v58  ;;  %4467 = vmatmul.msk.bf16.gmra.mxu1 %vm828_vm0, %v5407_v0 }
 0x206   : > { %v1641_v11 = vmul.f32 %v5701_v31, %v1628_v13  ;;  %v1749_v10 = vpop.f32.mrf.mxu3  ;;  %v1320_v13 = vadd.f32 %v5710_v18, %v1304_v24 }
 0x207   : > { %v1706_v29 = vpop.f32.mrf.mxu2 }
 0x208   : > { %v1654_v16 = vadd.f32 %v5710_v18, %v1641_v11  ;;  %v5742_v38 = vadd.f32 %v1749_v10, %v1706_v29 }
 0x209   : > { %v1500_v47 = vpop.f32.mrf.mxu0  ;;  %v5747_v35 = vpop.f32.mrf.mxu1 }
 0x20a   : > { %v1667_v26 = vmax.f32 %v1654_v16, 0.0  ;;  %v1531_v21 = vadd.f32 %v1500_v47, %v5559_v15  ;;  %v5759_v16 = vpop.permute.xlu1 %1896  ;;  %v1333_v47 = vmax.f32 %v1320_v13, 0.0 }
 0x20c   : > { %v5749_v0 = vmax.f32 %v1332_v2, %v1667_v26  ;;  %v1629_v14 = vadd.f32 %v5550_v7, %v1531_v21  ;;  %4432 = vmatmul.msk.bf16.gmra.mxu0 %vm828_vm0, %v5213_v48  ;;  %v1305_v7 = vmul.f32 %v5701_v31, %v5572_v51 }
 0x20e   : > { %v1642_v11 = vmul.f32 %v5701_v31, %v1629_v14  ;;  %v1751_v29 = vpop.f32.mrf.mxu3  ;;  %v1321_v51 = vadd.f32 %v5710_v18, %v1305_v7 }
 0x20f   : > { %v1708_v33 = vpop.f32.mrf.mxu2 }
 0x210   : > { %v1655_v43 = vadd.f32 %v5710_v18, %v1642_v11  ;;  %v5757_v10 = vadd.f32 %v1751_v29, %v1708_v33  ;;  %v1334_v29 = vmax.f32 %v1321_v51, 0.0 }
 0x211   : > { %v1502_v15 = vpop.f32.mrf.mxu0  ;;  %v5764_v26 = vpop.f32.mrf.mxu1 }
 0x212   : > { %v1668_v2 = vmax.f32 %v1655_v43, 0.0  ;;  %v1532_v48 = vadd.f32 %v1502_v15, %v5569_v56  ;;  %v1306_v43 = vmul.f32 %v5701_v31, %v5586_v53 }
 0x213   : > { %4454 = vmatmul.msk.bf16.gmra.mxu3 %vm828_vm0, %v5195_v42 }
 0x214   : > { %v5766_v24 = vmax.f32 %v1333_v47, %v1668_v2  ;;  %v1630_v21 = vadd.f32 %v5564_v32, %v1532_v48  ;;  %4447 = vmatmul.msk.bf16.gmra.mxu2 %vm828_vm0, %v5759_v16  ;;  %4468 = vmatmul.msk.bf16.gmra.mxu1 %vm828_vm0, %v5427_v50  ;;  %v1322_v48 = vadd.f32 %v5710_v18, %v1306_v43 }
 0x216   : > { %v1643_v14 = vmul.f32 %v5701_v31, %v1630_v21  ;;  %v1754_v13 = vpop.f32.mrf.mxu3 }
 0x217   : > { %v1711_v56 = vpop.f32.mrf.mxu2 }
 0x218   : > { %v1656_v11 = vadd.f32 %v5710_v18, %v1643_v14  ;;  %v5778_v33 = vadd.f32 %v1754_v13, %v1711_v56  ;;  %v5795_v13 = vpop.permute.xlu2 %1898 }
 0x219   : > { %v1505_v32 = vpop.f32.mrf.mxu0  ;;  %v5783_v2 = vpop.f32.mrf.mxu1 }
 0x21a   : > { %v1669_v15 = vmax.f32 %v1656_v11, 0.0  ;;  %v1533_v47 = vadd.f32 %v1505_v32, %v5583_v8  ;;  %v1335_v11 = vmax.f32 %v1322_v48, 0.0 }
 0x21c   : > { %v5785_v50 = vmax.f32 %v1334_v29, %v1669_v15  ;;  %v1631_v7 = vadd.f32 %v5574_v22, %v1533_v47  ;;  %4433 = vmatmul.msk.bf16.gmra.mxu0 %vm828_vm0, %v5195_v42  ;;  %v1307_v22 = vmul.f32 %v5701_v31, %v5596_v46 }
 0x21e   : > { %v1644_v21 = vmul.f32 %v5701_v31, %v1631_v7  ;;  %v1756_v14 = vpop.f32.mrf.mxu3  ;;  %v1323_v46 = vadd.f32 %v5710_v18, %v1307_v22 }
 0x21f   : > { %v1713_v51 = vpop.f32.mrf.mxu2 }
 0x220   : > { %v1657_v53 = vadd.f32 %v5710_v18, %v1644_v21  ;;  %v5793_v56 = vadd.f32 %v1756_v14, %v1713_v51  ;;  %v1336_v51 = vmax.f32 %v1323_v46, 0.0  ;;  %v1308_v14 = vmul.f32 %v5701_v31, %v5610_v59 }
 0x221   : > { %v1507_v8 = vpop.f32.mrf.mxu0  ;;  %v5800_v29 = vpop.f32.mrf.mxu1 }
 0x222   : > { %v1670_v32 = vmax.f32 %v1657_v53, 0.0  ;;  %v1534_v42 = vadd.f32 %v1507_v8, %v5593_v37 }
 0x223   : > { %4455 = vmatmul.msk.bf16.gmra.mxu3 %vm828_vm0, %v5223_v52 }
 0x224   : > { %v5802_v43 = vmax.f32 %v1335_v11, %v1670_v32  ;;  %v1632_v15 = vadd.f32 %v5588_v20, %v1534_v42  ;;  %4448 = vmatmul.msk.bf16.gmra.mxu2 %vm828_vm0, %v5795_v13  ;;  %4469 = vmatmul.msk.bf16.gmra.mxu1 %vm828_vm0, %v6798_v63  ;;  %v1324_v32 = vadd.f32 %v5710_v18, %v1308_v14 }
 0x226   : > { %v1645_v47 = vmul.f32 %v5701_v31, %v1632_v15  ;;  %v1759_v7 = vpop.f32.mrf.mxu3 }
 0x227   : > { %v1716_v37 = vpop.f32.mrf.mxu2 }
 0x228   : > { %v1658_v48 = vadd.f32 %v5710_v18, %v1645_v47  ;;  %v5814_v21 = vadd.f32 %v1759_v7, %v1716_v37  ;;  %v5831_v37 = vpop.permute.xlu0 %1900  ;;  %v1337_v7 = vmax.f32 %v1324_v32, 0.0 }
 0x229   : > { %v1510_v20 = vpop.f32.mrf.mxu0  ;;  %v5819_v11 = vpop.f32.mrf.mxu1 }
 0x22a   : > { %v1671_v53 = vmax.f32 %v1658_v48, 0.0  ;;  %v1535_v8 = vadd.f32 %v1510_v20, %v5607_v19 }
 0x22c   : > { %v5821_v63 = vmax.f32 %v1336_v51, %v1671_v53  ;;  %v1633_v22 = vadd.f32 %v5598_v39, %v1535_v8  ;;  %4434 = vmatmul.msk.bf16.gmra.mxu0 %vm828_vm0, %v5223_v52  ;;  %v1309_v39 = vmul.f32 %v5701_v31, %v5620_v40 }
 0x22e   : > { %v1646_v42 = vmul.f32 %v5701_v31, %v1633_v22  ;;  %v1761_v46 = vpop.f32.mrf.mxu3  ;;  %v1325_v40 = vadd.f32 %v5710_v18, %v1309_v39 }
 0x22f   : > { %v1718_v15 = vpop.f32.mrf.mxu2 }
 0x230   : > { %v1659_v59 = vadd.f32 %v5710_v18, %v1646_v42  ;;  %v5829_v47 = vadd.f32 %v1761_v46, %v1718_v15  ;;  %v1338_v42 = vmax.f32 %v1325_v40, 0.0  ;;  %v1310_v15 = vmul.f32 %v5701_v31, %v5634_v4 }
 0x231   : > { %v1512_v19 = vpop.f32.mrf.mxu0  ;;  %v5836_v20 = vpop.f32.mrf.mxu1 }
 0x232   : > { %v1672_v48 = vmax.f32 %v1659_v59, 0.0  ;;  %v1536_v52 = vadd.f32 %v1512_v19, %v5617_v25  ;;  %v1326_v39 = vadd.f32 %v5710_v18, %v1310_v15 }
 0x233   : > { %4456 = vmatmul.msk.bf16.gmra.mxu3 %vm828_vm0, %v5299_v9 }
 0x234   : > { %v5838_v51 = vmax.f32 %v1337_v7, %v1672_v48  ;;  %v1634_v14 = vadd.f32 %v5612_v30, %v1536_v52  ;;  %4449 = vmatmul.msk.bf16.gmra.mxu2 %vm828_vm0, %v5831_v37  ;;  %4470 = vmatmul.msk.bf16.gmra.mxu1 %vm828_vm0, %v6801_v27 }
 0x236   : > { %v1647_v53 = vmul.f32 %v5701_v31, %v1634_v14  ;;  %v1764_v8 = vpop.f32.mrf.mxu3 }
 0x237   : > { %v1721_v25 = vpop.f32.mrf.mxu2 }
 0x238   : > { %v1660_v22 = vadd.f32 %v5710_v18, %v1647_v53  ;;  %v5850_v32 = vadd.f32 %v1764_v8, %v1721_v25  ;;  %v5867_v53 = vpop.permute.xlu1 %1902  ;;  %v1339_v25 = vmax.f32 %v1326_v39, 0.0 }
 0x239   : > { %v1515_v30 = vpop.f32.mrf.mxu0  ;;  %v5855_v19 = vpop.f32.mrf.mxu1 }
 0x23a   : > { %v1673_v46 = vmax.f32 %v1660_v22, 0.0  ;;  %v1537_v59 = vadd.f32 %v1515_v30, %v5631_v6 }
 0x23c   : > { %v5857_v27 = vmax.f32 %v1338_v42, %v1673_v46  ;;  %v1635_v7 = vadd.f32 %v5622_v55, %v1537_v59  ;;  %4435 = vmatmul.msk.bf16.gmra.mxu0 %vm828_vm0, %v5299_v9  ;;  %v1311_v55 = vmul.f32 %v5701_v31, %v5644_v49 }
 0x23e   : > { %v1648_v48 = vmul.f32 %v5701_v31, %v1635_v7  ;;  %v1766_v14 = vpop.f32.mrf.mxu3  ;;  %v1327_v49 = vadd.f32 %v5710_v18, %v1311_v55 }
 0x23f   : > { %v1723_v52 = vpop.f32.mrf.mxu2 }
 0x240   : > { %v1661_v4 = vadd.f32 %v5710_v18, %v1648_v48  ;;  %v5865_v40 = vadd.f32 %v1766_v14, %v1723_v52  ;;  %v1340_v39 = vmax.f32 %v1327_v49, 0.0  ;;  %v1312_v48 = vmul.f32 %v5701_v31, %v5658_v5  ;;  %v2232_v49 = vpop.permute.xlu2 %2231 }
 0x241   : > { %v1517_v6 = vpop.f32.mrf.mxu0  ;;  %v5872_v22 = vpop.f32.mrf.mxu1 }
 0x242   : > { %v1674_v8 = vmax.f32 %v1661_v4, 0.0  ;;  %v1538_v9 = vadd.f32 %v1517_v6, %v5641_v60 }
 0x243   : > { %4457 = vmatmul.msk.bf16.gmra.mxu3 %vm828_vm0, %v5279_v3 }
 0x244   : > { %v5874_v30 = vmax.f32 %v1339_v25, %v1674_v8  ;;  %v1636_v42 = vadd.f32 %v5636_v41, %v1538_v9  ;;  %4450 = vmatmul.msk.bf16.gmra.mxu2 %vm828_vm0, %v5867_v53  ;;  %4471 = vmatmul.msk.bf16.gmra.mxu1 %vm828_vm0, %v5487_v23  ;;  %v1328_v25 = vadd.f32 %v5710_v18, %v1312_v48 }
 0x246   : > { %v1649_v15 = vmul.f32 %v5701_v31, %v1636_v42  ;;  %v1769_v46 = vpop.f32.mrf.mxu3 }
 0x247   : > { %v1726_v60 = vpop.f32.mrf.mxu2 }
 0x248   : > { %v1662_v59 = vadd.f32 %v5710_v18, %v1649_v15  ;;  %v5886_v7 = vadd.f32 %v1769_v46, %v1726_v60  ;;  %v1341_v15 = vmax.f32 %v1328_v25, 0.0  ;;  %v1313_v60 = vmul.f32 %v5701_v31, %v5670_v57 }
 0x249   : > { %v1520_v41 = vpop.f32.mrf.mxu0  ;;  %v5891_v4 = vpop.f32.mrf.mxu1 }
 0x24a   : > { %v1675_v52 = vmax.f32 %v1662_v59, 0.0  ;;  %v1539_v14 = vadd.f32 %v1520_v41, %v5655_v61 }
 0x24c   : > { %v5893_v23 = vmax.f32 %v1340_v39, %v1675_v52  ;;  %v1637_v6 = vadd.f32 %v5646_v1, %v1539_v14  ;;  %4436 = vmatmul.msk.bf16.gmra.mxu0 %vm828_vm0, %v5279_v3  ;;  %v1329_v39 = vadd.f32 %v5710_v18, %v1313_v60 }
 0x24e   : > { %v1650_v55 = vmul.f32 %v5701_v31, %v1637_v6  ;;  %v1771_v9 = vpop.f32.mrf.mxu3  ;;  %v1342_v25 = vmax.f32 %v1329_v39, 0.0  ;;  %v2234_v39 = vpop.permute.xlu0 %2233 }
 0x24f   : > { %v1728_v8 = vpop.f32.mrf.mxu2 }
 0x250   : > { %v1663_v5 = vadd.f32 %v5710_v18, %v1650_v55  ;;  %v5901_v42 = vadd.f32 %v1771_v9, %v1728_v8 }
 0x251   : > { %v1522_v61 = vpop.f32.mrf.mxu0  ;;  %v5906_v3 = vpop.f32.mrf.mxu1 }
 0x252   : > { %v1676_v1 = vmax.f32 %v1663_v5, 0.0  ;;  %v1540_v46 = vadd.f32 %v1522_v61, %v5667_v36  ;;  %v6811_v5 = vld [vmem:[#allocation13_spill] sm:$0xff] }
 0x253   : > { %4479 = vmatmul.msk.bf16.vlgmr.msra.gmra.mxu3 %vm828_vm0, %v2232_v49  ;;  %v6812_v49 = vld [vmem:[#allocation3_spill] sm:$0xff] }
 0x254   : > { %v5908_v59 = vmax.f32 %v1341_v15, %v1676_v1  ;;  %v1638_v41 = vadd.f32 %v5660_v12, %v1540_v46  ;;  %4472 = vmatmul.msk.bf16.vlgmr.msra.gmra.mxu2 %vm828_vm0, %v5665_v44  ;;  %v1314_v12 = vmul.f32 %v5701_v31, %v5684_v54 }
 0x256   : > { %v1651_v48 = vmul.f32 %v5701_v31, %v1638_v41  ;;  %v1774_v57 = vpop.f32.mrf.mxu3  ;;  %v1330_v15 = vadd.f32 %v5710_v18, %v1314_v12 }
 0x257   : > { %v1731_v52 = vpop.f32.mrf.mxu2 }
 0x258   : > { %v1664_v14 = vadd.f32 %v5710_v18, %v1651_v48  ;;  %v5917_v36 = vadd.f32 %v1774_v57, %v1731_v52  ;;  %v1343_v48 = vmax.f32 %v1330_v15, 0.0 }
 0x259   : > { %v1525_v6 = vpop.f32.mrf.mxu0  ;;  %v1875_v8 = vpop.f32.mrf.mxu1 }
 0x25a   : > { %v1677_v55 = vmax.f32 %v1664_v14, 0.0  ;;  %v1541_v44 = vadd.f32 %v1525_v6, %v5681_v45  ;;  %v6813_v14 = vld [vmem:[#allocation12_spill] sm:$0xff] }
 0x25c   : > { %v5922_v9 = vmax.f32 %v1342_v25, %v1677_v55  ;;  %v1639_v61 = vadd.f32 %v6811_v5, %v1541_v44  ;;  %4458 = vmatmul.msk.bf16.vlgmr.msra.gmra.mxu0 %vm828_vm0, %v6812_v49  ;;  %v6814_v55 = vld [vmem:[#allocation15_spill] sm:$0xff]  ;;  %v6815_v5 = vld [vmem:[#allocation9_spill] sm:$0xff]  ;;  %v6816_v49 = vld [vmem:[#allocation4_spill] sm:$0xff] }
 0x25e   : > { %v1652_v60 = vmul.f32 %v5701_v31, %v1639_v61  ;;  %v1776_v46 = vpop.f32.mrf.mxu3 }
 0x25f   : > { %v1733_v1 = vpop.f32.mrf.mxu2 }
 0x260   : > { %v1665_v41 = vadd.f32 %v5710_v18, %v1652_v60 }
 0x261   : > { %v1527_v54 = vpop.f32.mrf.mxu0  ;;  %v5930_v52 = vpop.f32.mrf.mxu1 }
 0x262   : > { %v1678_v45 = vmax.f32 %v1665_v41, 0.0  ;;  %v2236_v54 = vpop.permute.xlu1 %2235 }
 0x263   : > { %4480 = vmatmul.msk.bf16.gmra.mxu3 %vm828_vm0, %v2234_v39 }
 0x264   : > { %v5932_v57 = vmax.f32 %v1343_v48, %v1678_v45  ;;  %4473 = vmatmul.msk.bf16.gmra.mxu2 %vm828_vm0, %v6813_v14 }
 0x266   : > { %v5937_v25 = vpop.f32.mrf.mxu3 }
 0x267   : > { %v1934_v6 = vpop.f32.mrf.mxu2 }
 0x269   : > { %v1787_v12 = vpop.f32.mrf.mxu0  ;;  %v5940_v8 = vpop.f32.mrf.mxu1 }
 0x26a   : > { %v1821_v44 = vadd.f32 %v1787_v12, %v6814_v55 }
 0x26c   : > { %v1877_v61 = vadd.f32 %v6815_v5, %v1821_v44  ;;  %4459 = vmatmul.msk.bf16.gmra.mxu0 %vm828_vm0, %v6816_v49 }
 0x26e   : > { %v1968_v15 = vadd.f32 %v1934_v6, %v1877_v61  ;;  %v5945_v1 = vpop.f32.mrf.mxu3 }
 0x26f   : > { %v1936_v60 = vpop.f32.mrf.mxu2 }
 0x270   : > { %v1981_v46 = vmul.f32 %v5701_v31, %v1968_v15 }
 0x271   : > { %v1789_v41 = vpop.f32.mrf.mxu0  ;;  %v5950_v45 = vpop.f32.mrf.mxu1 }
 0x272   : > { %v1994_v39 = vadd.f32 %v5710_v18, %v1981_v46  ;;  %v1822_v48 = vadd.f32 %v1789_v41, %v5721_v28  ;;  %v6817_v41 = vld [vmem:[#allocation5_spill] sm:$0xff] }
 0x273   : > { %4481 = vmatmul.msk.bf16.gmra.mxu3 %vm828_vm0, %v2236_v54 }
 0x274   : > { %v2007_v14 = vmax.f32 %v1994_v39, 0.0  ;;  %v1878_v12 = vadd.f32 %v5713_v17, %v1822_v48  ;;  %4474 = vmatmul.msk.bf16.gmra.mxu2 %vm828_vm0, %v5723_v58 }
 0x276   : > { %v5957_v6 = vmax.f32 %v5730_v62, %v2007_v14  ;;  %v1969_v55 = vadd.f32 %v1936_v60, %v1878_v12  ;;  %v5959_v5 = vpop.f32.mrf.mxu3  ;;  %v2238_v12 = vpop.permute.xlu2 %2237 }
 0x277   : > { %v1939_v44 = vpop.f32.mrf.mxu2 }
 0x278   : > { %v1982_v61 = vmul.f32 %v5701_v31, %v1969_v55 }
 0x279   : > { %v1792_v28 = vpop.f32.mrf.mxu0  ;;  %v5964_v17 = vpop.f32.mrf.mxu1 }
 0x27a   : > { %v1995_v49 = vadd.f32 %v5710_v18, %v1982_v61  ;;  %v1823_v15 = vadd.f32 %v1792_v28, %v5742_v38 }
 0x27c   : > { %v2008_v46 = vmax.f32 %v1995_v49, 0.0  ;;  %v1879_v58 = vadd.f32 %v5728_v34, %v1823_v15  ;;  %4460 = vmatmul.msk.bf16.gmra.mxu0 %vm828_vm0, %v6817_v41 }
 0x27e   : > { %v5970_v62 = vmax.f32 %v5749_v0, %v2008_v46  ;;  %v1970_v60 = vadd.f32 %v1939_v44, %v1879_v58  ;;  %v5972_v39 = vpop.f32.mrf.mxu3 }
 0x27f   : > { %v1941_v54 = vpop.f32.mrf.mxu2 }
 0x280   : > { %v1983_v48 = vmul.f32 %v5701_v31, %v1970_v60 }
 0x281   : > { %v1794_v14 = vpop.f32.mrf.mxu0  ;;  %v5977_v61 = vpop.f32.mrf.mxu1 }
 0x282   : > { %v1996_v38 = vadd.f32 %v5710_v18, %v1983_v48  ;;  %v1824_v55 = vadd.f32 %v1794_v14, %v5757_v10  ;;  %v6818_v48 = vld [vmem:[#allocation6_spill] sm:$0xff]  ;;  %v4826_v14 = vld [vmem:[%s6819_s3 + $0x28] sm:$0xff] }
 0x283   : > { %4482 = vmatmul.msk.bf16.gmra.mxu3 %vm828_vm0, %v2238_v12  ;;  %v4822_v12 = vld [vmem:[%s6819_s3 + $0x8] sm:$0xff]  ;;  %2752 = vmatpush.bf16.msrb.mxu2 %v4826_v14 }
 0x284   : > { %v2009_v34 = vmax.f32 %v1996_v38, 0.0  ;;  %v1880_v28 = vadd.f32 %v5747_v35, %v1824_v55  ;;  %4475 = vmatmul.msk.bf16.gmra.mxu2 %vm828_vm0, %v5759_v16  ;;  %2647 = vmatpush.bf16.msrb.mxu1 %v4822_v12  ;;  %v6820_v12 = vld [vmem:[#allocation7_spill] sm:$0xff] }
 0x286   : > { %v5984_v0 = vmax.f32 %v5766_v24, %v2009_v34  ;;  %v1971_v44 = vadd.f32 %v1941_v54, %v1880_v28  ;;  %v5986_v15 = vpop.f32.mrf.mxu3  ;;  %v2240_v34 = vpop.permute.xlu0 %2239 }
 0x287   : > { %v1944_v49 = vpop.f32.mrf.mxu2 }
 0x288   : > { %v1984_v46 = vmul.f32 %v5701_v31, %v1971_v44 }
 0x289   : > { %v1797_v10 = vpop.f32.mrf.mxu0  ;;  %v5991_v35 = vpop.f32.mrf.mxu1 }
 0x28a   : > { %v1997_v58 = vadd.f32 %v5710_v18, %v1984_v46  ;;  %v1825_v41 = vadd.f32 %v1797_v10, %v5778_v33  ;;  %v4824_v33 = vld [vmem:[%s6819_s3 + $0x18] sm:$0xff] }
 0x28b   : > { %2571 = vmatpush.bf16.msrb.mxu0 %v4824_v33 }
 0x28c   : > { %v2010_v60 = vmax.f32 %v1997_v58, 0.0  ;;  %v1881_v16 = vadd.f32 %v5764_v26, %v1825_v41  ;;  %4461 = vmatmul.msk.bf16.gmra.mxu0 %vm828_vm0, %v6818_v48 }
 0x28e   : > { %v5997_v24 = vmax.f32 %v5785_v50, %v2010_v60  ;;  %v1972_v54 = vadd.f32 %v1944_v49, %v1881_v16  ;;  %v6008_v38 = vpop.f32.mrf.mxu3 }
 0x28f   : > { %v1946_v26 = vpop.f32.mrf.mxu2 }
 0x290   : > { %v1985_v55 = vmul.f32 %v5701_v31, %v1972_v54 }
 0x291   : > { %v1799_v50 = vpop.f32.mrf.mxu0  ;;  %v6013_v49 = vpop.f32.mrf.mxu1 }
 0x292   : > { %v1998_v28 = vadd.f32 %v5710_v18, %v1985_v55  ;;  %v1826_v44 = vadd.f32 %v1799_v50, %v5793_v56 }
 0x293   : > { %4483 = vmatmul.msk.bf16.gmra.mxu3 %vm828_vm0, %v2240_v34 }
 0x294   : > { %v2011_v46 = vmax.f32 %v1998_v28, 0.0  ;;  %v1882_v10 = vadd.f32 %v5783_v2, %v1826_v44  ;;  %4476 = vmatmul.msk.bf16.gmra.mxu2 %vm828_vm0, %v5795_v13  ;;  %v2242_v44 = vpop.permute.xlu1 %2241 }
 0x296   : > { %v6020_v58 = vmax.f32 %v5802_v43, %v2011_v46  ;;  %v1973_v41 = vadd.f32 %v1946_v26, %v1882_v10  ;;  %v6022_v16 = vpop.f32.mrf.mxu3 }
 0x297   : > { %v1949_v60 = vpop.f32.mrf.mxu2 }
 0x298   : > { %v1986_v48 = vmul.f32 %v5701_v31, %v1973_v41 }
 0x299   : > { %v1802_v56 = vpop.f32.mrf.mxu0  ;;  %v6027_v2 = vpop.f32.mrf.mxu1 }
 0x29a   : > { %v1999_v54 = vadd.f32 %v5710_v18, %v1986_v48  ;;  %v1827_v14 = vadd.f32 %v1802_v56, %v5814_v21 }
 0x29c   : > { %v2012_v33 = vmax.f32 %v1999_v54, 0.0  ;;  %v1883_v13 = vadd.f32 %v5800_v29, %v1827_v14  ;;  %4462 = vmatmul.msk.bf16.gmra.mxu0 %vm828_vm0, %v6820_v12  ;;  %v6821_v12 = vld [vmem:[#allocation8_spill] sm:$0xff] }
 0x29e   : > { %v6033_v43 = vmax.f32 %v5821_v63, %v2012_v33  ;;  %v1974_v26 = vadd.f32 %v1949_v60, %v1883_v13  ;;  %v6035_v50 = vpop.f32.mrf.mxu3 }
 0x29f   : > { %v1951_v55 = vpop.f32.mrf.mxu2 }
 0x2a0   : > { %v1987_v34 = vmul.f32 %v5701_v31, %v1974_v26 }
 0x2a1   : > { %v1804_v28 = vpop.f32.mrf.mxu0  ;;  %v6040_v10 = vpop.f32.mrf.mxu1 }
 0x2a2   : > { %v2000_v21 = vadd.f32 %v5710_v18, %v1987_v34  ;;  %v1828_v46 = vadd.f32 %v1804_v28, %v5829_v47 }
 0x2a3   : > { %4484 = vmatmul.msk.bf16.gmra.mxu3 %vm828_vm0, %v2242_v44 }
 0x2a4   : > { %v2013_v29 = vmax.f32 %v2000_v21, 0.0  ;;  %v1884_v41 = vadd.f32 %v5819_v11, %v1828_v46  ;;  %4477 = vmatmul.msk.bf16.gmra.mxu2 %vm828_vm0, %v5831_v37  ;;  %v2244_v21 = vpop.permute.xlu2 %2243 }
 0x2a6   : > { %v6047_v63 = vmax.f32 %v5838_v51, %v2013_v29  ;;  %v1975_v60 = vadd.f32 %v1951_v55, %v1884_v41  ;;  %v6049_v56 = vpop.f32.mrf.mxu3 }
 0x2a7   : > { %v1954_v48 = vpop.f32.mrf.mxu2 }
 0x2a8   : > { %v1988_v54 = vmul.f32 %v5701_v31, %v1975_v60 }
 0x2a9   : > { %v1807_v47 = vpop.f32.mrf.mxu0  ;;  %v6054_v11 = vpop.f32.mrf.mxu1 }
 0x2aa   : > { %v2001_v14 = vadd.f32 %v5710_v18, %v1988_v54  ;;  %v1829_v33 = vadd.f32 %v1807_v47, %v5850_v32 }
 0x2ac   : > { %v2014_v13 = vmax.f32 %v2001_v14, 0.0  ;;  %v1885_v37 = vadd.f32 %v5836_v20, %v1829_v33  ;;  %4463 = vmatmul.msk.bf16.gmra.mxu0 %vm828_vm0, %v6821_v12 }
 0x2ae   : > { %v6060_v51 = vmax.f32 %v5857_v27, %v2014_v13  ;;  %v1976_v26 = vadd.f32 %v1954_v48, %v1885_v37  ;;  %v6062_v34 = vpop.f32.mrf.mxu3  ;;  %v6822_v37 = vld [vmem:[#allocation10_spill] sm:$0xff] }
 0x2af   : > { %v1956_v55 = vpop.f32.mrf.mxu2 }
 0x2b0   : > { %v1989_v28 = vmul.f32 %v5701_v31, %v1976_v26 }
 0x2b1   : > { %v1809_v44 = vpop.f32.mrf.mxu0  ;;  %v6067_v29 = vpop.f32.mrf.mxu1 }
 0x2b2   : > { %v2002_v32 = vadd.f32 %v5710_v18, %v1989_v28  ;;  %v1830_v46 = vadd.f32 %v1809_v44, %v5865_v40 }
 0x2b3   : > { %4485 = vmatmul.msk.bf16.gmra.mxu3 %vm828_vm0, %v2244_v21 }
 0x2b4   : > { %v2015_v20 = vmax.f32 %v2002_v32, 0.0  ;;  %v1886_v41 = vadd.f32 %v5855_v19, %v1830_v46  ;;  %4478 = vmatmul.msk.bf16.gmra.mxu2 %vm828_vm0, %v5867_v53 }
 0x2b6   : > { %v6074_v27 = vmax.f32 %v5874_v30, %v2015_v20  ;;  %v1977_v60 = vadd.f32 %v1956_v55, %v1886_v41  ;;  %v6076_v54 = vpop.f32.mrf.mxu3 }
 0x2b7   : > { %v1959_v48 = vpop.f32.mrf.mxu2 }
 0x2b8   : > { %v1990_v47 = vmul.f32 %v5701_v31, %v1977_v60 }
 0x2b9   : > { %v1812_v40 = vpop.f32.mrf.mxu0  ;;  %v6081_v19 = vpop.f32.mrf.mxu1 }
 0x2ba   : > { %v2003_v14 = vadd.f32 %v5710_v18, %v1990_v47  ;;  %v1831_v33 = vadd.f32 %v1812_v40, %v5886_v7 }
 0x2bc   : > { %v2016_v13 = vmax.f32 %v2003_v14, 0.0  ;;  %v1887_v53 = vadd.f32 %v5872_v22, %v1831_v33  ;;  %4464 = vmatmul.msk.bf16.gmra.mxu0 %vm828_vm0, %v6822_v37 }
 0x2be   : > { %v6087_v30 = vmax.f32 %v5893_v23, %v2016_v13  ;;  %v1978_v12 = vadd.f32 %v1959_v48, %v1887_v53  ;;  %v6089_v55 = vpop.f32.mrf.mxu3 }
 0x2bf   : > { %v1961_v26 = vpop.f32.mrf.mxu2 }
 0x2c0   : > { %v1991_v28 = vmul.f32 %v5701_v31, %v1978_v12 }
 0x2c1   : > { %v1814_v44 = vpop.f32.mrf.mxu0  ;;  %v6094_v32 = vpop.f32.mrf.mxu1 }
 0x2c2   : > { %v2004_v7 = vadd.f32 %v5710_v18, %v1991_v28  ;;  %v1832_v21 = vadd.f32 %v1814_v44, %v5901_v42  ;;  %v4825_v44 = vld [vmem:[%s6819_s3 + $0x20] sm:$0xff] }
 0x2c3   : > { %2753 = vmatpush.bf16.msrb.mxu2 %v4825_v44 }
 0x2c4   : > { %v2017_v22 = vmax.f32 %v2004_v7, 0.0  ;;  %v1888_v46 = vadd.f32 %v5891_v4, %v1832_v21 }
 0x2c6   : > { %v6098_v20 = vmax.f32 %v5908_v59, %v2017_v22  ;;  %v1979_v23 = vadd.f32 %v1961_v26, %v1888_v46  ;;  %v6100_v60 = vpop.f32.mrf.mxu3 }
 0x2c7   : > { %v1964_v41 = vpop.f32.mrf.mxu2 }
 0x2c8   : > { %v1992_v48 = vmul.f32 %v5701_v31, %v1979_v23 }
 0x2c9   : > { %v1817_v47 = vpop.f32.mrf.mxu0  ;;  %v2160_v42 = vpop.f32.mrf.mxu1 }
 0x2ca   : > { %v2005_v40 = vadd.f32 %v5710_v18, %v1992_v48  ;;  %v1833_v14 = vadd.f32 %v1817_v47, %v5917_v36  ;;  %v4823_v36 = vld [vmem:[%s6819_s3 + $0x10] sm:$0xff] }
 0x2cb   : > { %2572 = vmatpush.bf16.msrb.mxu0 %v4823_v36 }
 0x2cc   : > { %v2018_v33 = vmax.f32 %v2005_v40, 0.0  ;;  %v1889_v13 = vadd.f32 %v5906_v3, %v1833_v14  ;;  %v4821_v3 = vld [vmem:[%s6819_s3] sm:$0xff] }
 0x2cd   : > { %2648 = vmatpush.bf16.msrb.mxu1 %v4821_v3 }
 0x2ce   : > { %v6107_v4 = vmax.f32 %v5922_v9, %v2018_v33  ;;  %v1980_v59 = vadd.f32 %v1964_v41, %v1889_v13  ;;  %v2074_v37 = vpop.f32.mrf.mxu3 }
 0x2cf   : > { %v1966_v53 = vpop.f32.mrf.mxu2 }
 0x2d0   : > { %v1993_v12 = vmul.f32 %v5701_v31, %v1980_v59 }
 0x2d1   : > { %v1819_v26 = vpop.f32.mrf.mxu0 }
 0x2d2   : > { %v2006_v28 = vadd.f32 %v5710_v18, %v1993_v12 }
 0x2d4   : > { %v2019_v9 = vmax.f32 %v2006_v28, 0.0 }
 0x2d6   : > { %v6121_v7 = vmax.f32 %v5932_v57, %v2019_v9  ;;  %v2275_v22 = vpop.f32.mrf.mxu3 }
 0x2d7   : > { %v2184_v21 = vpop.f32.mrf.mxu2 }
 0x2d9   : > { %v2085_v46 = vpop.f32.mrf.mxu0 }
 0x2da   : > { %v2086_v23 = vadd.f32 %v2085_v46, %v5937_v25  ;;  %v6132_v25 = vld [vmem:[%s6823_s8] ss:$0 sm:$0xff]  ;;  %s6827_s8 = sld [smem:[#allocation22_spill]] }
 0x2dc   : > { %v2162_v41 = vadd.f32 %v5930_v52, %v2086_v23 }
 0x2de   : > { %v2218_v48 = vadd.f32 %v2184_v21, %v2162_v41  ;;  %v2277_v40 = vpop.f32.mrf.mxu3 }
 0x2df   : > { %v2186_v47 = vpop.f32.mrf.mxu2 }
 0x2e0   : > { %v2309_v14 = vadd.f32 %v2275_v22, %v2218_v48 }
 0x2e1   : > { %v2087_v42 = vpop.f32.mrf.mxu0 }
 0x2e2   : > { %v2322_v33 = vmul.f32 %v5701_v31, %v2309_v14  ;;  %v2088_v13 = vadd.f32 %v2087_v42, %v5945_v1  ;;  %v6138_v1 = vld [vmem:[%s6824_s5] ss:$0 sm:$0xff]  ;;  %s6828_s5 = sld [smem:[#allocation23_spill]] }
 0x2e4   : > { %v2335_v59 = vadd.f32 %v5710_v18, %v2322_v33  ;;  %v2163_v57 = vadd.f32 %v5940_v8, %v2088_v13 }
 0x2e6   : > { %v2348_v53 = vmax.f32 %v2335_v59, 0.0  ;;  %v2219_v52 = vadd.f32 %v2186_v47, %v2163_v57  ;;  %v2280_v12 = vpop.f32.mrf.mxu3 }
 0x2e7   : > { %v2189_v37 = vpop.f32.mrf.mxu2 }
 0x2e8   : > { %v2361_v26 = vmax.f32 %v5957_v6, %v2348_v53  ;;  %v2310_v28 = vadd.f32 %v2277_v40, %v2219_v52 }
 0x2e9   : > { %v2090_v44 = vpop.f32.mrf.mxu0 }
 0x2ea   : > { %v2382_v8 = vmul.f32 %v6132_v25, %v2361_v26  ;;  %v2323_v36 = vmul.f32 %v5701_v31, %v2310_v28  ;;  %v2091_v3 = vadd.f32 %v2090_v44, %v5959_v5 }
 0x2ec   : > { %v2336_v9 = vadd.f32 %v5710_v18, %v2323_v36  ;;  %v2164_v21 = vadd.f32 %v5950_v45, %v2091_v3  ;;  %v2398_v22 = vadd.f32 %v6138_v1, %v2382_v8 }
 0x2ee   : > { %v2349_v6 = vmax.f32 %v2336_v9, 0.0  ;;  %v2220_v46 = vadd.f32 %v2189_v37, %v2164_v21  ;;  %v2282_v41 = vpop.f32.mrf.mxu3  ;;  %v2411_v40 = vmax.f32 %v2398_v22, 0.0 }
 0x2ef   : > { %v2191_v23 = vpop.f32.mrf.mxu2 }
 0x2f0   : > { %v2362_v48 = vmax.f32 %v5970_v62, %v2349_v6  ;;  %v2311_v47 = vadd.f32 %v2280_v12, %v2220_v46  ;;  %v2424_v57 = vpack.c.bf16 %v2411_v40, %v2411_v40 }
 0x2f1   : > { %v2092_v14 = vpop.f32.mrf.mxu0 }
 0x2f2   : > { %v2383_v42 = vmul.f32 %v6132_v25, %v2362_v48  ;;  %v2324_v33 = vmul.f32 %v5701_v31, %v2311_v47  ;;  %v2093_v5 = vadd.f32 %v2092_v14, %v5972_v39  ;;  %v2450_v8 = vunpack.c.l.b16 %v2424_v57 }
 0x2f4   : > { %v2399_v13 = vadd.f32 %v6138_v1, %v2383_v42  ;;  %v2337_v45 = vadd.f32 %v5710_v18, %v2324_v33  ;;  %v2165_v59 = vadd.f32 %v5964_v17, %v2093_v5 }
 0x2f6   : > { %v2412_v53 = vmax.f32 %v2399_v13, 0.0  ;;  %v2350_v52 = vmax.f32 %v2337_v45, 0.0  ;;  %v2221_v37 = vadd.f32 %v2191_v23, %v2165_v59  ;;  %v2285_v12 = vpop.f32.mrf.mxu3 }
 0x2f7   : > { %v2194_v62 = vpop.f32.mrf.mxu2 }
 0x2f8   : > { %v2425_v26 = vpack.c.bf16 %v2412_v53, %v2412_v53  ;;  %v2363_v28 = vmax.f32 %v5984_v0, %v2350_v52  ;;  %v2312_v44 = vadd.f32 %v2282_v41, %v2221_v37 }
 0x2f9   : > { %v2095_v36 = vpop.f32.mrf.mxu0 }
 0x2fa   : > { %v2325_v39 = vmul.f32 %v5701_v31, %v2312_v44  ;;  %v2096_v3 = vadd.f32 %v2095_v36, %v5986_v15  ;;  %v2451_v9 = vunpack.c.l.b16 %v2425_v26  ;;  %v2384_v21 = vmul.f32 %v6132_v25, %v2363_v28 }
 0x2fc   : > { %v2338_v17 = vadd.f32 %v5710_v18, %v2325_v39  ;;  %v2166_v22 = vadd.f32 %v5977_v61, %v2096_v3  ;;  %v6159_v6 = vpack.c.b16 %v2451_v9, %v2450_v8  ;;  %v2400_v46 = vadd.f32 %v6138_v1, %v2384_v21 }
 0x2fe   : > { %v2351_v0 = vmax.f32 %v2338_v17, 0.0  ;;  %v2222_v23 = vadd.f32 %v2194_v62, %v2166_v22  ;;  %4498 = vmatmul.msk.bf16.vlgmr.msrb.gmra.mxu0 %vm828_vm0, %v6159_v6  ;;  %v2472_v41 = vshrl.u32 %v6159_v6, 16  ;;  %v2287_v48 = vpop.f32.mrf.mxu3  ;;  %v2475_v61 = vshll.u32 %v6159_v6, 16 }
 0x2ff   : > { %v2196_v15 = vpop.f32.mrf.mxu2  ;;  %v2413_v5 = vmax.f32 %v2400_v46, 0.0 }
 0x300   : > { %v2364_v47 = vmax.f32 %v5997_v24, %v2351_v0  ;;  %v2313_v40 = vadd.f32 %v2285_v12, %v2222_v23  ;;  %v2474_v14 = vrot.slane %v2472_v41, 7  ;;  %v2685_v22 = vrot.slane %v2475_v61, 1 }
 0x301   : > { %v2097_v42 = vpop.f32.mrf.mxu0  ;;  %v2426_v28 = vpack.c.bf16 %v2413_v5, %v2413_v5 }
 0x302   : > { %v2326_v13 = vmul.f32 %v5701_v31, %v2313_v40  ;;  %v2098_v45 = vadd.f32 %v2097_v42, %v6008_v38  ;;  %v2477_v59 = vor.u32 %v2475_v61, %v2474_v14  ;;  %v2385_v57 = vmul.f32 %v6132_v25, %v2364_v47 }
 0x303   : > { %v2452_v21 = vunpack.c.l.b16 %v2426_v28  ;;  %v2686_v61 = vor.u32 %v2685_v22, %v2472_v41 }
 0x304   : > { %v2339_v24 = vadd.f32 %v5710_v18, %v2326_v13  ;;  %v2167_v53 = vadd.f32 %v5991_v35, %v2098_v45  ;;  %v2529_v52 = vsel %vm6169_vm3, 0, %v2477_v59  ;;  %v2401_v37 = vadd.f32 %v6138_v1, %v2385_v57  ;;  %v6199_v59 = vld [vmem:[%s6808_s0] ss:$0 sm:$0xff] }
 0x305   : > { %4513 = vmatmul.msk.bf16.vlgmr.msrb.gmra.mxu1 %vm828_vm0, %v2529_v52 }
 0x306   : > { %v2352_v62 = vmax.f32 %v2339_v24, 0.0  ;;  %v2223_v12 = vadd.f32 %v2196_v15, %v2167_v53  ;;  %v2414_v26 = vmax.f32 %v2401_v37, 0.0  ;;  %v2290_v38 = vpop.f32.mrf.mxu3  ;;  %v6209_v37 = vld [vmem:[%s6810_s28] ss:$0 sm:$0xff] }
 0x307   : > { %v2199_v44 = vpop.f32.mrf.mxu2 }
 0x308   : > { %v2365_v8 = vmax.f32 %v6020_v58, %v2352_v62  ;;  %v2314_v36 = vadd.f32 %v2287_v48, %v2223_v12  ;;  %v2427_v39 = vpack.c.bf16 %v2414_v26, %v2414_v26 }
 0x309   : > { %v2100_v3 = vpop.f32.mrf.mxu0 }
 0x30a   : > { %v2327_v35 = vmul.f32 %v5701_v31, %v2314_v36  ;;  %v2101_v9 = vadd.f32 %v2100_v3, %v6022_v16  ;;  %v2453_v17 = vunpack.c.l.b16 %v2427_v39  ;;  %v2386_v46 = vmul.f32 %v6132_v25, %v2365_v8 }
 0x30c   : > { %v2340_v0 = vadd.f32 %v5710_v18, %v2327_v35  ;;  %v2168_v23 = vadd.f32 %v6013_v49, %v2101_v9  ;;  %v6188_v15 = vpack.c.b16 %v2453_v17, %v2452_v21  ;;  %v2402_v42 = vadd.f32 %v6138_v1, %v2386_v46 }
 0x30e   : > { %v2353_v47 = vmax.f32 %v2340_v0, 0.0  ;;  %v2224_v58 = vadd.f32 %v2199_v44, %v2168_v23  ;;  %4499 = vmatmul.msk.bf16.gmra.mxu0 %vm828_vm0, %v6188_v15  ;;  %v2482_v31 = vshll.u32 %v6188_v15, 16  ;;  %v2479_v16 = vshrl.u32 %v6188_v15, 16  ;;  %v2292_v40 = vpop.f32.mrf.mxu3 }
 0x30f   : > { %v2201_v48 = vpop.f32.mrf.mxu2  ;;  %v2415_v52 = vmax.f32 %v2402_v42, 0.0 }
 0x310   : > { %v2366_v18 = vmax.f32 %v6033_v43, %v2353_v47  ;;  %v2315_v49 = vadd.f32 %v2290_v38, %v2224_v58  ;;  %v2687_v5 = vrot.slane %v2482_v31, 1  ;;  %v2481_v13 = vrot.slane %v2479_v16, 7 }
 0x311   : > { %v2102_v45 = vpop.f32.mrf.mxu0  ;;  %v2428_v39 = vpack.c.bf16 %v2415_v52, %v2415_v52 }
 0x312   : > { %v2328_v57 = vmul.f32 %v6199_v59, %v2315_v49  ;;  %v2103_v24 = vadd.f32 %v2102_v45, %v6035_v50  ;;  %v2688_v53 = vsel %vm2684_vm4, %v2686_v61, %v2687_v5  ;;  %v2484_v41 = vor.u32 %v2482_v31, %v2481_v13 }
 0x313   : > { %4532 = vmatmul.msk.bf16.vlgmr.msrb.gmra.mxu2 %vm828_vm0, %v2688_v53  ;;  %v2387_v43 = vmul.f32 %v6132_v25, %v2366_v18  ;;  %v2454_v22 = vunpack.c.l.b16 %v2428_v39 }
 0x314   : > { %v2341_v62 = vadd.f32 %v6209_v37, %v2328_v57  ;;  %v2169_v12 = vadd.f32 %v6027_v2, %v2103_v24  ;;  %v2485_v26 = vsel %vm2470_vm1, %v2474_v14, %v2484_v41 }
 0x315   : > { %4514 = vmatmul.msk.bf16.gmra.mxu1 %vm828_vm0, %v2485_v26  ;;  %v2403_v50 = vadd.f32 %v6138_v1, %v2387_v43 }
 0x316   : > { %v2354_v28 = vmax.f32 %v2341_v62, 0.0  ;;  %v2225_v44 = vadd.f32 %v2201_v48, %v2169_v12  ;;  %v2295_v8 = vpop.f32.mrf.mxu3 }
 0x317   : > { %v2204_v38 = vpop.f32.mrf.mxu2  ;;  %v2416_v36 = vmax.f32 %v2403_v50, 0.0 }
 0x318   : > { %v2367_v3 = vmax.f32 %v6047_v63, %v2354_v28  ;;  %v2316_v35 = vadd.f32 %v2292_v40, %v2225_v44 }
 0x319   : > { %v2105_v9 = vpop.f32.mrf.mxu0  ;;  %v2429_v21 = vpack.c.bf16 %v2416_v36, %v2416_v36 }
 0x31a   : > { %v2329_v17 = vmul.f32 %v6199_v59, %v2316_v35  ;;  %v2106_v2 = vadd.f32 %v2105_v9, %v6049_v56  ;;  %v2388_v14 = vmul.f32 %v6132_v25, %v2367_v3 }
 0x31b   : > { %v2455_v46 = vunpack.c.l.b16 %v2429_v21 }
 0x31c   : > { %v2342_v0 = vadd.f32 %v6209_v37, %v2329_v17  ;;  %v2170_v23 = vadd.f32 %v6040_v10, %v2106_v2  ;;  %v2404_v63 = vadd.f32 %v6138_v1, %v2388_v14  ;;  %v2689_v10 = vor.u32 %v2687_v5, %v2479_v16 }
 0x31d   : > { %v6222_v47 = vpack.c.b16 %v2455_v46, %v2454_v22 }
 0x31e   : > { %v2355_v58 = vmax.f32 %v2342_v0, 0.0  ;;  %v2226_v31 = vadd.f32 %v2204_v38, %v2170_v23  ;;  %v2297_v40 = vpop.f32.mrf.mxu3  ;;  %v2417_v43 = vmax.f32 %v2404_v63, 0.0 }
 0x31f   : > { %4500 = vmatmul.msk.bf16.gmra.mxu0 %vm828_vm0, %v6222_v47  ;;  %v2206_v48 = vpop.f32.mrf.mxu2  ;;  %v2490_v56 = vshll.u32 %v6222_v47, 16  ;;  %v2487_v61 = vshrl.u32 %v6222_v47, 16 }
 0x320   : > { %v2368_v42 = vmax.f32 %v6060_v51, %v2355_v58  ;;  %v2317_v18 = vadd.f32 %v2295_v8, %v2226_v31  ;;  %v2430_v28 = vpack.c.bf16 %v2417_v43, %v2417_v43 }
 0x321   : > { %v2107_v49 = vpop.f32.mrf.mxu0  ;;  %v2690_v45 = vrot.slane %v2490_v56, 1  ;;  %v6230_v57 = vrot.slane %v2487_v61, 7 }
 0x322   : > { %v2330_v24 = vmul.f32 %v6199_v59, %v2317_v18  ;;  %v2108_v53 = vadd.f32 %v2107_v49, %v6062_v34  ;;  %v2389_v41 = vmul.f32 %v6132_v25, %v2368_v42  ;;  %v2456_v9 = vunpack.c.l.b16 %v2430_v28 }
 0x323   : > { %v2691_v52 = vsel %vm2684_vm4, %v2689_v10, %v2690_v45  ;;  %v2492_v62 = vor.u32 %v2490_v56, %v6230_v57  ;;  %v2692_v31 = vor.u32 %v2690_v45, %v2487_v61 }
 0x324   : > { %v2343_v12 = vadd.f32 %v6209_v37, %v2330_v24  ;;  %v2171_v51 = vadd.f32 %v6054_v11, %v2108_v53  ;;  %4533 = vmatmul.msk.bf16.gmra.mxu2 %vm828_vm0, %v2691_v52  ;;  %v2405_v16 = vadd.f32 %v6138_v1, %v2389_v41 }
 0x325   : > { %v2493_v5 = vsel %vm2470_vm1, %v2481_v13, %v2492_v62  ;;  %v4830_v13 = vld [vmem:[%s6827_s8 + $0x18] sm:$0xff] }
 0x326   : > { %v2356_v26 = vmax.f32 %v2343_v12, 0.0  ;;  %v2227_v50 = vadd.f32 %v2206_v48, %v2171_v51  ;;  %4515 = vmatmul.msk.bf16.gmra.mxu1 %vm828_vm0, %v2493_v5  ;;  %v2418_v34 = vmax.f32 %v2405_v16, 0.0  ;;  %v2300_v38 = vpop.f32.mrf.mxu3  ;;  %2991 = vmatpush.bf16.msrb.mxu3 %v4830_v13  ;;  %v4828_v48 = vld [vmem:[%s6827_s8 + $0x8] sm:$0xff] }
 0x327   : > { %v2209_v44 = vpop.f32.mrf.mxu2  ;;  %3066 = vmatpush.bf16.msra.mxu0 %v4828_v48 }
 0x328   : > { %v2369_v8 = vmax.f32 %v6074_v27, %v2356_v26  ;;  %v2318_v36 = vadd.f32 %v2297_v40, %v2227_v50  ;;  %v2431_v39 = vpack.c.bf16 %v2418_v34, %v2418_v34  ;;  %v4832_v40 = vld [vmem:[%s6827_s8 + $0x28] sm:$0xff] }
 0x329   : > { %v2110_v3 = vpop.f32.mrf.mxu0  ;;  %3167 = vmatpush.bf16.msra.mxu1 %v4832_v40 }
 0x32a   : > { %v2331_v11 = vmul.f32 %v6199_v59, %v2318_v36  ;;  %v2111_v35 = vadd.f32 %v2110_v3, %v6076_v54  ;;  %v2457_v21 = vunpack.c.l.b16 %v2431_v39  ;;  %v2390_v17 = vmul.f32 %v6132_v25, %v2369_v8 }
 0x32c   : > { %v2344_v2 = vadd.f32 %v6209_v37, %v2331_v11  ;;  %v2172_v14 = vadd.f32 %v6067_v29, %v2111_v35  ;;  %v6252_v27 = vpack.c.b16 %v2457_v21, %v2456_v9  ;;  %v2406_v63 = vadd.f32 %v6138_v1, %v2390_v17  ;;  %v4834_v29 = vld [vmem:[%s6828_s5 + $0x8] sm:$0xff] }
 0x32d   : > { %3237 = vmatpush.bf16.msra.mxu2 %v4834_v29 }
 0x32e   : > { %v2357_v22 = vmax.f32 %v2344_v2, 0.0  ;;  %v2228_v46 = vadd.f32 %v2209_v44, %v2172_v14  ;;  %v2498_v0 = vshll.u32 %v6252_v27, 16  ;;  %v2495_v54 = vshrl.u32 %v6252_v27, 16  ;;  %v2302_v58 = vpop.f32.mrf.mxu3 }
 0x32f   : > { %4501 = vmatmul.msk.bf16.gmra.mxu0 %vm828_vm0, %v6252_v27  ;;  %v2211_v23 = vpop.f32.mrf.mxu2  ;;  %v2419_v43 = vmax.f32 %v2406_v63, 0.0 }
 0x330   : > { %v2370_v56 = vmax.f32 %v6087_v30, %v2357_v22  ;;  %v2319_v42 = vadd.f32 %v2300_v38, %v2228_v46  ;;  %v2693_v18 = vrot.slane %v2498_v0, 1  ;;  %v2497_v49 = vrot.slane %v2495_v54, 7 }
 0x331   : > { %v2112_v61 = vpop.f32.mrf.mxu0  ;;  %v2432_v26 = vpack.c.bf16 %v2419_v43, %v2419_v43 }
 0x332   : > { %v2332_v10 = vmul.f32 %v6199_v59, %v2319_v42  ;;  %v2113_v45 = vadd.f32 %v2112_v61, %v6089_v55  ;;  %v2694_v24 = vsel %vm2684_vm4, %v2692_v31, %v2693_v18  ;;  %v2500_v53 = vor.u32 %v2498_v0, %v2497_v49 }
 0x333   : > { %v2391_v41 = vmul.f32 %v6132_v25, %v2370_v56  ;;  %v2458_v36 = vunpack.c.l.b16 %v2432_v26  ;;  %v4833_v26 = vld [vmem:[%s6828_s5] sm:$0xff] }
 0x334   : > { %v2345_v52 = vadd.f32 %v6209_v37, %v2332_v10  ;;  %v2173_v30 = vadd.f32 %v6081_v19, %v2113_v45  ;;  %4534 = vmatmul.msk.bf16.gmra.mxu2 %vm828_vm0, %v2694_v24  ;;  %v2501_v62 = vsel %vm2470_vm1, %v6230_v57, %v2500_v53 }
 0x335   : > { %v2407_v12 = vadd.f32 %v6138_v1, %v2391_v41  ;;  %3238 = vmatpush.bf16.msra.mxu2 %v4833_v26 }
 0x336   : > { %v2358_v51 = vmax.f32 %v2345_v52, 0.0  ;;  %v2229_v55 = vadd.f32 %v2211_v23, %v2173_v30  ;;  %4516 = vmatmul.msk.bf16.gmra.mxu1 %vm828_vm0, %v2501_v62  ;;  %v2305_v50 = vpop.f32.mrf.mxu3 }
 0x337   : > { %v2214_v16 = vpop.f32.mrf.mxu2  ;;  %v2420_v5 = vmax.f32 %v2407_v12, 0.0 }
 0x338   : > { %v2371_v34 = vmax.f32 %v6098_v20, %v2358_v51  ;;  %v2320_v28 = vadd.f32 %v2302_v58, %v2229_v55 }
 0x339   : > { %v2115_v44 = vpop.f32.mrf.mxu0  ;;  %v2433_v19 = vpack.c.bf16 %v2420_v5, %v2420_v5 }
 0x33a   : > { %v2333_v38 = vmul.f32 %v6199_v59, %v2320_v28  ;;  %v2116_v8 = vadd.f32 %v2115_v44, %v6100_v60  ;;  %v2392_v57 = vmul.f32 %v6132_v25, %v2371_v34 }
 0x33b   : > { %v2459_v39 = vunpack.c.l.b16 %v2433_v19 }
 0x33c   : > { %v2346_v3 = vadd.f32 %v6209_v37, %v2333_v38  ;;  %v2174_v11 = vadd.f32 %v6094_v32, %v2116_v8  ;;  %v2408_v20 = vadd.f32 %v6138_v1, %v2392_v57  ;;  %v2695_v32 = vor.u32 %v2693_v18, %v2495_v54  ;;  %v4829_v38 = vld [vmem:[%s6827_s8 + $0x10] sm:$0xff]  ;;  %v4827_v8 = vld [vmem:[%s6827_s8] sm:$0xff] }
 0x33d   : > { %v6286_v35 = vpack.c.b16 %v2459_v39, %v2458_v36  ;;  %2992 = vmatpush.bf16.msrb.mxu3 %v4829_v38  ;;  %3067 = vmatpush.bf16.msra.mxu0 %v4827_v8  ;;  %v4831_v36 = vld [vmem:[%s6827_s8 + $0x20] sm:$0xff] }
 0x33e   : > { %v2359_v9 = vmax.f32 %v2346_v3, 0.0  ;;  %v2230_v21 = vadd.f32 %v2214_v16, %v2174_v11  ;;  %v2307_v2 = vpop.f32.mrf.mxu3  ;;  %v2421_v63 = vmax.f32 %v2408_v20, 0.0  ;;  %3168 = vmatpush.bf16.msra.mxu1 %v4831_v36 }
 0x33f   : > { %4502 = vmatmul.msk.bf16.gmra.mxu0 %vm828_vm0, %v6286_v35  ;;  %v2216_v13 = vpop.f32.mrf.mxu2  ;;  %v2506_v60 = vshll.u32 %v6286_v35, 16  ;;  %v2503_v17 = vshrl.u32 %v6286_v35, 16 }
 0x340   : > { %v2372_v14 = vmax.f32 %v6107_v4, %v2359_v9  ;;  %v2321_v22 = vadd.f32 %v2305_v50, %v2230_v21  ;;  %v2434_v18 = vpack.c.bf16 %v2421_v63, %v2421_v63 }
 0x341   : > { %v2117_v46 = vpop.f32.mrf.mxu0  ;;  %v2696_v0 = vrot.slane %v2506_v60, 1  ;;  %v2505_v23 = vrot.slane %v2503_v17, 7 }
 0x342   : > { %v2334_v58 = vmul.f32 %v6199_v59, %v2321_v22  ;;  %v2393_v31 = vmul.f32 %v6132_v25, %v2372_v14  ;;  %v2460_v45 = vunpack.c.l.b16 %v2434_v18  ;;  %v6346_v14 = vld [vmem:[%s6829_s27] ss:$0 sm:$0xff] }
 0x343   : > { %v2697_v29 = vsel %vm2684_vm4, %v2695_v32, %v2696_v0  ;;  %v2508_v48 = vor.u32 %v2506_v60, %v2505_v23  ;;  %v2698_v52 = vor.u32 %v2696_v0, %v2503_v17 }
 0x344   : > { %v2347_v40 = vadd.f32 %v6209_v37, %v2334_v58  ;;  %4535 = vmatmul.msk.bf16.gmra.mxu2 %vm828_vm0, %v2697_v29  ;;  %v2409_v56 = vadd.f32 %v6138_v1, %v2393_v31 }
 0x345   : > { %v2509_v4 = vsel %vm2470_vm1, %v2497_v49, %v2508_v48 }
 0x346   : > { %v2360_v42 = vmax.f32 %v2347_v40, 0.0  ;;  %4517 = vmatmul.msk.bf16.gmra.mxu1 %vm828_vm0, %v2509_v4  ;;  %v2422_v54 = vmax.f32 %v2409_v56, 0.0 }
 0x348   : > { %v2373_v59 = vmax.f32 %v6121_v7, %v2360_v42  ;;  %v2435_v61 = vpack.c.bf16 %v2422_v54, %v2422_v54 }
 0x34a   : > { %v2394_v10 = vmul.f32 %v6132_v25, %v2373_v59  ;;  %v2461_v24 = vunpack.c.l.b16 %v2435_v61 }
 0x34c   : > { %v6304_v53 = vpack.c.b16 %v2461_v24, %v2460_v45  ;;  %v2410_v37 = vadd.f32 %v6138_v1, %v2394_v10 }
 0x34e   : > { %v2514_v41 = vshll.u32 %v6304_v53, 16  ;;  %v2511_v49 = vshrl.u32 %v6304_v53, 16  ;;  %v2423_v43 = vmax.f32 %v2410_v37, 0.0 }
 0x34f   : > { %4503 = vmatmul.msk.bf16.gmra.mxu0 %vm828_vm0, %v6304_v53 }
 0x350   : > { %v2699_v30 = vrot.slane %v2514_v41, 1  ;;  %v2513_v7 = vrot.slane %v2511_v49, 7  ;;  %v2436_v62 = vpack.c.bf16 %v2423_v43, %v2423_v43 }
 0x352   : > { %v2700_v25 = vsel %vm2684_vm4, %v2698_v52, %v2699_v30  ;;  %v2516_v12 = vor.u32 %v2514_v41, %v2513_v7  ;;  %v2462_v51 = vunpack.c.l.b16 %v2436_v62  ;;  %v2701_v28 = vor.u32 %v2699_v30, %v2511_v49 }
 0x354   : > { %4536 = vmatmul.msk.bf16.gmra.mxu2 %vm828_vm0, %v2700_v25  ;;  %v2517_v1 = vsel %vm2470_vm1, %v2505_v23, %v2516_v12  ;;  %v6314_v55 = vpack.c.b16 %v2462_v51, %v2462_v51 }
 0x356   : > { %4518 = vmatmul.msk.bf16.gmra.mxu1 %vm828_vm0, %v2517_v1  ;;  %v2519_v16 = vshrl.u32 %v6314_v55, 16  ;;  %v2522_v5 = vshll.u32 %v6314_v55, 16 }
 0x358   : > { %v2521_v50 = vrot.slane %v2519_v16, 7  ;;  %v2702_v34 = vrot.slane %v2522_v5, 1 }
 0x35a   : > { %v2524_v44 = vor.u32 %v2522_v5, %v2521_v50  ;;  %v2703_v19 = vsel %vm2684_vm4, %v2701_v28, %v2702_v34  ;;  %v2704_v39 = vor.u32 %v2702_v34, %v2519_v16 }
 0x35c   : > { %v2525_v57 = vsel %vm2470_vm1, %v2513_v7, %v2524_v44  ;;  %v2708_v3 = vsel %vm2527_vm2, %v2704_v39, 0 }
 0x35f   : > { %4504 = vmatmul.msk.bf16.gmra.mxu0 %vm828_vm0, %v6314_v55 }
 0x364   : > { %4537 = vmatmul.msk.bf16.gmra.mxu2 %vm828_vm0, %v2703_v19 }
 0x366   : > { %4519 = vmatmul.msk.bf16.gmra.mxu1 %vm828_vm0, %v2525_v57 }
 0x374   : > { %4538 = vmatmul.msk.bf16.gmra.mxu2 %vm828_vm0, %v2708_v3 }
 0x37b   : > { %v2574_v11 = vpop.f32.mrf.mxu0 }
 0x382   : > { %v2650_v9 = vpop.f32.mrf.mxu1 }
 0x383   : > { %v2576_v21 = vpop.f32.mrf.mxu0  ;;  %v2651_v2 = vadd.f32 %v2650_v9, %v2574_v11 }
 0x384   : > { %4600 = vmatmul.msk.bf16.vlgmr.msra.gmra.mxu2 %vm828_vm0, %v6159_v6  ;;  %v6352_v6 = vld [vmem:[%s6735_s10] ss:$0 sm:$0xff] }
 0x38a   : > { %v2652_v20 = vpop.f32.mrf.mxu1 }
 0x38b   : > { %v2579_v13 = vpop.f32.mrf.mxu0  ;;  %v2653_v58 = vadd.f32 %v2652_v20, %v2576_v21 }
 0x392   : > { %v2655_v60 = vpop.f32.mrf.mxu1 }
 0x393   : > { %v2581_v17 = vpop.f32.mrf.mxu0  ;;  %v2656_v18 = vadd.f32 %v2655_v60, %v2579_v13 }
 0x394   : > { %4601 = vmatmul.msk.bf16.gmra.mxu2 %vm828_vm0, %v6188_v15 }
 0x396   : > { %v2755_v22 = vpop.f32.mrf.mxu2 }
 0x397   : > { %v2789_v46 = vadd.f32 %v2755_v22, %v2651_v2 }
 0x399   : > { %v2805_v32 = vmul.f32 %v6346_v14, %v2789_v46 }
 0x39a   : > { %v2657_v0 = vpop.f32.mrf.mxu1 }
 0x39b   : > { %v2821_v15 = vadd.f32 %v6352_v6, %v2805_v32  ;;  %v2658_v30 = vadd.f32 %v2657_v0, %v2581_v17 }
 0x39c   : > { %v2584_v23 = vpop.f32.mrf.mxu0 }
 0x39d   : > { %v2834_v29 = vmax.f32 %v2821_v15, 0.0 }
 0x39e   : > { %v2757_v31 = vpop.f32.mrf.mxu2 }
 0x39f   : > { %v2790_v63 = vadd.f32 %v2757_v31, %v2653_v58  ;;  %v2847_v42 = vpack.c.bf16 %v2834_v29, %v2834_v29 }
 0x3a1   : > { %v2806_v48 = vmul.f32 %v6346_v14, %v2790_v63  ;;  %v2873_v45 = vunpack.c.l.b16 %v2847_v42 }
 0x3a3   : > { %v2822_v40 = vadd.f32 %v6352_v6, %v2806_v48  ;;  %v2660_v56 = vpop.f32.mrf.mxu1 }
 0x3a4   : > { %v2586_v4 = vpop.f32.mrf.mxu0  ;;  %4602 = vmatmul.msk.bf16.gmra.mxu2 %vm828_vm0, %v6222_v47  ;;  %v2661_v28 = vadd.f32 %v2660_v56, %v2584_v23 }
 0x3a5   : > { %v2835_v54 = vmax.f32 %v2822_v40, 0.0 }
 0x3a7   : > { %v2848_v59 = vpack.c.bf16 %v2835_v54, %v2835_v54  ;;  %v2760_v61 = vpop.f32.mrf.mxu2 }
 0x3a8   : > { %v2791_v10 = vadd.f32 %v2760_v61, %v2656_v18 }
 0x3a9   : > { %v2874_v24 = vunpack.c.l.b16 %v2848_v59 }
 0x3aa   : > { %v2807_v37 = vmul.f32 %v6346_v14, %v2791_v10 }
 0x3ab   : > { %v2886_v41 = vpack.c.b16 %v2874_v24, %v2873_v45  ;;  %v2662_v49 = vpop.f32.mrf.mxu1 }
 0x3ac   : > { %v2589_v43 = vpop.f32.mrf.mxu0  ;;  %v2823_v7 = vadd.f32 %v6352_v6, %v2807_v37  ;;  %v2663_v13 = vadd.f32 %v2662_v49, %v2586_v4 }
 0x3ad   : > { %v2894_v52 = vshrl.u32 %v2886_v41, 16  ;;  %4551 = vmatmul.msk.bf16.vlgmr.msrb.gmra.mxu3 %vm828_vm0, %v2886_v41  ;;  %v2897_v25 = vshll.u32 %v2886_v41, 16 }
 0x3ae   : > { %v2836_v1 = vmax.f32 %v2823_v7, 0.0 }
 0x3af   : > { %v2762_v47 = vpop.f32.mrf.mxu2  ;;  %v2896_v62 = vrot.slane %v2894_v52, 7  ;;  %v3102_v9 = vrot.slane %v2897_v25, 1 }
 0x3b0   : > { %v2792_v12 = vadd.f32 %v2762_v47, %v2658_v30  ;;  %v2849_v44 = vpack.c.bf16 %v2836_v1, %v2836_v1 }
 0x3b1   : > { %v2899_v51 = vor.u32 %v2897_v25, %v2896_v62  ;;  %v3103_v46 = vor.u32 %v3102_v9, %v2894_v52 }
 0x3b2   : > { %v2808_v16 = vmul.f32 %v6346_v14, %v2792_v12  ;;  %v2875_v36 = vunpack.c.l.b16 %v2849_v44 }
 0x3b3   : > { %v2665_v5 = vpop.f32.mrf.mxu1  ;;  %v2949_v26 = vsel %vm6169_vm3, 0, %v2899_v51 }
 0x3b4   : > { %v2824_v50 = vadd.f32 %v6352_v6, %v2808_v16  ;;  %v2591_v34 = vpop.f32.mrf.mxu0  ;;  %4603 = vmatmul.msk.bf16.gmra.mxu2 %vm828_vm0, %v6252_v27  ;;  %4566 = vmatmul.msk.bf16.vlgmr.msra.gmra.mxu0 %vm828_vm0, %v2949_v26  ;;  %v2666_v56 = vadd.f32 %v2665_v5, %v2589_v43 }
 0x3b6   : > { %v2837_v19 = vmax.f32 %v2824_v50, 0.0 }
 0x3b7   : > { %v2765_v38 = vpop.f32.mrf.mxu2 }
 0x3b8   : > { %v2850_v8 = vpack.c.bf16 %v2837_v19, %v2837_v19  ;;  %v2793_v57 = vadd.f32 %v2765_v38, %v2661_v28 }
 0x3ba   : > { %v2876_v39 = vunpack.c.l.b16 %v2850_v8  ;;  %v2809_v3 = vmul.f32 %v6346_v14, %v2793_v57 }
 0x3bb   : > { %v2667_v11 = vpop.f32.mrf.mxu1 }
 0x3bc   : > { %v2594_v21 = vpop.f32.mrf.mxu0  ;;  %v2887_v20 = vpack.c.b16 %v2876_v39, %v2875_v36  ;;  %v2825_v60 = vadd.f32 %v6352_v6, %v2809_v3  ;;  %v2668_v49 = vadd.f32 %v2667_v11, %v2591_v34 }
 0x3be   : > { %v2904_v27 = vshll.u32 %v2887_v20, 16  ;;  %4552 = vmatmul.msk.bf16.gmra.mxu3 %vm828_vm0, %v2887_v20  ;;  %v2901_v17 = vshrl.u32 %v2887_v20, 16  ;;  %v2838_v23 = vmax.f32 %v2825_v60, 0.0 }
 0x3bf   : > { %v2767_v2 = vpop.f32.mrf.mxu2 }
 0x3c0   : > { %v2794_v22 = vadd.f32 %v2767_v2, %v2663_v13  ;;  %v3104_v32 = vrot.slane %v2904_v27, 1  ;;  %v2903_v0 = vrot.slane %v2901_v17, 7  ;;  %v2851_v4 = vpack.c.bf16 %v2838_v23, %v2838_v23 }
 0x3c2   : > { %v2810_v58 = vmul.f32 %v6346_v14, %v2794_v22  ;;  %v3105_v15 = vsel %vm2684_vm4, %v3103_v46, %v3104_v32  ;;  %v2906_v31 = vor.u32 %v2904_v27, %v2903_v0  ;;  %v2877_v61 = vunpack.c.l.b16 %v2851_v4 }
 0x3c3   : > { %v2670_v63 = vpop.f32.mrf.mxu1  ;;  %4585 = vmatmul.msk.bf16.vlgmr.msra.gmra.mxu1 %vm828_vm0, %v3105_v15  ;;  %v3106_v47 = vor.u32 %v3104_v32, %v2901_v17 }
 0x3c4   : > { %v2826_v29 = vadd.f32 %v6352_v6, %v2810_v58  ;;  %v2596_v48 = vpop.f32.mrf.mxu0  ;;  %4604 = vmatmul.msk.bf16.gmra.mxu2 %vm828_vm0, %v6286_v35  ;;  %v2907_v40 = vsel %vm2470_vm1, %v2896_v62, %v2906_v31  ;;  %v2671_v28 = vadd.f32 %v2670_v63, %v2594_v21 }
 0x3c5   : > { %4567 = vmatmul.msk.bf16.gmra.mxu0 %vm828_vm0, %v2907_v40 }
 0x3c6   : > { %v2839_v42 = vmax.f32 %v2826_v29, 0.0 }
 0x3c7   : > { %v2770_v54 = vpop.f32.mrf.mxu2 }
 0x3c8   : > { %v2852_v18 = vpack.c.bf16 %v2839_v42, %v2839_v42  ;;  %v2795_v59 = vadd.f32 %v2770_v54, %v2666_v56 }
 0x3ca   : > { %v2878_v10 = vunpack.c.l.b16 %v2852_v18  ;;  %v2811_v45 = vmul.f32 %v6346_v14, %v2795_v59 }
 0x3cb   : > { %v2672_v24 = vpop.f32.mrf.mxu1 }
 0x3cc   : > { %v2599_v37 = vpop.f32.mrf.mxu0  ;;  %v2888_v41 = vpack.c.b16 %v2878_v10, %v2877_v61  ;;  %v2827_v35 = vadd.f32 %v6352_v6, %v2811_v45  ;;  %v2673_v13 = vadd.f32 %v2672_v24, %v2596_v48 }
 0x3ce   : > { %4553 = vmatmul.msk.bf16.gmra.mxu3 %vm828_vm0, %v2888_v41  ;;  %v2912_v52 = vshll.u32 %v2888_v41, 16  ;;  %v2909_v30 = vshrl.u32 %v2888_v41, 16  ;;  %v2840_v12 = vmax.f32 %v2827_v35, 0.0 }
 0x3cf   : > { %v2772_v43 = vpop.f32.mrf.mxu2 }
 0x3d0   : > { %v2796_v7 = vadd.f32 %v2772_v43, %v2668_v49  ;;  %v3107_v62 = vrot.slane %v2912_v52, 1  ;;  %v2911_v25 = vrot.slane %v2909_v30, 7  ;;  %v2853_v44 = vpack.c.bf16 %v2840_v12, %v2840_v12 }
 0x3d2   : > { %v2812_v51 = vmul.f32 %v6346_v14, %v2796_v7  ;;  %v3108_v1 = vsel %vm2684_vm4, %v3106_v47, %v3107_v62  ;;  %v2914_v16 = vor.u32 %v2912_v52, %v2911_v25  ;;  %v2879_v36 = vunpack.c.l.b16 %v2853_v44 }
 0x3d3   : > { %v2675_v5 = vpop.f32.mrf.mxu1  ;;  %4586 = vmatmul.msk.bf16.gmra.mxu1 %vm828_vm0, %v3108_v1  ;;  %v3109_v2 = vor.u32 %v3107_v62, %v2909_v30 }
 0x3d4   : > { %v2828_v26 = vadd.f32 %v6352_v6, %v2812_v51  ;;  %v2601_v50 = vpop.f32.mrf.mxu0  ;;  %4605 = vmatmul.msk.bf16.gmra.mxu2 %vm828_vm0, %v6304_v53  ;;  %v2915_v34 = vsel %vm2470_vm1, %v2903_v0, %v2914_v16  ;;  %v2676_v48 = vadd.f32 %v2675_v5, %v2599_v37 }
 0x3d5   : > { %4568 = vmatmul.msk.bf16.gmra.mxu0 %vm828_vm0, %v2915_v34 }
 0x3d6   : > { %v2841_v19 = vmax.f32 %v2828_v26, 0.0 }
 0x3d7   : > { %v2775_v38 = vpop.f32.mrf.mxu2 }
 0x3d8   : > { %v2854_v8 = vpack.c.bf16 %v2841_v19, %v2841_v19  ;;  %v2797_v57 = vadd.f32 %v2775_v38, %v2671_v28 }
 0x3da   : > { %v2880_v39 = vunpack.c.l.b16 %v2854_v8  ;;  %v2813_v3 = vmul.f32 %v6346_v14, %v2797_v57 }
 0x3db   : > { %v2677_v11 = vpop.f32.mrf.mxu1 }
 0x3dc   : > { %v2604_v9 = vpop.f32.mrf.mxu0  ;;  %v2889_v20 = vpack.c.b16 %v2880_v39, %v2879_v36  ;;  %v2829_v53 = vadd.f32 %v6352_v6, %v2813_v3  ;;  %v2678_v24 = vadd.f32 %v2677_v11, %v2601_v50 }
 0x3de   : > { %4554 = vmatmul.msk.bf16.gmra.mxu3 %vm828_vm0, %v2889_v20  ;;  %v2920_v60 = vshll.u32 %v2889_v20, 16  ;;  %v2917_v27 = vshrl.u32 %v2889_v20, 16  ;;  %v2842_v32 = vmax.f32 %v2829_v53, 0.0 }
 0x3df   : > { %v2777_v21 = vpop.f32.mrf.mxu2 }
 0x3e0   : > { %v2798_v17 = vadd.f32 %v2777_v21, %v2673_v13  ;;  %v3110_v22 = vrot.slane %v2920_v60, 1  ;;  %v2919_v46 = vrot.slane %v2917_v27, 7  ;;  %v2855_v40 = vpack.c.bf16 %v2842_v32, %v2842_v32 }
 0x3e2   : > { %v2814_v0 = vmul.f32 %v6346_v14, %v2798_v17  ;;  %v3111_v23 = vsel %vm2684_vm4, %v3109_v2, %v3110_v22  ;;  %v2922_v58 = vor.u32 %v2920_v60, %v2919_v46  ;;  %v2881_v18 = vunpack.c.l.b16 %v2855_v40 }
 0x3e3   : > { %v2680_v15 = vpop.f32.mrf.mxu1  ;;  %4587 = vmatmul.msk.bf16.gmra.mxu1 %vm828_vm0, %v3111_v23  ;;  %v3112_v52 = vor.u32 %v3110_v22, %v2917_v27 }
 0x3e4   : > { %v2830_v31 = vadd.f32 %v6352_v6, %v2814_v0  ;;  %v2606_v63 = vpop.f32.mrf.mxu0  ;;  %4606 = vmatmul.msk.bf16.gmra.mxu2 %vm828_vm0, %v6314_v55  ;;  %v2923_v29 = vsel %vm2470_vm1, %v2911_v25, %v2922_v58  ;;  %v2681_v1 = vadd.f32 %v2680_v15, %v2604_v9 }
 0x3e5   : > { %4569 = vmatmul.msk.bf16.gmra.mxu0 %vm828_vm0, %v2923_v29  ;;  %v4838_v63 = vld [vmem:[%s6737_s12 + $0x18] sm:$0xff] }
 0x3e6   : > { %v2843_v56 = vmax.f32 %v2830_v31, 0.0  ;;  %3588 = vmatpush.bf16.msra.mxu3 %v4838_v63 }
 0x3e7   : > { %v2780_v4 = vpop.f32.mrf.mxu2 }
 0x3e8   : > { %v2856_v42 = vpack.c.bf16 %v2843_v56, %v2843_v56  ;;  %v2799_v54 = vadd.f32 %v2780_v4, %v2676_v48 }
 0x3ea   : > { %v2882_v59 = vunpack.c.l.b16 %v2856_v42  ;;  %v2815_v61 = vmul.f32 %v6346_v14, %v2799_v54 }
 0x3eb   : > { %v2682_v10 = vpop.f32.mrf.mxu1 }
 0x3ec   : > { %v2890_v45 = vpack.c.b16 %v2882_v59, %v2881_v18  ;;  %v2831_v41 = vadd.f32 %v6352_v6, %v2815_v61 }
 0x3ee   : > { %4555 = vmatmul.msk.bf16.gmra.mxu3 %vm828_vm0, %v2890_v45  ;;  %v2928_v55 = vshll.u32 %v2890_v45, 16  ;;  %v2925_v49 = vshrl.u32 %v2890_v45, 16  ;;  %v2844_v7 = vmax.f32 %v2831_v41, 0.0 }
 0x3ef   : > { %v2782_v35 = vpop.f32.mrf.mxu2 }
 0x3f0   : > { %v2800_v37 = vadd.f32 %v2782_v35, %v2678_v24  ;;  %v3113_v30 = vrot.slane %v2928_v55, 1  ;;  %v2927_v43 = vrot.slane %v2925_v49, 7  ;;  %v2857_v16 = vpack.c.bf16 %v2844_v7, %v2844_v7 }
 0x3f2   : > { %v2816_v47 = vmul.f32 %v6346_v14, %v2800_v37  ;;  %v3114_v62 = vsel %vm2684_vm4, %v3112_v52, %v3113_v30  ;;  %v2930_v25 = vor.u32 %v2928_v55, %v2927_v43  ;;  %v2883_v28 = vunpack.c.l.b16 %v2857_v16  ;;  %v6441_v55 = vld [vmem:[%s6736_s11] ss:$0 sm:$0xff] }
 0x3f3   : > { %4588 = vmatmul.msk.bf16.gmra.mxu1 %vm828_vm0, %v3114_v62  ;;  %v3115_v9 = vor.u32 %v3113_v30, %v2925_v49 }
 0x3f4   : > { %v2832_v12 = vadd.f32 %v6352_v6, %v2816_v47  ;;  %v2931_v51 = vsel %vm2470_vm1, %v2919_v46, %v2930_v25 }
 0x3f5   : > { %4570 = vmatmul.msk.bf16.gmra.mxu0 %vm828_vm0, %v2931_v51 }
 0x3f6   : > { %v2845_v5 = vmax.f32 %v2832_v12, 0.0 }
 0x3f7   : > { %v2785_v26 = vpop.f32.mrf.mxu2 }
 0x3f8   : > { %v2858_v50 = vpack.c.bf16 %v2845_v5, %v2845_v5  ;;  %v2801_v34 = vadd.f32 %v2785_v26, %v2681_v1 }
 0x3fa   : > { %v2884_v44 = vunpack.c.l.b16 %v2858_v50  ;;  %v2817_v19 = vmul.f32 %v6346_v14, %v2801_v34 }
 0x3fc   : > { %v2833_v38 = vadd.f32 %v6352_v6, %v2817_v19  ;;  %v2891_v8 = vpack.c.b16 %v2884_v44, %v2883_v28 }
 0x3fe   : > { %v2846_v57 = vmax.f32 %v2833_v38, 0.0  ;;  %4556 = vmatmul.msk.bf16.gmra.mxu3 %vm828_vm0, %v2891_v8  ;;  %v2936_v36 = vshll.u32 %v2891_v8, 16  ;;  %v2933_v39 = vshrl.u32 %v2891_v8, 16 }
 0x3ff   : > { %v2787_v3 = vpop.f32.mrf.mxu2 }
 0x400   : > { %v2859_v11 = vpack.c.bf16 %v2846_v57, %v2846_v57  ;;  %v3116_v20 = vrot.slane %v2936_v36, 1  ;;  %v2935_v13 = vrot.slane %v2933_v39, 7 }
 0x402   : > { %v2885_v53 = vunpack.c.l.b16 %v2859_v11  ;;  %v3117_v60 = vsel %vm2684_vm4, %v3115_v9, %v3116_v20  ;;  %v2938_v27 = vor.u32 %v2936_v36, %v2935_v13  ;;  %v3118_v0 = vor.u32 %v3116_v20, %v2933_v39 }
 0x403   : > { %4589 = vmatmul.msk.bf16.gmra.mxu1 %vm828_vm0, %v3117_v60 }
 0x404   : > { %v2892_v14 = vpack.c.b16 %v2885_v53, %v2885_v53  ;;  %v2939_v6 = vsel %vm2470_vm1, %v2927_v43, %v2938_v27 }
 0x405   : > { %4571 = vmatmul.msk.bf16.gmra.mxu0 %vm828_vm0, %v2939_v6 }
 0x406   : > { %v2941_v17 = vshrl.u32 %v2892_v14, 16  ;;  %v2944_v2 = vshll.u32 %v2892_v14, 16 }
 0x407   : > { %v3240_v21 = vpop.f32.mrf.mxu2 }
 0x408   : > { %v2943_v22 = vrot.slane %v2941_v17, 7  ;;  %v3119_v46 = vrot.slane %v2944_v2, 1 }
 0x40a   : > { %v2946_v23 = vor.u32 %v2944_v2, %v2943_v22  ;;  %v3120_v58 = vsel %vm2684_vm4, %v3118_v0, %v3119_v46  ;;  %v3121_v29 = vor.u32 %v3119_v46, %v2941_v17 }
 0x40c   : > { %v2947_v15 = vsel %vm2470_vm1, %v2935_v13, %v2946_v23  ;;  %v3123_v40 = vsel %vm2527_vm2, %v3121_v29, 0 }
 0x40e   : > { %4557 = vmatmul.msk.bf16.gmra.mxu3 %vm828_vm0, %v2892_v14 }
 0x40f   : > { %v3242_v32 = vpop.f32.mrf.mxu2 }
 0x413   : > { %4590 = vmatmul.msk.bf16.gmra.mxu1 %vm828_vm0, %v3120_v58 }
 0x415   : > { %4572 = vmatmul.msk.bf16.gmra.mxu0 %vm828_vm0, %v2947_v15 }
 0x417   : > { %v3245_v31 = vpop.f32.mrf.mxu2 }
 0x41f   : > { %v6426_v48 = vpop.f32.mrf.mxu2 }
 0x423   : > { %4591 = vmatmul.msk.bf16.gmra.mxu1 %vm828_vm0, %v3123_v40 }
 0x427   : > { %v6430_v56 = vpop.f32.mrf.mxu2 }
 0x42f   : > { %v6432_v4 = vpop.f32.mrf.mxu2 }
 0x430   : > { %v2994_v42 = vpop.f32.mrf.mxu3 }
 0x431   : > { %v3069_v54 = vpop.f32.mrf.mxu0 }
 0x432   : > { %v3070_v10 = vadd.f32 %v3069_v54, %v2994_v42 }
 0x437   : > { %v6434_v18 = vpop.f32.mrf.mxu2 }
 0x438   : > { %v2996_v59 = vpop.f32.mrf.mxu3 }
 0x439   : > { %v3071_v61 = vpop.f32.mrf.mxu0 }
 0x43a   : > { %v3072_v30 = vadd.f32 %v3071_v61, %v2996_v59 }
 0x43f   : > { %v6436_v45 = vpop.f32.mrf.mxu2 }
 0x440   : > { %v3170_v24 = vpop.f32.mrf.mxu1 }
 0x441   : > { %v3203_v41 = vadd.f32 %v3170_v24, %v3070_v10  ;;  %v2999_v49 = vpop.f32.mrf.mxu3 }
 0x442   : > { %v3074_v35 = vpop.f32.mrf.mxu0 }
 0x443   : > { %v3273_v37 = vadd.f32 %v3240_v21, %v3203_v41  ;;  %v3075_v38 = vadd.f32 %v3074_v35, %v2999_v49 }
 0x445   : > { %v3288_v52 = vadd.f32 %v6441_v55, %v3273_v37 }
 0x447   : > { %v3300_v43 = vmax.f32 %v3288_v52, 0.0  ;;  %v6444_v7 = vpop.f32.mrf.mxu2 }
 0x448   : > { %v3172_v47 = vpop.f32.mrf.mxu1 }
 0x449   : > { %v3313_v62 = vsel %vm3312_vm5, %v3300_v43, -inf  ;;  %v3321_v25 = vsel %vm3320_vm6, %v3300_v43, -inf  ;;  %v3204_v12 = vadd.f32 %v3172_v47, %v3072_v30  ;;  %v3001_v51 = vpop.f32.mrf.mxu3 }
 0x44a   : > { %v3314_v1 = vrot.slane %v3313_v62, 4  ;;  %v3322_v16 = vrot.slane %v3321_v25, 4  ;;  %v3076_v5 = vpop.f32.mrf.mxu0 }
 0x44b   : > { %v3274_v26 = vadd.f32 %v3242_v32, %v3204_v12  ;;  %v3077_v0 = vadd.f32 %v3076_v5, %v3001_v51 }
 0x44c   : > { %v3315_v50 = vmax.f32 %v3313_v62, %v3314_v1  ;;  %v3323_v34 = vmax.f32 %v3321_v25, %v3322_v16 }
 0x44d   : > { %v3289_v28 = vadd.f32 %v6441_v55, %v3274_v26 }
 0x44e   : > { %v3316_v44 = vrot.slane %v3315_v50, 2  ;;  %v3324_v19 = vrot.slane %v3323_v34, 2 }
 0x44f   : > { %v3301_v8 = vmax.f32 %v3289_v28, 0.0  ;;  %v6449_v57 = vpop.f32.mrf.mxu2 }
 0x450   : > { %v3317_v36 = vmax.f32 %v3315_v50, %v3316_v44  ;;  %v3175_v39 = vpop.f32.mrf.mxu1  ;;  %v3325_v3 = vmax.f32 %v3323_v34, %v3324_v19 }
 0x451   : > { %v3328_v11 = vsel %vm3312_vm5, %v3301_v8, -inf  ;;  %v3335_v9 = vsel %vm3320_vm6, %v3301_v8, -inf  ;;  %v3205_v20 = vadd.f32 %v3175_v39, %v3075_v38  ;;  %v3004_v13 = vpop.f32.mrf.mxu3 }
 0x452   : > { %v3329_v53 = vrot.slane %v3328_v11, 4  ;;  %v3336_v60 = vrot.slane %v3335_v9, 4  ;;  %v3079_v27 = vpop.f32.mrf.mxu0  ;;  %v3318_v6 = vrot.slane %v3317_v36, 1  ;;  %v3326_v2 = vrot.slane %v3325_v3, 1 }
 0x453   : > { %v3275_v14 = vadd.f32 %v3245_v31, %v3205_v20  ;;  %v3080_v5 = vadd.f32 %v3079_v27, %v3004_v13 }
 0x454   : > { %v3330_v21 = vmax.f32 %v3328_v11, %v3329_v53  ;;  %v3337_v17 = vmax.f32 %v3335_v9, %v3336_v60  ;;  %v3319_v15 = vmax.f32 %v3317_v36, %v3318_v6  ;;  %v3327_v42 = vmax.f32 %v3325_v3, %v3326_v2 }
 0x455   : > { %v3290_v22 = vadd.f32 %v6441_v55, %v3275_v14 }
 0x456   : > { %v3331_v46 = vrot.slane %v3330_v21, 2  ;;  %v3338_v32 = vrot.slane %v3337_v17, 2  ;;  %v3482_v62 = vsel %vm2527_vm2, %v3319_v15, %v3327_v42 }
 0x457   : > { %v3302_v23 = vmax.f32 %v3290_v22, 0.0  ;;  %v6454_v58 = vpop.f32.mrf.mxu2 }
 0x458   : > { %v3332_v63 = vmax.f32 %v3330_v21, %v3331_v46  ;;  %v3339_v29 = vmax.f32 %v3337_v17, %v3338_v32  ;;  %v3177_v40 = vpop.f32.mrf.mxu1 }
 0x459   : > { %v3342_v54 = vsel %vm3312_vm5, %v3302_v23, -inf  ;;  %v3349_v31 = vsel %vm3320_vm6, %v3302_v23, -inf  ;;  %v3206_v59 = vadd.f32 %v3177_v40, %v3077_v0  ;;  %v3006_v61 = vpop.f32.mrf.mxu3  ;;  %v4837_v0 = vld [vmem:[%s6737_s12 + $0x10] sm:$0xff] }
 0x45a   : > { %v3333_v10 = vrot.slane %v3332_v63, 1  ;;  %v3340_v24 = vrot.slane %v3339_v29, 1  ;;  %v3343_v41 = vrot.slane %v3342_v54, 4  ;;  %v3350_v49 = vrot.slane %v3349_v31, 4  ;;  %v3081_v35 = vpop.f32.mrf.mxu0  ;;  %3589 = vmatpush.bf16.msra.mxu3 %v4837_v0 }
 0x45b   : > { %v3276_v37 = vadd.f32 %v6426_v48, %v3206_v59  ;;  %v3082_v22 = vadd.f32 %v3081_v35, %v3006_v61 }
 0x45c   : > { %v3334_v52 = vmax.f32 %v3332_v63, %v3333_v10  ;;  %v3341_v30 = vmax.f32 %v3339_v29, %v3340_v24  ;;  %v3344_v43 = vmax.f32 %v3342_v54, %v3343_v41  ;;  %v3351_v47 = vmax.f32 %v3349_v31, %v3350_v49 }
 0x45d   : > { %v3291_v25 = vadd.f32 %v6441_v55, %v3276_v37 }
 0x45e   : > { %v3484_v12 = vsel %vm3483_vm7, %v3482_v62, %v3334_v52  ;;  %v3345_v51 = vrot.slane %v3344_v43, 2  ;;  %v3352_v1 = vrot.slane %v3351_v47, 2 }
 0x45f   : > { %v3486_v16 = vsel %vm3485_vm8, %v3484_v12, %v3341_v30  ;;  %v3303_v26 = vmax.f32 %v3291_v25, 0.0  ;;  %v6463_v50 = vpop.f32.mrf.mxu2 }
 0x460   : > { %v3346_v34 = vmax.f32 %v3344_v43, %v3345_v51  ;;  %v3353_v48 = vmax.f32 %v3351_v47, %v3352_v1  ;;  %v3180_v28 = vpop.f32.mrf.mxu1 }
 0x461   : > { %v3356_v44 = vsel %vm3312_vm5, %v3303_v26, -inf  ;;  %v3363_v19 = vsel %vm3320_vm6, %v3303_v26, -inf  ;;  %v3207_v38 = vadd.f32 %v3180_v28, %v3080_v5  ;;  %v3009_v8 = vpop.f32.mrf.mxu3 }
 0x462   : > { %v3347_v36 = vrot.slane %v3346_v34, 1  ;;  %v3354_v39 = vrot.slane %v3353_v48, 1  ;;  %v3357_v3 = vrot.slane %v3356_v44, 4  ;;  %v3364_v11 = vrot.slane %v3363_v19, 4  ;;  %v3084_v9 = vpop.f32.mrf.mxu0 }
 0x463   : > { %v3277_v20 = vadd.f32 %v6430_v56, %v3207_v38  ;;  %v3085_v25 = vadd.f32 %v3084_v9, %v3009_v8  ;;  %v4854_v8 = vld [vmem:[%s6739_s14 + $0x8] sm:$0xff] }
 0x464   : > { %v3348_v13 = vmax.f32 %v3346_v34, %v3347_v36  ;;  %v3355_v53 = vmax.f32 %v3353_v48, %v3354_v39  ;;  %v3358_v60 = vmax.f32 %v3356_v44, %v3357_v3  ;;  %v3365_v27 = vmax.f32 %v3363_v19, %v3364_v11  ;;  %3934 = vmatpush.bf16.msrb.mxu2 %v4854_v8 }
 0x465   : > { %v3292_v14 = vadd.f32 %v6441_v55, %v3277_v20 }
 0x466   : > { %v3488_v6 = vsel %vm3487_vm9, %v3486_v16, %v3348_v13  ;;  %v3359_v21 = vrot.slane %v3358_v60, 2  ;;  %v3366_v17 = vrot.slane %v3365_v27, 2 }
 0x467   : > { %v3490_v2 = vsel %vm3489_vm10, %v3488_v6, %v3355_v53  ;;  %v3304_v46 = vmax.f32 %v3292_v14, 0.0  ;;  %v3270_v32 = vpop.f32.mrf.mxu2 }
 0x468   : > { %v3360_v56 = vmax.f32 %v3358_v60, %v3359_v21  ;;  %v3367_v23 = vmax.f32 %v3365_v27, %v3366_v17  ;;  %v3182_v15 = vpop.f32.mrf.mxu1 }
 0x469   : > { %v3370_v63 = vsel %vm3312_vm5, %v3304_v46, -inf  ;;  %v3377_v29 = vsel %vm3320_vm6, %v3304_v46, -inf  ;;  %v3208_v40 = vadd.f32 %v3182_v15, %v3082_v22  ;;  %v3011_v42 = vpop.f32.mrf.mxu3 }
 0x46a   : > { %v3361_v54 = vrot.slane %v3360_v56, 1  ;;  %v3368_v31 = vrot.slane %v3367_v23, 1  ;;  %v3371_v59 = vrot.slane %v3370_v63, 4  ;;  %v3378_v61 = vrot.slane %v3377_v29, 4  ;;  %v3086_v10 = vpop.f32.mrf.mxu0 }
 0x46b   : > { %v3278_v24 = vadd.f32 %v6432_v4, %v3208_v40  ;;  %v3087_v53 = vadd.f32 %v3086_v10, %v3011_v42 }
 0x46c   : > { %v3362_v41 = vmax.f32 %v3360_v56, %v3361_v54  ;;  %v3369_v49 = vmax.f32 %v3367_v23, %v3368_v31  ;;  %v3372_v35 = vmax.f32 %v3370_v63, %v3371_v59  ;;  %v3379_v37 = vmax.f32 %v3377_v29, %v3378_v61 }
 0x46d   : > { %v3293_v52 = vadd.f32 %v6441_v55, %v3278_v24 }
 0x46e   : > { %v3492_v30 = vsel %vm3491_vm11, %v3490_v2, %v3362_v41  ;;  %v3373_v43 = vrot.slane %v3372_v35, 2  ;;  %v3380_v47 = vrot.slane %v3379_v37, 2 }
 0x46f   : > { %v6480_v62 = vsel %vm3493_vm12, %v3492_v30, %v3369_v49  ;;  %v3305_v12 = vmax.f32 %v3293_v52, 0.0  ;;  %v3271_v51 = vpop.f32.mrf.mxu2 }
 0x470   : > { %v3374_v1 = vmax.f32 %v3372_v35, %v3373_v43  ;;  %v3381_v16 = vmax.f32 %v3379_v37, %v3380_v47  ;;  %v3185_v5 = vpop.f32.mrf.mxu1 }
 0x471   : > { %v3384_v4 = vsel %vm3312_vm5, %v3305_v12, -inf  ;;  %v3391_v26 = vsel %vm3320_vm6, %v3305_v12, -inf  ;;  %v3209_v34 = vadd.f32 %v3185_v5, %v3085_v25  ;;  %v3014_v48 = vpop.f32.mrf.mxu3 }
 0x472   : > { %v3385_v28 = vrot.slane %v3384_v4, 4  ;;  %v3089_v44 = vpop.f32.mrf.mxu0  ;;  %v3392_v19 = vrot.slane %v3391_v26, 4  ;;  %v3375_v36 = vrot.slane %v3374_v1, 1  ;;  %v3382_v39 = vrot.slane %v3381_v16, 1 }
 0x473   : > { %v3279_v38 = vadd.f32 %v6434_v18, %v3209_v34  ;;  %v4853_v18 = vld [vmem:[%s6739_s14] sm:$0xff]  ;;  %v3090_v35 = vadd.f32 %v3089_v44, %v3014_v48 }
 0x474   : > { %v3386_v3 = vmax.f32 %v3384_v4, %v3385_v28  ;;  %v3393_v11 = vmax.f32 %v3391_v26, %v3392_v19  ;;  %v3376_v27 = vmax.f32 %v3374_v1, %v3375_v36  ;;  %v3383_v14 = vmax.f32 %v3381_v16, %v3382_v39  ;;  %3935 = vmatpush.bf16.msrb.mxu2 %v4853_v18  ;;  %v6504_v26 = vld [vmem:[%s6740_s15] ss:$0 sm:$0xff] }
 0x475   : > { %v3294_v9 = vadd.f32 %v6441_v55, %v3279_v38  ;;  %v3517_v8 = vmul.f32 %v6504_v26, %v6480_v62 }
 0x476   : > { %v3387_v20 = vrot.slane %v3386_v3, 2  ;;  %v3394_v13 = vrot.slane %v3393_v11, 2  ;;  %v3495_v31 = vsel %vm2527_vm2, %v3376_v27, %v3383_v14 }
 0x477   : > { %v3306_v60 = vmax.f32 %v3294_v9, 0.0 }
 0x478   : > { %v3388_v6 = vmax.f32 %v3386_v3, %v3387_v20  ;;  %v3187_v21 = vpop.f32.mrf.mxu1  ;;  %v3395_v17 = vmax.f32 %v3393_v11, %v3394_v13  ;;  %v6514_v11 = vld [vmem:[%s6741_s16] ss:$0 sm:$0xff] }
 0x479   : > { %v3398_v2 = vsel %vm3312_vm5, %v3306_v60, -inf  ;;  %v3405_v22 = vsel %vm3320_vm6, %v3306_v60, -inf  ;;  %v3210_v46 = vadd.f32 %v3187_v21, %v3087_v53  ;;  %v3016_v32 = vpop.f32.mrf.mxu3 }
 0x47a   : > { %v3389_v0 = vrot.slane %v3388_v6, 1  ;;  %v3399_v56 = vrot.slane %v3398_v2, 4  ;;  %v3406_v23 = vrot.slane %v3405_v22, 4  ;;  %v3091_v15 = vpop.f32.mrf.mxu0  ;;  %v3396_v63 = vrot.slane %v3395_v17, 1 }
 0x47b   : > { %v3280_v29 = vadd.f32 %v6436_v45, %v3210_v46  ;;  %v3092_v9 = vadd.f32 %v3091_v15, %v3016_v32  ;;  %v3523_v46 = vadd.f32 %v6514_v11, %v3517_v8 }
 0x47c   : > { %v3390_v40 = vmax.f32 %v3388_v6, %v3389_v0  ;;  %v3400_v42 = vmax.f32 %v3398_v2, %v3399_v56  ;;  %v3407_v54 = vmax.f32 %v3405_v22, %v3406_v23  ;;  %v3397_v59 = vmax.f32 %v3395_v17, %v3396_v63  ;;  %v4836_v63 = vld [vmem:[%s6737_s12 + $0x8] sm:$0xff] }
 0x47d   : > { %v3295_v61 = vadd.f32 %v6441_v55, %v3280_v29  ;;  %3624 = vmatpush.bf16.msrb.mxu3 %v4836_v63 }
 0x47e   : > { %v3496_v10 = vsel %vm3483_vm7, %v3495_v31, %v3390_v40  ;;  %v3401_v24 = vrot.slane %v3400_v42, 2  ;;  %v3408_v41 = vrot.slane %v3407_v54, 2  ;;  %v3526_v31 = vmax.f32 %v3523_v46, 0.0 }
 0x47f   : > { %v3497_v49 = vsel %vm3485_vm8, %v3496_v10, %v3397_v59  ;;  %v3307_v37 = vmax.f32 %v3295_v61, 0.0 }
 0x480   : > { %v3402_v52 = vmax.f32 %v3400_v42, %v3401_v24  ;;  %v3409_v30 = vmax.f32 %v3407_v54, %v3408_v41  ;;  %v3190_v43 = vpop.f32.mrf.mxu1 }
 0x481   : > { %v3412_v45 = vsel %vm3312_vm5, %v3307_v37, -inf  ;;  %v3419_v47 = vsel %vm3320_vm6, %v3307_v37, -inf  ;;  %v3211_v25 = vadd.f32 %v3190_v43, %v3090_v35  ;;  %v3019_v12 = vpop.f32.mrf.mxu3 }
 0x482   : > { %v3403_v51 = vrot.slane %v3402_v52, 1  ;;  %v3410_v1 = vrot.slane %v3409_v30, 1  ;;  %v3413_v16 = vrot.slane %v3412_v45, 4  ;;  %v3420_v5 = vrot.slane %v3419_v47, 4  ;;  %v3094_v4 = vpop.f32.mrf.mxu0 }
 0x483   : > { %v3281_v34 = vadd.f32 %v6444_v7, %v3211_v25  ;;  %v3095_v61 = vadd.f32 %v3094_v4, %v3019_v12  ;;  %v3529_v12 = vpack.c.bf16 %v3526_v31, %v3526_v31 }
 0x484   : > { %v3404_v48 = vmax.f32 %v3402_v52, %v3403_v51  ;;  %v3411_v28 = vmax.f32 %v3409_v30, %v3410_v1  ;;  %v3414_v44 = vmax.f32 %v3412_v45, %v3413_v16  ;;  %v3421_v19 = vmax.f32 %v3419_v47, %v3420_v5 }
 0x485   : > { %v3296_v38 = vadd.f32 %v6441_v55, %v3281_v34 }
 0x486   : > { %v3498_v36 = vsel %vm3487_vm9, %v3497_v49, %v3404_v48  ;;  %v3415_v39 = vrot.slane %v3414_v44, 2  ;;  %v3422_v3 = vrot.slane %v3421_v19, 2 }
 0x487   : > { %v3499_v7 = vsel %vm3489_vm10, %v3498_v36, %v3411_v28  ;;  %v3308_v20 = vmax.f32 %v3296_v38, 0.0 }
 0x488   : > { %v3416_v13 = vmax.f32 %v3414_v44, %v3415_v39  ;;  %v3423_v53 = vmax.f32 %v3421_v19, %v3422_v3  ;;  %v3192_v60 = vpop.f32.mrf.mxu1  ;;  %v3535_v39 = vunpack.c.l.b16 %v3529_v12 }
 0x489   : > { %v3426_v27 = vsel %vm3312_vm5, %v3308_v20, -inf  ;;  %v3433_v14 = vsel %vm3320_vm6, %v3308_v20, -inf  ;;  %v3212_v6 = vadd.f32 %v3192_v60, %v3092_v9  ;;  %v3021_v21 = vpop.f32.mrf.mxu3 }
 0x48a   : > { %v3417_v18 = vrot.slane %v3416_v13, 1  ;;  %v3424_v62 = vrot.slane %v3423_v53, 1  ;;  %v3427_v17 = vrot.slane %v3426_v27, 4  ;;  %v3434_v2 = vrot.slane %v3433_v14, 4  ;;  %v3096_v22 = vpop.f32.mrf.mxu0 }
 0x48b   : > { %v3282_v0 = vadd.f32 %v6449_v57, %v3212_v6  ;;  %v3097_v38 = vadd.f32 %v3096_v22, %v3021_v21 }
 0x48c   : > { %v3418_v32 = vmax.f32 %v3416_v13, %v3417_v18  ;;  %v3425_v56 = vmax.f32 %v3423_v53, %v3424_v62  ;;  %v3428_v23 = vmax.f32 %v3426_v27, %v3427_v17  ;;  %v3435_v15 = vmax.f32 %v3433_v14, %v3434_v2 }
 0x48d   : > { %v3297_v29 = vadd.f32 %v6441_v55, %v3282_v0 }
 0x48e   : > { %v3500_v40 = vsel %vm3491_vm11, %v3499_v7, %v3418_v32  ;;  %v3429_v42 = vrot.slane %v3428_v23, 2  ;;  %v3436_v54 = vrot.slane %v3435_v15, 2  ;;  %v4835_v32 = vld [vmem:[%s6737_s12] sm:$0xff] }
 0x48f   : > { %v3501_v59 = vsel %vm3493_vm12, %v3500_v40, %v3425_v56  ;;  %v3309_v57 = vmax.f32 %v3297_v29, 0.0  ;;  %3625 = vmatpush.bf16.msrb.mxu3 %v4835_v32  ;;  %v4851_v32 = vld [vmem:[%s6738_s13 + $0x50] sm:$0xff] }
 0x490   : > { %v3518_v10 = vmul.f32 %v6504_v26, %v3501_v59  ;;  %v3430_v24 = vmax.f32 %v3428_v23, %v3429_v42  ;;  %v3437_v41 = vmax.f32 %v3435_v15, %v3436_v54  ;;  %v3195_v49 = vpop.f32.mrf.mxu1 }
 0x491   : > { %v3440_v35 = vsel %vm3312_vm5, %v3309_v57, -inf  ;;  %v3447_v37 = vsel %vm3320_vm6, %v3309_v57, -inf  ;;  %v3213_v52 = vadd.f32 %v3195_v49, %v3095_v61  ;;  %v3024_v30 = vpop.f32.mrf.mxu3 }
 0x492   : > { %v3524_v43 = vadd.f32 %v6514_v11, %v3518_v10  ;;  %v3441_v45 = vrot.slane %v3440_v35, 4  ;;  %v3099_v47 = vpop.f32.mrf.mxu0  ;;  %v3448_v25 = vrot.slane %v3447_v37, 4  ;;  %v3431_v16 = vrot.slane %v3430_v24, 1 }
 0x493   : > { %v3283_v51 = vadd.f32 %v6454_v58, %v3213_v52  ;;  %v3438_v5 = vrot.slane %v3437_v41, 1 }
 0x494   : > { %v3527_v1 = vmax.f32 %v3524_v43, 0.0  ;;  %v3442_v4 = vmax.f32 %v3440_v35, %v3441_v45  ;;  %v3449_v34 = vmax.f32 %v3447_v37, %v3448_v25  ;;  %v3432_v3 = vmax.f32 %v3430_v24, %v3431_v16 }
 0x495   : > { %v3298_v48 = vadd.f32 %v6441_v55, %v3283_v51  ;;  %v3439_v8 = vmax.f32 %v3437_v41, %v3438_v5 }
 0x496   : > { %v3443_v28 = vrot.slane %v3442_v4, 2  ;;  %v3530_v44 = vpack.c.bf16 %v3527_v1, %v3527_v1  ;;  %v3450_v19 = vrot.slane %v3449_v34, 2 }
 0x497   : > { %v3310_v36 = vmax.f32 %v3298_v48, 0.0  ;;  %v3502_v56 = vsel %vm2527_vm2, %v3432_v3, %v3439_v8 }
 0x498   : > { %v3444_v7 = vmax.f32 %v3442_v4, %v3443_v28  ;;  %v3197_v9 = vpop.f32.mrf.mxu1  ;;  %v3536_v20 = vunpack.c.l.b16 %v3530_v44  ;;  %v3451_v58 = vmax.f32 %v3449_v34, %v3450_v19  ;;  %v4840_v34 = vld [vmem:[%s6737_s12 + $0x28] sm:$0xff] }
 0x499   : > { %v3454_v13 = vsel %vm3312_vm5, %v3310_v36, -inf  ;;  %v3461_v53 = vsel %vm3320_vm6, %v3310_v36, -inf  ;;  %v3214_v60 = vadd.f32 %v3197_v9, %v3097_v38  ;;  %v3025_v27 = vpop.f32.mrf.mxu3 }
 0x49a   : > { %v3445_v14 = vrot.slane %v3444_v7, 1  ;;  %v3455_v6 = vrot.slane %v3454_v13, 4  ;;  %v3462_v18 = vrot.slane %v3461_v53, 4  ;;  %v3100_v62 = vpop.f32.mrf.mxu0  ;;  %v6535_v17 = vpack.c.b16 %v3536_v20, %v3535_v39 }
 0x49b   : > { %v3452_v21 = vrot.slane %v3451_v58, 1  ;;  %v3284_v2 = vadd.f32 %v6463_v50, %v3214_v60 }
 0x49c   : > { %v3446_v22 = vmax.f32 %v3444_v7, %v3445_v14  ;;  %v3456_v46 = vmax.f32 %v3454_v13, %v3455_v6  ;;  %v3463_v0 = vmax.f32 %v3461_v53, %v3462_v18  ;;  %4619 = vmatmul.msk.bf16.vlgmr.msra.gmra.mxu3 %vm828_vm0, %v6535_v17  ;;  %4723 = vmatmul.msk.bf16.vlgmr.msrb.gmra.mxu2 %vm828_vm0, %v6535_v17  ;;  %v3544_v39 = vshll.u32 %v6535_v17, 16 }
 0x49d   : > { %v3453_v23 = vmax.f32 %v3451_v58, %v3452_v21  ;;  %v3299_v15 = vadd.f32 %v6441_v55, %v3284_v2  ;;  %3675 = vmatpush.bf16.msra.mxu3 %v4840_v34  ;;  %v3541_v9 = vshrl.u32 %v6535_v17, 16  ;;  %v4866_v21 = vld [vmem:[%s6745_s20 + $0x58] sm:$0xff] }
 0x49e   : > { %v3503_v50 = vsel %vm3483_vm7, %v3502_v56, %v3446_v22  ;;  %v3457_v63 = vrot.slane %v3456_v46, 2  ;;  %v3464_v29 = vrot.slane %v3463_v0, 2  ;;  %v3636_v7 = vrot.slane %v3544_v39, 1  ;;  %v4844_v22 = vld [vmem:[%s6738_s13 + $0x18] sm:$0xff] }
 0x49f   : > { %v3504_v40 = vsel %vm3485_vm8, %v3503_v50, %v3453_v23  ;;  %v3311_v42 = vmax.f32 %v3299_v15, 0.0  ;;  %v3543_v60 = vrot.slane %v3541_v9, 7  ;;  %3831 = vmatpush.bf16.msrb.mxu0 %v4844_v22 }
 0x4a0   : > { %v3458_v54 = vmax.f32 %v3456_v46, %v3457_v63  ;;  %v3465_v31 = vmax.f32 %v3463_v0, %v3464_v29  ;;  %v3200_v59 = vpop.f32.mrf.mxu1  ;;  %v3637_v53 = vor.u32 %v3636_v7, %v3541_v9  ;;  %v4852_v46 = vld [vmem:[%s6738_s13 + $0x58] sm:$0xff]  ;;  %v4843_v0 = vld [vmem:[%s6738_s13 + $0x10] sm:$0xff]  ;;  %v4842_v63 = vld [vmem:[%s6738_s13 + $0x8] sm:$0xff] }
 0x4a1   : > { %v3468_v61 = vsel %vm3312_vm5, %v3311_v42, -inf  ;;  %v3475_v57 = vsel %vm3320_vm6, %v3311_v42, -inf  ;;  %v3546_v18 = vor.u32 %v3544_v39, %v3543_v60  ;;  %3895 = vmatpush.bf16.msrb.mxu1 %v4852_v46  ;;  %v4850_v29 = vld [vmem:[%s6738_s13 + $0x48] sm:$0xff]  ;;  %v4848_v59 = vld [vmem:[%s6738_s13 + $0x38] sm:$0xff] }
 0x4a2   : > { %v3459_v10 = vrot.slane %v3458_v54, 1  ;;  %v3466_v24 = vrot.slane %v3465_v31, 1  ;;  %v3469_v41 = vrot.slane %v3468_v61, 4  ;;  %v3476_v49 = vrot.slane %v3475_v57, 4 }
 0x4a3   : > { %v3556_v62 = vsel %vm6169_vm3, 0, %v3546_v18  ;;  %3832 = vmatpush.bf16.msrb.mxu0 %v4843_v0 }
 0x4a4   : > { %v3460_v55 = vmax.f32 %v3458_v54, %v3459_v10  ;;  %v3467_v35 = vmax.f32 %v3465_v31, %v3466_v24  ;;  %v3470_v37 = vmax.f32 %v3468_v61, %v3469_v41  ;;  %v3477_v52 = vmax.f32 %v3475_v57, %v3476_v49  ;;  %v4847_v10 = vld [vmem:[%s6738_s13 + $0x30] sm:$0xff]  ;;  %v4841_v24 = vld [vmem:[%s6738_s13] sm:$0xff]  ;;  %v4846_v41 = vld [vmem:[%s6738_s13 + $0x28] sm:$0xff] }
 0x4a5   : > { %3896 = vmatpush.bf16.msrb.mxu1 %v4851_v32 }
 0x4a6   : > { %v3505_v30 = vsel %vm3487_vm9, %v3504_v40, %v3460_v55  ;;  %v3471_v43 = vrot.slane %v3470_v37, 2  ;;  %v3478_v45 = vrot.slane %v3477_v52, 2  ;;  %v4845_v55 = vld [vmem:[%s6738_s13 + $0x20] sm:$0xff] }
 0x4a7   : > { %v3506_v47 = vsel %vm3489_vm10, %v3505_v30, %v3467_v35  ;;  %3833 = vmatpush.bf16.msrb.mxu0 %v4842_v63  ;;  %v4849_v35 = vld [vmem:[%s6738_s13 + $0x40] sm:$0xff] }
 0x4a8   : > { %v3472_v25 = vmax.f32 %v3470_v37, %v3471_v43  ;;  %v3479_v51 = vmax.f32 %v3477_v52, %v3478_v45  ;;  %v3201_v12 = vpop.f32.mrf.mxu1  ;;  %v4892_v30 = vld [vmem:[%s6742_s17] ss:$0 sm:$0xff] }
 0x4a9   : > { %3897 = vmatpush.bf16.msrb.mxu1 %v4850_v29 }
 0x4aa   : > { %v3473_v1 = vrot.slane %v3472_v25, 1  ;;  %v3480_v16 = vrot.slane %v3479_v51, 1 }
 0x4ab   : > { %3834 = vmatpush.bf16.msrb.mxu0 %v4841_v24 }
 0x4ac   : > { %v3474_v5 = vmax.f32 %v3472_v25, %v3473_v1  ;;  %v3481_v4 = vmax.f32 %v3479_v51, %v3480_v16  ;;  %v4893_v25 = vld [vmem:[%s6743_s18] ss:$0 sm:$0xff] }
 0x4ad   : > { %3898 = vmatpush.bf16.msrb.mxu1 %v4849_v35  ;;  %v4865_v35 = vld [vmem:[%s6745_s20 + $0x50] sm:$0xff] }
 0x4ae   : > { %v3507_v48 = vsel %vm3491_vm11, %v3506_v47, %v3474_v5 }
 0x4af   : > { %v3508_v28 = vsel %vm3493_vm12, %v3507_v48, %v3481_v4 }
 0x4b0   : > { %v3519_v44 = vmul.f32 %v6504_v26, %v3508_v28  ;;  %v4839_v26 = vld [vmem:[%s6737_s12 + $0x20] sm:$0xff] }
 0x4b1   : > { %3676 = vmatpush.bf16.msra.mxu3 %v4839_v26  ;;  %4156 = vmatpush.bf16.msra.mxu1 %v4866_v21 }
 0x4b2   : > { %v3525_v19 = vadd.f32 %v6514_v11, %v3519_v44 }
 0x4b4   : > { %v3528_v38 = vmax.f32 %v3525_v19, 0.0 }
 0x4b5   : > { %4157 = vmatpush.bf16.msra.mxu1 %v4865_v35 }
 0x4b6   : > { %v3531_v36 = vpack.c.bf16 %v3528_v38, %v3528_v38 }
 0x4b8   : > { %v3537_v3 = vunpack.c.l.b16 %v3531_v36 }
 0x4ba   : > { %v3539_v8 = vpack.c.b16 %v3537_v3, %v3537_v3 }
 0x4bc   : > { %4620 = vmatmul.msk.bf16.gmra.mxu3 %vm828_vm0, %v3539_v8  ;;  %4724 = vmatmul.msk.bf16.gmra.mxu2 %vm828_vm0, %v3539_v8  ;;  %v3548_v20 = vshrl.u32 %v3539_v8, 16  ;;  %v3551_v58 = vshll.u32 %v3539_v8, 16 }
 0x4be   : > { %v3550_v11 = vrot.slane %v3548_v20, 7  ;;  %v3638_v13 = vrot.slane %v3551_v58, 1 }
 0x4c0   : > { %v3553_v27 = vor.u32 %v3551_v58, %v3550_v11  ;;  %v3639_v14 = vsel %vm2684_vm4, %v3637_v53, %v3638_v13  ;;  %v3640_v17 = vor.u32 %v3638_v13, %v3548_v20 }
 0x4c2   : > { %v3554_v6 = vsel %vm2470_vm1, %v3543_v60, %v3553_v27  ;;  %v3645_v2 = vsel %vm6575_vm14, %v3640_v17, 0 }
 0x4cc   : > { %4629 = vmatmul.msk.bf16.vlgmr.msrb.gmra.mxu3 %vm828_vm0, %v3556_v62 }
 0x4cd   : > { %3783 = vmatpush.bf16.msrb.mxu3 %v4848_v59 }
 0x4d1   : > { %3784 = vmatpush.bf16.msrb.mxu3 %v4847_v10 }
 0x4d5   : > { %3785 = vmatpush.bf16.msrb.mxu3 %v4846_v41  ;;  %v4856_v41 = vld [vmem:[%s6745_s20 + $0x8] sm:$0xff] }
 0x4d9   : > { %3786 = vmatpush.bf16.msrb.mxu3 %v4845_v55  ;;  %v4862_v55 = vld [vmem:[%s6745_s20 + $0x38] sm:$0xff] }
 0x4dc   : > { %4630 = vmatmul.msk.bf16.gmra.mxu3 %vm828_vm0, %v3554_v6 }
 0x4ec   : > { %4643 = vmatmul.msk.bf16.vlgmr.msra.gmra.mxu3 %vm828_vm0, %v3639_v14 }
 0x4ed   : > { %4066 = vmatpush.bf16.msra.mxu3 %v4862_v55 }
 0x4fc   : > { %4644 = vmatmul.msk.bf16.gmra.mxu3 %vm828_vm0, %v3645_v2  ;;  %vm3958_vm0 = vcmask 519168  }
 0x51f   : > { %v3591_v56 = vpop.f32.mrf.mxu3  ;;  %v6594_v23 = vpop.f32.mrf.mxu2 }
 0x527   : > { %v3593_v15 = vpop.f32.mrf.mxu3  ;;  %v6596_v50 = vpop.f32.mrf.mxu2 }
 0x53f   : > { %v3596_v40 = vpop.f32.mrf.mxu3  ;;  %v6604_v42 = vpop.f32.mrf.mxu2 }
 0x547   : > { %v3598_v54 = vpop.f32.mrf.mxu3  ;;  %v3944_v31 = vpop.f32.mrf.mxu2 }
 0x548   : > { %v4857_v54 = vld [vmem:[%s6745_s20 + $0x10] sm:$0xff] }
 0x54f   : > { %v3627_v61 = vpop.f32.mrf.mxu3 }
 0x550   : > { %v3628_v52 = vadd.f32 %v3627_v61, %v3591_v56 }
 0x557   : > { %v3629_v57 = vpop.f32.mrf.mxu3 }
 0x558   : > { %v3630_v51 = vadd.f32 %v3629_v57, %v3593_v15  ;;  %v4894_v57 = vld [vmem:[%s6744_s19] ss:$0 sm:$0xff] }
 0x55f   : > { %v3632_v49 = vpop.f32.mrf.mxu3 }
 0x560   : > { %v3633_v48 = vadd.f32 %v3632_v49, %v3596_v40  ;;  %v4858_v40 = vld [vmem:[%s6745_s20 + $0x18] sm:$0xff] }
 0x561   : > { %4106 = vmatpush.bf16.msra.mxu0 %v4858_v40 }
 0x565   : > { %4107 = vmatpush.bf16.msra.mxu0 %v4857_v54 }
 0x567   : > { %v3634_v37 = vpop.f32.mrf.mxu3 }
 0x569   : > { %4108 = vmatpush.bf16.msra.mxu0 %v4856_v41 }
 0x56f   : > { %v3678_v43 = vpop.f32.mrf.mxu3 }
 0x570   : > { %v3687_v45 = vadd.f32 %v3678_v43, %v3628_v52  ;;  %v4855_v52 = vld [vmem:[%s6745_s20] sm:$0xff] }
 0x571   : > { %4109 = vmatpush.bf16.msra.mxu0 %v4855_v52 }
 0x572   : > { %v3693_v47 = vmul.f32 %v4892_v30, %v3687_v45  ;;  %v4861_v45 = vld [vmem:[%s6745_s20 + $0x30] sm:$0xff] }
 0x573   : > { %4067 = vmatpush.bf16.msra.mxu3 %v4861_v45 }
 0x574   : > { %v3699_v12 = vadd.f32 %v4893_v25, %v3693_v47  ;;  %v4864_v47 = vld [vmem:[%s6745_s20 + $0x48] sm:$0xff] }
 0x575   : > { %4158 = vmatpush.bf16.msra.mxu1 %v4864_v47 }
 0x576   : > { %v3702_v5 = vmax.f32 %v3699_v12, 0.0 }
 0x577   : > { %v3680_v1 = vpop.f32.mrf.mxu3 }
 0x578   : > { %v3688_v16 = vadd.f32 %v3680_v1, %v3630_v51  ;;  %v3705_v28 = vpack.c.bf16 %v3702_v5, %v3702_v5 }
 0x57a   : > { %v3694_v4 = vmul.f32 %v4892_v30, %v3688_v16  ;;  %v3711_v39 = vunpack.c.l.b16 %v3705_v28  ;;  %v4860_v28 = vld [vmem:[%s6745_s20 + $0x28] sm:$0xff] }
 0x57b   : > { %4068 = vmatpush.bf16.msra.mxu3 %v4860_v28  ;;  %v4870_v28 = vld [vmem:[%s6748_s23 + $0x18] sm:$0xff] }
 0x57c   : > { %v3700_v34 = vadd.f32 %v4893_v25, %v3694_v4  ;;  %4226 = vmatpush.bf16.msra.mxu2 %v4870_v28 }
 0x57e   : > { %v3703_v44 = vmax.f32 %v3700_v34, 0.0 }
 0x57f   : > { %v3683_v19 = vpop.f32.mrf.mxu3 }
 0x580   : > { %v3706_v38 = vpack.c.bf16 %v3703_v44, %v3703_v44  ;;  %v3689_v36 = vadd.f32 %v3683_v19, %v3633_v48  ;;  %v4863_v44 = vld [vmem:[%s6745_s20 + $0x40] sm:$0xff] }
 0x581   : > { %4159 = vmatpush.bf16.msra.mxu1 %v4863_v44  ;;  %v4869_v44 = vld [vmem:[%s6748_s23 + $0x10] sm:$0xff] }
 0x582   : > { %v3712_v3 = vunpack.c.l.b16 %v3706_v38  ;;  %v3695_v8 = vmul.f32 %v4892_v30, %v3689_v36  ;;  %v4859_v36 = vld [vmem:[%s6745_s20 + $0x20] sm:$0xff]  ;;  %4227 = vmatpush.bf16.msra.mxu2 %v4869_v44 }
 0x583   : > { %4069 = vmatpush.bf16.msra.mxu3 %v4859_v36 }
 0x584   : > { %v3714_v7 = vpack.c.b16 %v3712_v3, %v3711_v39  ;;  %v3701_v9 = vadd.f32 %v4893_v25, %v3695_v8 }
 0x586   : > { %v3717_v20 = vshrl.u32 %v3714_v7, 16  ;;  %v3704_v58 = vmax.f32 %v3701_v9, 0.0  ;;  %4669 = vmatmul.msk.bf16.vlgmr.msrb.gmra.mxu3 %vm3774_vm15, %v3714_v7  ;;  %v3720_v53 = vshll.u32 %v3714_v7, 16 }
 0x587   : > { %v3685_v26 = vpop.f32.mrf.mxu3 }
 0x588   : > { %v3707_v11 = vpack.c.bf16 %v3704_v58, %v3704_v58  ;;  %v3719_v13 = vrot.slane %v3717_v20, 7  ;;  %v3845_v18 = vrot.slane %v3720_v53, 1 }
 0x58a   : > { %v3713_v60 = vunpack.c.l.b16 %v3707_v11  ;;  %v3722_v27 = vor.u32 %v3720_v53, %v3719_v13  ;;  %v3846_v2 = vor.u32 %v3845_v18, %v3717_v20 }
 0x58c   : > { %v3715_v14 = vpack.c.b16 %v3713_v60, %v3713_v60  ;;  %v3732_v6 = vsel %vm6169_vm3, 0, %v3722_v27 }
 0x58d   : > { %4687 = vmatmul.msk.bf16.vlgmr.msrb.gmra.mxu0 %vm3774_vm15, %v3732_v6 }
 0x58e   : > { %v3727_v62 = vshll.u32 %v3715_v14, 16  ;;  %v3724_v17 = vshrl.u32 %v3715_v14, 16 }
 0x590   : > { %v3847_v22 = vrot.slane %v3727_v62, 1  ;;  %v3726_v0 = vrot.slane %v3724_v17, 7 }
 0x592   : > { %v3848_v46 = vsel %vm2684_vm4, %v3846_v2, %v3847_v22  ;;  %v3729_v32 = vor.u32 %v3727_v62, %v3726_v0  ;;  %v3849_v33 = vor.u32 %v3847_v22, %v3724_v17 }
 0x593   : > { %4713 = vmatmul.msk.bf16.vlgmr.msrb.gmra.mxu1 %vm3774_vm15, %v3848_v46 }
 0x594   : > { %v3730_v56 = vsel %vm2470_vm1, %v3719_v13, %v3729_v32  ;;  %v3851_v15 = vsel %vm6575_vm14, %v3849_v33, 0  ;;  %vm3966_vm1 = vcmask 523268  }
 0x596   : > { %4670 = vmatmul.msk.bf16.gmra.mxu3 %vm3774_vm15, %v3715_v14 }
 0x59d   : > { %4688 = vmatmul.msk.bf16.gmra.mxu0 %vm3774_vm15, %v3730_v56 }
 0x5a3   : > { %4714 = vmatmul.msk.bf16.gmra.mxu1 %vm3774_vm15, %v3851_v15 }
 0x609   : > { %v3788_v63 = vpop.f32.mrf.mxu3 }
 0x60a   : > { %v3836_v29 = vpop.f32.mrf.mxu0 }
 0x60b   : > { %v3837_v31 = vadd.f32 %v3836_v29, %v3788_v63 }
 0x610   : > { %v3900_v59 = vpop.f32.mrf.mxu1 }
 0x611   : > { %v3909_v61 = vadd.f32 %v3900_v59, %v3837_v31  ;;  %v3790_v10 = vpop.f32.mrf.mxu3 }
 0x612   : > { %v3838_v24 = vpop.f32.mrf.mxu0 }
 0x613   : > { %v3946_v49 = vadd.f32 %v6594_v23, %v3909_v61  ;;  %v3839_v23 = vadd.f32 %v3838_v24, %v3790_v10 }
 0x615   : > { %v3952_v37 = vadd.f32 %v4894_v57, %v3946_v49 }
 0x617   : > { %v3955_v30 = vmax.f32 %v3952_v37, 0.0 }
 0x618   : > { %v3902_v43 = vpop.f32.mrf.mxu1 }
 0x619   : > { %v3959_v25 = vsel %vm3958_vm0, %v3955_v30, -inf  ;;  %v3967_v51 = vsel %vm3966_vm1, %v3955_v30, -inf  ;;  %v3910_v12 = vadd.f32 %v3902_v43, %v3839_v23  ;;  %v3793_v1 = vpop.f32.mrf.mxu3 }
 0x61a   : > { %v3960_v16 = vrot.slane %v3959_v25, 4  ;;  %v3968_v5 = vrot.slane %v3967_v51, 4  ;;  %v3841_v4 = vpop.f32.mrf.mxu0 }
 0x61b   : > { %v3947_v34 = vadd.f32 %v6596_v50, %v3910_v12  ;;  %v3842_v3 = vadd.f32 %v3841_v4, %v3793_v1 }
 0x61c   : > { %v3961_v48 = vmax.f32 %v3959_v25, %v3960_v16  ;;  %v3969_v19 = vmax.f32 %v3967_v51, %v3968_v5 }
 0x61d   : > { %v3953_v38 = vadd.f32 %v4894_v57, %v3947_v34 }
 0x61e   : > { %v3962_v50 = vrot.slane %v3961_v48, 2  ;;  %v3970_v7 = vrot.slane %v3969_v19, 2 }
 0x61f   : > { %v3956_v39 = vmax.f32 %v3953_v38, 0.0  ;;  %v4868_v38 = vld [vmem:[%s6748_s23 + $0x8] sm:$0xff] }
 0x620   : > { %v3905_v8 = vpop.f32.mrf.mxu1  ;;  %v3963_v27 = vmax.f32 %v3961_v48, %v3962_v50  ;;  %v3971_v18 = vmax.f32 %v3969_v19, %v3970_v7  ;;  %4228 = vmatpush.bf16.msra.mxu2 %v4868_v38 }
 0x621   : > { %v3974_v9 = vsel %vm3958_vm0, %v3956_v39, -inf  ;;  %v3981_v20 = vsel %vm3966_vm1, %v3956_v39, -inf  ;;  %v3911_v58 = vadd.f32 %v3905_v8, %v3842_v3  ;;  %v3795_v26 = vpop.f32.mrf.mxu3  ;;  %v4867_v39 = vld [vmem:[%s6748_s23] sm:$0xff] }
 0x622   : > { %v3975_v11 = vrot.slane %v3974_v9, 4  ;;  %v3982_v13 = vrot.slane %v3981_v20, 4  ;;  %v3843_v53 = vpop.f32.mrf.mxu0  ;;  %v3964_v46 = vrot.slane %v3963_v27, 1  ;;  %v3972_v56 = vrot.slane %v3971_v18, 1 }
 0x623   : > { %v3948_v60 = vadd.f32 %v6604_v42, %v3911_v58  ;;  %v4896_v58 = vld [vmem:[%s6747_s22] ss:$0 sm:$0xff] }
 0x624   : > { %v3976_v14 = vmax.f32 %v3974_v9, %v3975_v11  ;;  %v3983_v6 = vmax.f32 %v3981_v20, %v3982_v13  ;;  %v3965_v59 = vmax.f32 %v3963_v27, %v3964_v46  ;;  %v3973_v21 = vmax.f32 %v3971_v18, %v3972_v56  ;;  %4229 = vmatpush.bf16.msra.mxu2 %v4867_v39  ;;  %v4895_v9 = vld [vmem:[%s6746_s21] ss:$0 sm:$0xff] }
 0x625   : > { %v3954_v62 = vadd.f32 %v4894_v57, %v3948_v60 }
 0x626   : > { %v3977_v17 = vrot.slane %v3976_v14, 2  ;;  %v3984_v2 = vrot.slane %v3983_v6, 2  ;;  %v4002_v55 = vsel %vm2527_vm2, %v3965_v59, %v3973_v21  ;;  %vm4235_vm2 = vcmask 0  }
 0x627   : > { %v3957_v22 = vmax.f32 %v3954_v62, 0.0 }
 0x628   : > { %v3978_v0 = vmax.f32 %v3976_v14, %v3977_v17  ;;  %v3907_v32 = vpop.f32.mrf.mxu1  ;;  %v3985_v33 = vmax.f32 %v3983_v6, %v3984_v2 }
 0x629   : > { %v3988_v15 = vsel %vm3958_vm0, %v3957_v22, -inf  ;;  %v3995_v63 = vsel %vm3966_vm1, %v3957_v22, -inf  ;;  %v4194_v22 = vld [vmem:[#allocation2] sm:$0x1] }
 0x62a   : > { %v3979_v29 = vrot.slane %v3978_v0, 1  ;;  %v3989_v40 = vrot.slane %v3988_v15, 4  ;;  %v3996_v42 = vrot.slane %v3995_v63, 4  ;;  %v3986_v61 = vrot.slane %v3985_v33, 1 }
 0x62c   : > { %v3990_v54 = vmax.f32 %v3988_v15, %v3989_v40  ;;  %v3997_v31 = vmax.f32 %v3995_v63, %v3996_v42  ;;  %v3980_v57 = vmax.f32 %v3978_v0, %v3979_v29  ;;  %v3987_v35 = vmax.f32 %v3985_v33, %v3986_v61 }
 0x62e   : > { %v3991_v10 = vrot.slane %v3990_v54, 2  ;;  %v3998_v24 = vrot.slane %v3997_v31, 2  ;;  %v4003_v37 = vsel %vm3483_vm7, %v4002_v55, %v3980_v57 }
 0x62f   : > { %v4004_v45 = vsel %vm3485_vm8, %v4003_v37, %v3987_v35 }
 0x630   : > { %v3992_v41 = vmax.f32 %v3990_v54, %v3991_v10  ;;  %v3999_v49 = vmax.f32 %v3997_v31, %v3998_v24 }
 0x632   : > { %v3993_v52 = vrot.slane %v3992_v41, 1  ;;  %v4000_v30 = vrot.slane %v3999_v49, 1 }
 0x634   : > { %v3994_v23 = vmax.f32 %v3992_v41, %v3993_v52  ;;  %v4001_v43 = vmax.f32 %v3999_v49, %v4000_v30 }
 0x636   : > { %v4005_v47 = vsel %vm3487_vm9, %v4004_v45, %v3994_v23 }
 0x637   : > { %v4006_v25 = vsel %vm3489_vm10, %v4005_v47, %v4001_v43 }
 0x638   : > { %v4007_v51 = vpack.c.bf16 %v4006_v25, %v4006_v25 }
 0x63a   : > { %v4026_v12 = vunpack.c.l.b16 %v4007_v51  ;;  %4766 = vmatmul.msk.bf16.vlgmr.msra.gmra.mxu0 %vm3774_vm15, %v4007_v51 }
 0x63c   : > { %v4027_v1 = vpack.c.b16 %v4026_v12, %v4026_v12 }
 0x63e   : > { %v4124_v16 = vrot.slane %v4027_v1, 1  ;;  %v4031_v5 = vshll.u32 %v4027_v1, 16  ;;  %v4029_v4 = vshrl.u32 %v4027_v1, 16 }
 0x640   : > { %4791 = vmatmul.msk.bf16.vlgmr.msra.gmra.mxu1 %vm3774_vm15, %v4124_v16  ;;  %v4033_v34 = vrot.slane %v4031_v5, 1 }
 0x642   : > { %v4034_v48 = vor.u32 %v4033_v34, %v4029_v4 }
 0x644   : > { %4749 = vmatmul.msk.bf16.vlgmr.msra.gmra.mxu3 %vm3774_vm15, %v4034_v48 }
 0x6b7   : > { %v4111_v19 = vpop.f32.mrf.mxu0 }
 0x6bd   : > { %v4161_v36 = vpop.f32.mrf.mxu1 }
 0x6bf   : > { %v4113_v3 = vpop.f32.mrf.mxu0 }
 0x6c5   : > { %v4163_v50 = vpop.f32.mrf.mxu1 }
 0x6c7   : > { %v4071_v8 = vpop.f32.mrf.mxu3 }
 0x6c8   : > { %v4112_v7 = vadd.f32 %v4111_v19, %v4071_v8 }
 0x6ca   : > { %v4165_v20 = vadd.f32 %v4161_v36, %v4112_v7 }
 0x6cc   : > { %v4170_v26 = vmul.f32 %v4895_v9, %v4165_v20 }
 0x6ce   : > { %v4175_v11 = vadd.f32 %v4896_v58, %v4170_v26 }
 0x6cf   : > { %v4073_v13 = vpop.f32.mrf.mxu3 }
 0x6d0   : > { %v4176_v53 = vmax.f32 %v4175_v11, 0.0 }
 0x6d2   : > { %v4177_v60 = vsel %vm3958_vm0, %v4176_v53, -inf }
 0x6d3   : > { %v4178_v27 = vrot.slane %v4177_v60, 4 }
 0x6d5   : > { %v4179_v14 = vmax.f32 %v4177_v60, %v4178_v27 }
 0x6d7   : > { %v4180_v6 = vrot.slane %v4179_v14, 2 }
 0x6d9   : > { %v4181_v18 = vmax.f32 %v4179_v14, %v4180_v6 }
 0x6db   : > { %v4182_v62 = vrot.slane %v4181_v18, 1 }
 0x6dd   : > { %v4183_v17 = vmax.f32 %v4181_v18, %v4182_v62 }
 0x6df   : > { %v4185_v2 = vpack.c.bf16 %v4183_v17, %v4183_v17 }
 0x6e1   : > { %4808 = vmatmul.msk.bf16.vlgmr.msra.gmra.mxu2 %vm3774_vm15, %v4185_v2 }
 0x764   : > { %v4231_v46 = vpop.f32.mrf.mxu2 }
 0x765   : > { %v4232_v0 = vadd.f32 %v4231_v46, %v4194_v22 }
 0x767   : > { %4236 = vst.msk [vmem:[%s762_s1] sm:$0x1] %vm4235_vm2, %v4232_v0 }
 0x76c   : > { %v4233_v32 = vpop.f32.mrf.mxu2 }
 0x76d PF: > { %s37_s6 = sadd.s32 1, %s4905_s6  }
 0x76e   : > { %p34_p4 = scmp.ge.s32.totalorder %s37_s6, 4  }
 0x770   :  { %36 = sbr.rel (!%p34_p4) target bundleno = 11 (0xb), region = 164 }

</bundles_post_ra>
